<compile_context>
chip_gen: v7x
topology: tpu7x:2x2x1
jax: 0.10.0
libtpu: 0.0.40
codegen_flags: <defaults>
</compile_context>

<pallas_src>
import numpy as np
import jax
import jax.numpy as jnp
from jax.experimental import pallas as pl
from jax.experimental.pallas import tpu as pltpu

N_QUBITS = 4
BN_EPS = 1e-5


# ----------------------------- in-kernel math helpers -----------------------

def _sigmoid(v):
    # approx reciprocal -> EUP slot (free next to the exp)
    return pl.reciprocal(1.0 + jnp.exp(-v), approx=True)


def _silu(v):
    return v * _sigmoid(v)


# ----------------------------- conv tower kernel ----------------------------

def _conv1d_same(x_bf, w_ref, b_ref, K, dilation):
    """'Same'-padded 1D conv on a (TB, L, Cin) bf16 tile as ONE im2col matmul.

    x_bf  : (TB, L, Cin) bf16 activations (cast once per conv output)
    w_ref : (K*Cin, Cout) bf16 Ref, rows ordered (k, cin)  (BN pre-folded)
    b_ref : (1, 1, Cout)  f32  Ref                         (BN pre-folded)
    Returns (TB, L, Cout) f32.
    """
    tb, L, cin = x_bf.shape
    cout = w_ref.shape[1]
    pad = dilation * (K - 1) // 2
    if pad > 0:
        zpad = jnp.zeros((tb, pad, cin), jnp.bfloat16)
        xp = jnp.concatenate([zpad, x_bf, zpad], axis=1)         # (TB, L+2p, Cin) bf16
    else:
        xp = x_bf
    taps = [xp[:, k * dilation:k * dilation + L, :] for k in range(K)]
    xcol = jnp.concatenate(taps, axis=-1).reshape(tb * L, K * cin)   # bf16
    y = jnp.dot(xcol, w_ref[...], preferred_element_type=jnp.float32)
    return y.reshape(tb, L, cout) + b_ref[...]


def _tower_kernel(x_ref,
                  w1, b1, wa1, ba1, wa2, ba2,
                  wd1, bd1, wd2, bd2,
                  wr1, br1, wr2, br2,
                  out_ref):
    tb, L, k1 = x_ref.shape

    # conv1 (+BN+SiLU): im2col built lane-dense in the wrapper, f32 matmul.
    xcol1 = x_ref[...].reshape(tb * L, k1)                           # (TB*L, 8) f32
    h = jnp.dot(xcol1, w1[...], preferred_element_type=jnp.float32)
    h = _silu(h.reshape(tb, L, -1) + b1[...])                        # (TB,L,64) f32

    # spatial attention (convs in bf16, gating in f32)
    a = _silu(_conv1d_same(h.astype(jnp.bfloat16), wa1, ba1, K=7, dilation=1))
    att = _sigmoid(_conv1d_same(a.astype(jnp.bfloat16), wa2, ba2, K=7, dilation=1))
    h = h * att                                                      # (TB,L,64) f32

    # dilated conv block
    h = _silu(_conv1d_same(h.astype(jnp.bfloat16), wd1, bd1, K=3, dilation=2))
    h = _silu(_conv1d_same(h.astype(jnp.bfloat16), wd2, bd2, K=3, dilation=4))

    # residual block (Dropout = identity in eval mode)
    identity = h                                                     # (TB,L,128) f32
    r = _silu(_conv1d_same(h.astype(jnp.bfloat16), wr1, br1, K=3, dilation=1))
    r = _conv1d_same(r.astype(jnp.bfloat16), wr2, br2, K=3, dilation=1)
    h = _silu(r + identity)

    # AdaptiveAvgPool1d(1): lane-dense (TB, 128) output -> unmasked stores.
    out_ref[...] = jnp.mean(h, axis=1)


def _round_up(a, m):
    return ((a + m - 1) // m) * m


def _batch_tiling(B, L):
    """Pick (padded batch, batch tile).  TB multiple of 8; TB*L targeted at
    512-2048 MXU rows; tiny batches are only rounded up to 8 (not 8x)."""
    cap = max(8, min(128, (2048 // max(L, 1)) // 8 * 8))
    bp8 = _round_up(max(B, 1), 8)
    if bp8 <= cap:
        return bp8, bp8                       # single grid step, minimal padding
    tb = cap
    return _round_up(B, tb), tb


def tower_forward(xcol1, params, tb):
    bp, L, k1 = xcol1.shape
    weights = [params[k] for k in ("w1", "b1", "wa1", "ba1", "wa2", "ba2",
                                   "wd1", "bd1", "wd2", "bd2",
                                   "wr1", "br1", "wr2", "br2")]

    def const_spec(arr):
        nd = arr.ndim
        return pl.BlockSpec(arr.shape, lambda b: (0,) * nd)

    in_specs = ([pl.BlockSpec((tb, L, k1), lambda b: (b, 0, 0))]
                + [const_spec(w) for w in weights])

    # Footprint-derived scoped-VMEM limit (v7x has 64 MiB per TC -> cap below).
    vmem_bytes = int(min(56 * 1024 * 1024,
                         max(24 * 1024 * 1024, 8 * 1024 * tb * L)))

    return pl.pallas_call(
        _tower_kernel,
        out_shape=jax.ShapeDtypeStruct((bp, 128), jnp.float32),
        grid_spec=pltpu.PrefetchScalarGridSpec(
            num_scalar_prefetch=0,
            grid=(bp // tb,),
            in_specs=in_specs,
            out_specs=pl.BlockSpec((tb, 128), lambda b: (b, 0)),
        ),
        compiler_params=pltpu.CompilerParams(
            dimension_semantics=("parallel",),
            vmem_limit_bytes=vmem_bytes,
        ),
    )(xcol1, *weights)


# ---------------- quantum circuit (closed form) + FC head (XLA, same jit) ----

def _build_cnot_chain():
    dim = 2 ** N_QUBITS
    mat = np.eye(dim, dtype=np.float32)
    for c in range(N_QUBITS - 1):
        t = c + 1
        idx = np.arange(dim)
        cbit = (idx >> (N_QUBITS - 1 - c)) & 1
        out = np.where(cbit == 1, idx ^ (1 << (N_QUBITS - 1 - t)), idx)
        p = np.zeros((dim, dim), np.float32)
        p[out, idx] = 1.0
        mat = p @ mat
    return mat


def _build_z_sign():
    dim = 2 ** N_QUBITS
    idx = np.arange(dim)
    s = np.zeros((dim, N_QUBITS), np.float32)
    for i in range(N_QUBITS):
        s[:, i] = 1.0 - 2.0 * ((idx >> (N_QUBITS - 1 - i)) & 1)
    return s


_CNOT_CHAIN_NP = _build_cnot_chain()
_Z_SIGN_NP = _build_z_sign()


def _ry_mat(t):
    c = jnp.cos(0.5 * t).astype(jnp.complex64)
    s = jnp.sin(0.5 * t).astype(jnp.complex64)
    return jnp.stack([jnp.stack([c, -s]), jnp.stack([s, c])])


def _rz_mat(t):
    e = jnp.exp(-0.5j * t.astype(jnp.complex64))
    z = jnp.zeros((), jnp.complex64)
    return jnp.stack([jnp.stack([e, z]), jnp.stack([z, jnp.conj(e)])])


def _circuit_unitary(q_weights):
    """Weight-dependent (input-independent) part of the circuit as one 16x16
    unitary; returns transposed real/imag parts so psi = s0 @ (ur + i*ui)."""
    def layer(offset):
        u = None
        for i in range(N_QUBITS):
            g = _ry_mat(q_weights[offset + i, 1]) @ _rz_mat(q_weights[offset + i, 0])
            u = g if u is None else jnp.kron(u, g)
        return u
    u1 = layer(0)
    u2 = layer(N_QUBITS)
    u = u2 @ jnp.asarray(_CNOT_CHAIN_NP, jnp.complex64) @ u1
    ut = u.T
    return jnp.real(ut).astype(jnp.float32), jnp.imag(ut).astype(jnp.float32)


def _quantum_head(q_in, params):
    """Exact 4-qubit PauliZ expectations (closed form) + FC head, batched."""
    ur, ui = _circuit_unitary(params["q_weights"])               # (16,16) each
    half = 0.5 * q_in
    c, s = jnp.cos(half), jnp.sin(half)                          # (B, 4)
    idx = np.arange(2 ** N_QUBITS)
    s0 = jnp.ones((q_in.shape[0], 2 ** N_QUBITS), jnp.float32)   # real product state
    for i in range(N_QUBITS):
        bit = jnp.asarray((idx >> (N_QUBITS - 1 - i)) & 1)
        s0 = s0 * jnp.where(bit == 0, c[:, i:i + 1], s[:, i:i + 1])
    psi_re = s0 @ ur
    psi_im = s0 @ ui
    probs = psi_re * psi_re + psi_im * psi_im                    # (B, 16)
    z = probs @ jnp.asarray(_Z_SIGN_NP)                          # <PauliZ_i>: (B, 4)

    h = jax.nn.silu(z @ params["fc1_w"] + params["fc1_b"])       # fc1+BN+SiLU (dropout=id)
    h = jax.nn.silu(h @ params["fc2_w"] + params["fc2_b"])       # fc2+BN+SiLU (dropout=id)
    return h @ params["fc3_w"] + params["fc3_b"]                 # fc3 -> (B, 1)


# ----------------------------- parameter setup -------------------------------

def _fold_bn(w, b, gamma, beta, mean, var, eps=BN_EPS):
    scale = gamma / jnp.sqrt(var + eps)
    return w * scale, (b - mean) * scale + beta


def init_params(key):
    keys = iter(jax.random.split(key, 64))

    def nrm(shape, s=0.1):
        return s * jax.random.normal(next(keys), shape, jnp.float32)

    def bn_stats(c):
        gamma = 1.0 + nrm((c,))
        beta = nrm((c,))
        mean = nrm((c,))
        var = 0.9 + jnp.abs(nrm((c,)))
        return gamma, beta, mean, var

    def conv_bn(K, cin, cout, dtype=jnp.bfloat16, pad_rows=None):
        w, b = nrm((K, cin, cout)), nrm((cout,))
        w, b = _fold_bn(w, b, *bn_stats(cout))
        wm = w.reshape(K * cin, cout)                 # im2col rows ordered (k, cin)
        if pad_rows is not None and pad_rows > K * cin:
            wm = jnp.pad(wm, ((0, pad_rows - K * cin), (0, 0)))
        return wm.astype(dtype), b.reshape(1, 1, cout).astype(jnp.float32)

    def linear(cin, cout, with_bn=False):
        w, b = nrm((cin, cout)), nrm((cout,))
        if with_bn:
            w, b = _fold_bn(w, b, *bn_stats(cout))
        return w.astype(jnp.float32), b.reshape(1, cout).astype(jnp.float32)

    p = {}
    p["w1"], p["b1"] = conv_bn(5, 1, 64, dtype=jnp.float32, pad_rows=8)  # conv1 (f32)
    p["wa1"], p["ba1"] = conv_bn(7, 64, 32)       # spatial attention conv1
    p["wa2"], p["ba2"] = conv_bn(7, 32, 64)       # spatial attention conv2
    p["wd1"], p["bd1"] = conv_bn(3, 64, 128)      # dilation block conv1 (d=2)
    p["wd2"], p["bd2"] = conv_bn(3, 128, 128)     # dilation block conv2 (d=4)
    p["wr1"], p["br1"] = conv_bn(3, 128, 128)     # res block conv1
    p["wr2"], p["br2"] = conv_bn(3, 128, 128)     # res block conv2
    p["wf"], p["bf"] = linear(128, N_QUBITS)      # quantum feature map (XLA head)
    p["q_weights"] = nrm((2 * N_QUBITS, 2), s=0.5)
    p["fc1_w"], p["fc1_b"] = linear(N_QUBITS, 64, with_bn=True)
    p["fc2_w"], p["fc2_b"] = linear(64, 32, with_bn=True)
    p["fc3_w"], p["fc3_b"] = linear(32, 1)
    return p


# ----------------------------- full forward ----------------------------------

@jax.jit
def hybrid_ert_quantum_cnn_forward(x_ncl, params):
    # x_ncl: (B, 1, input_dim) — same convention as the PyTorch module.
    x = x_ncl[:, 0, :].astype(jnp.float32)                        # (B, L) lane-dense
    B, L = x.shape
    bp, tb = _batch_tiling(B, L)

    # Pre-im2col conv1 (Cin=1, K=5, 'same' pad=2) in the wrapper; pad taps to 8.
    xp = jnp.pad(x, ((0, bp - B), (2, 2)))                        # (bp, L+4)
    xcol1 = jnp.stack([xp[:, k:k + L] for k in range(5)], axis=-1)
    xcol1 = jnp.pad(xcol1, ((0, 0), (0, 0), (0, 3)))              # (bp, L, 8)

    pooled = tower_forward(xcol1, params, tb)[:B]                 # (B, 128) — Pallas
    q_in = pooled @ params["wf"] + params["bf"]                   # feature map -> (B, 4)
    return _quantum_head(q_in, params)                            # (B, 1)


if __name__ == "__main__":
    B, input_dim = 2, 16
    key = jax.random.PRNGKey(0)
    kx, kp = jax.random.split(key)
    x = jax.random.normal(kx, (B, 1, input_dim), jnp.float32)
    params = init_params(kp)
    out = hybrid_ert_quantum_cnn_forward(x, params)
    jax.block_until_ready(out)
    assert out.shape == (B, 1) and out.dtype == jnp.float32
    print("KERNEL_OK")
</pallas_src>

<mosaic_0001>
module attributes {stable_mosaic.version = 11 : i64} {
  func.func @_tower_kernel(%arg0: i32, %arg1: memref<8x16x8xf32, #tpu.memory_space<vmem>>, %arg2: memref<8x64xf32, #tpu.memory_space<vmem>>, %arg3: memref<1x1x64xf32, #tpu.memory_space<vmem>>, %arg4: memref<448x32xbf16, #tpu.memory_space<vmem>>, %arg5: memref<1x1x32xf32, #tpu.memory_space<vmem>>, %arg6: memref<224x64xbf16, #tpu.memory_space<vmem>>, %arg7: memref<1x1x64xf32, #tpu.memory_space<vmem>>, %arg8: memref<192x128xbf16, #tpu.memory_space<vmem>>, %arg9: memref<1x1x128xf32, #tpu.memory_space<vmem>>, %arg10: memref<384x128xbf16, #tpu.memory_space<vmem>>, %arg11: memref<1x1x128xf32, #tpu.memory_space<vmem>>, %arg12: memref<384x128xbf16, #tpu.memory_space<vmem>>, %arg13: memref<1x1x128xf32, #tpu.memory_space<vmem>>, %arg14: memref<384x128xbf16, #tpu.memory_space<vmem>>, %arg15: memref<1x1x128xf32, #tpu.memory_space<vmem>>, %arg16: memref<8x128xf32, #tpu.memory_space<vmem>>) attributes {dimension_semantics = [#tpu.dimension_semantics<parallel>], iteration_bounds = array<i64: 1>, scalar_prefetch = 0 : i64, scratch_operands = 0 : i64, tpu.core_type = #tpu.core_type<tc>, window_params = [{transform_indices = @transform_0, window_bounds = array<i64: 8, 16, 8>}, {pipeline_mode = #tpu.pipeline_mode<synchronous>, transform_indices = @transform_1, window_bounds = array<i64: 8, 64>}, {pipeline_mode = #tpu.pipeline_mode<synchronous>, transform_indices = @transform_2, window_bounds = array<i64: 1, 1, 64>}, {pipeline_mode = #tpu.pipeline_mode<synchronous>, transform_indices = @transform_3, window_bounds = array<i64: 448, 32>}, {pipeline_mode = #tpu.pipeline_mode<synchronous>, transform_indices = @transform_4, window_bounds = array<i64: 1, 1, 32>}, {pipeline_mode = #tpu.pipeline_mode<synchronous>, transform_indices = @transform_5, window_bounds = array<i64: 224, 64>}, {pipeline_mode = #tpu.pipeline_mode<synchronous>, transform_indices = @transform_6, window_bounds = array<i64: 1, 1, 64>}, {pipeline_mode = #tpu.pipeline_mode<synchronous>, transform_indices = @transform_7, window_bounds = array<i64: 192, 128>}, {pipeline_mode = #tpu.pipeline_mode<synchronous>, transform_indices = @transform_8, window_bounds = array<i64: 1, 1, 128>}, {pipeline_mode = #tpu.pipeline_mode<synchronous>, transform_indices = @transform_9, window_bounds = array<i64: 384, 128>}, {pipeline_mode = #tpu.pipeline_mode<synchronous>, transform_indices = @transform_10, window_bounds = array<i64: 1, 1, 128>}, {pipeline_mode = #tpu.pipeline_mode<synchronous>, transform_indices = @transform_11, window_bounds = array<i64: 384, 128>}, {pipeline_mode = #tpu.pipeline_mode<synchronous>, transform_indices = @transform_12, window_bounds = array<i64: 1, 1, 128>}, {pipeline_mode = #tpu.pipeline_mode<synchronous>, transform_indices = @transform_13, window_bounds = array<i64: 384, 128>}, {pipeline_mode = #tpu.pipeline_mode<synchronous>, transform_indices = @transform_14, window_bounds = array<i64: 1, 1, 128>}, {transform_indices = @transform_15, window_bounds = array<i64: 8, 128>}]} {
    %c0 = arith.constant 0 : index
    %c0_0 = arith.constant 0 : index
    %c0_1 = arith.constant 0 : index
    %0 = vector.load %arg1[%c0, %c0_0, %c0_1] : memref<8x16x8xf32, #tpu.memory_space<vmem>>, vector<8x16x8xf32>
    %1 = vector.shape_cast %0 : vector<8x16x8xf32> to vector<128x8xf32>
    %c0_2 = arith.constant 0 : index
    %c0_3 = arith.constant 0 : index
    %2 = vector.load %arg2[%c0_2, %c0_3] : memref<8x64xf32, #tpu.memory_space<vmem>>, vector<8x64xf32>
    %cst = arith.constant dense<0.000000e+00> : vector<128x64xf32>
    %3 = tpu.matmul %1, %2, %cst {dimension_numbers = #tpu.dot_dimension_numbers<[1], [0], [0], [1], [0, 0, 1, 1], [], []>} : vector<128x8xf32>, vector<8x64xf32>, vector<128x64xf32> -> vector<128x64xf32>
    %4 = vector.shape_cast %3 : vector<128x64xf32> to vector<8x16x64xf32>
    %c0_4 = arith.constant 0 : index
    %c0_5 = arith.constant 0 : index
    %c0_6 = arith.constant 0 : index
    %5 = vector.load %arg3[%c0_4, %c0_5, %c0_6] : memref<1x1x64xf32, #tpu.memory_space<vmem>>, vector<1x1x64xf32>
    %6 = vector.broadcast %5 : vector<1x1x64xf32> to vector<8x16x64xf32>
    %7 = arith.addf %4, %6 : vector<8x16x64xf32>
    %cst_7 = arith.constant 0.000000e+00 : f32
    %8 = vector.broadcast %cst_7 : f32 to vector<8x16x64xf32>
    %9 = arith.subf %8, %7 : vector<8x16x64xf32>
    %10 = math.exp %9 : vector<8x16x64xf32>
    %cst_8 = arith.constant 1.000000e+00 : f32
    %11 = vector.broadcast %cst_8 : f32 to vector<8x16x64xf32>
    %12 = arith.addf %11, %10 : vector<8x16x64xf32>
    %13 = tpu.reciprocal %12 {approx = true} : vector<8x16x64xf32> -> vector<8x16x64xf32>
    %14 = arith.mulf %7, %13 : vector<8x16x64xf32>
    %15 = arith.truncf %14 : vector<8x16x64xf32> to vector<8x16x64xbf16>
    %cst_9 = arith.constant 0.000000e+00 : bf16
    %16 = vector.broadcast %cst_9 : bf16 to vector<8x3x64xbf16>
    %17 = tpu.concatenate %16, %15, %16 in 1 : vector<8x3x64xbf16>, vector<8x16x64xbf16>, vector<8x3x64xbf16> -> vector<8x22x64xbf16>
    %18 = vector.extract_strided_slice %17 {offsets = [0, 0, 0], sizes = [8, 16, 64], strides = [1, 1, 1]} : vector<8x22x64xbf16> to vector<8x16x64xbf16>
    %19 = vector.extract_strided_slice %17 {offsets = [0, 1, 0], sizes = [8, 16, 64], strides = [1, 1, 1]} : vector<8x22x64xbf16> to vector<8x16x64xbf16>
    %20 = vector.extract_strided_slice %17 {offsets = [0, 2, 0], sizes = [8, 16, 64], strides = [1, 1, 1]} : vector<8x22x64xbf16> to vector<8x16x64xbf16>
    %21 = vector.extract_strided_slice %17 {offsets = [0, 3, 0], sizes = [8, 16, 64], strides = [1, 1, 1]} : vector<8x22x64xbf16> to vector<8x16x64xbf16>
    %22 = vector.extract_strided_slice %17 {offsets = [0, 4, 0], sizes = [8, 16, 64], strides = [1, 1, 1]} : vector<8x22x64xbf16> to vector<8x16x64xbf16>
    %23 = vector.extract_strided_slice %17 {offsets = [0, 5, 0], sizes = [8, 16, 64], strides = [1, 1, 1]} : vector<8x22x64xbf16> to vector<8x16x64xbf16>
    %24 = vector.extract_strided_slice %17 {offsets = [0, 6, 0], sizes = [8, 16, 64], strides = [1, 1, 1]} : vector<8x22x64xbf16> to vector<8x16x64xbf16>
    %25 = tpu.concatenate %18, %19, %20, %21, %22, %23, %24 in 2 : vector<8x16x64xbf16>, vector<8x16x64xbf16>, vector<8x16x64xbf16>, vector<8x16x64xbf16>, vector<8x16x64xbf16>, vector<8x16x64xbf16>, vector<8x16x64xbf16> -> vector<8x16x448xbf16>
    %26 = vector.shape_cast %25 : vector<8x16x448xbf16> to vector<128x448xbf16>
    %c0_10 = arith.constant 0 : index
    %c0_11 = arith.constant 0 : index
    %27 = vector.load %arg4[%c0_10, %c0_11] : memref<448x32xbf16, #tpu.memory_space<vmem>>, vector<448x32xbf16>
    %cst_12 = arith.constant dense<0.000000e+00> : vector<128x32xf32>
    %28 = tpu.matmul %26, %27, %cst_12 {dimension_numbers = #tpu.dot_dimension_numbers<[1], [0], [0], [1], [0, 0, 1, 1], [], []>} : vector<128x448xbf16>, vector<448x32xbf16>, vector<128x32xf32> -> vector<128x32xf32>
    %29 = vector.shape_cast %28 : vector<128x32xf32> to vector<8x16x32xf32>
    %c0_13 = arith.constant 0 : index
    %c0_14 = arith.constant 0 : index
    %c0_15 = arith.constant 0 : index
    %30 = vector.load %arg5[%c0_13, %c0_14, %c0_15] : memref<1x1x32xf32, #tpu.memory_space<vmem>>, vector<1x1x32xf32>
    %31 = vector.broadcast %30 : vector<1x1x32xf32> to vector<8x16x32xf32>
    %32 = arith.addf %29, %31 : vector<8x16x32xf32>
    %cst_16 = arith.constant 0.000000e+00 : f32
    %33 = vector.broadcast %cst_16 : f32 to vector<8x16x32xf32>
    %34 = arith.subf %33, %32 : vector<8x16x32xf32>
    %35 = math.exp %34 : vector<8x16x32xf32>
    %cst_17 = arith.constant 1.000000e+00 : f32
    %36 = vector.broadcast %cst_17 : f32 to vector<8x16x32xf32>
    %37 = arith.addf %36, %35 : vector<8x16x32xf32>
    %38 = tpu.reciprocal %37 {approx = true} : vector<8x16x32xf32> -> vector<8x16x32xf32>
    %39 = arith.mulf %32, %38 : vector<8x16x32xf32>
    %40 = arith.truncf %39 : vector<8x16x32xf32> to vector<8x16x32xbf16>
    %cst_18 = arith.constant 0.000000e+00 : bf16
    %41 = vector.broadcast %cst_18 : bf16 to vector<8x3x32xbf16>
    %42 = tpu.concatenate %41, %40, %41 in 1 : vector<8x3x32xbf16>, vector<8x16x32xbf16>, vector<8x3x32xbf16> -> vector<8x22x32xbf16>
    %43 = vector.extract_strided_slice %42 {offsets = [0, 0, 0], sizes = [8, 16, 32], strides = [1, 1, 1]} : vector<8x22x32xbf16> to vector<8x16x32xbf16>
    %44 = vector.extract_strided_slice %42 {offsets = [0, 1, 0], sizes = [8, 16, 32], strides = [1, 1, 1]} : vector<8x22x32xbf16> to vector<8x16x32xbf16>
    %45 = vector.extract_strided_slice %42 {offsets = [0, 2, 0], sizes = [8, 16, 32], strides = [1, 1, 1]} : vector<8x22x32xbf16> to vector<8x16x32xbf16>
    %46 = vector.extract_strided_slice %42 {offsets = [0, 3, 0], sizes = [8, 16, 32], strides = [1, 1, 1]} : vector<8x22x32xbf16> to vector<8x16x32xbf16>
    %47 = vector.extract_strided_slice %42 {offsets = [0, 4, 0], sizes = [8, 16, 32], strides = [1, 1, 1]} : vector<8x22x32xbf16> to vector<8x16x32xbf16>
    %48 = vector.extract_strided_slice %42 {offsets = [0, 5, 0], sizes = [8, 16, 32], strides = [1, 1, 1]} : vector<8x22x32xbf16> to vector<8x16x32xbf16>
    %49 = vector.extract_strided_slice %42 {offsets = [0, 6, 0], sizes = [8, 16, 32], strides = [1, 1, 1]} : vector<8x22x32xbf16> to vector<8x16x32xbf16>
    %50 = tpu.concatenate %43, %44, %45, %46, %47, %48, %49 in 2 : vector<8x16x32xbf16>, vector<8x16x32xbf16>, vector<8x16x32xbf16>, vector<8x16x32xbf16>, vector<8x16x32xbf16>, vector<8x16x32xbf16>, vector<8x16x32xbf16> -> vector<8x16x224xbf16>
    %51 = vector.shape_cast %50 : vector<8x16x224xbf16> to vector<128x224xbf16>
    %c0_19 = arith.constant 0 : index
    %c0_20 = arith.constant 0 : index
    %52 = vector.load %arg6[%c0_19, %c0_20] : memref<224x64xbf16, #tpu.memory_space<vmem>>, vector<224x64xbf16>
    %cst_21 = arith.constant dense<0.000000e+00> : vector<128x64xf32>
    %53 = tpu.matmul %51, %52, %cst_21 {dimension_numbers = #tpu.dot_dimension_numbers<[1], [0], [0], [1], [0, 0, 1, 1], [], []>} : vector<128x224xbf16>, vector<224x64xbf16>, vector<128x64xf32> -> vector<128x64xf32>
    %54 = vector.shape_cast %53 : vector<128x64xf32> to vector<8x16x64xf32>
    %c0_22 = arith.constant 0 : index
    %c0_23 = arith.constant 0 : index
    %c0_24 = arith.constant 0 : index
    %55 = vector.load %arg7[%c0_22, %c0_23, %c0_24] : memref<1x1x64xf32, #tpu.memory_space<vmem>>, vector<1x1x64xf32>
    %56 = vector.broadcast %55 : vector<1x1x64xf32> to vector<8x16x64xf32>
    %57 = arith.addf %54, %56 : vector<8x16x64xf32>
    %cst_25 = arith.constant 0.000000e+00 : f32
    %58 = vector.broadcast %cst_25 : f32 to vector<8x16x64xf32>
    %59 = arith.subf %58, %57 : vector<8x16x64xf32>
    %60 = math.exp %59 : vector<8x16x64xf32>
    %cst_26 = arith.constant 1.000000e+00 : f32
    %61 = vector.broadcast %cst_26 : f32 to vector<8x16x64xf32>
    %62 = arith.addf %61, %60 : vector<8x16x64xf32>
    %63 = tpu.reciprocal %62 {approx = true} : vector<8x16x64xf32> -> vector<8x16x64xf32>
    %64 = arith.mulf %14, %63 : vector<8x16x64xf32>
    %65 = arith.truncf %64 : vector<8x16x64xf32> to vector<8x16x64xbf16>
    %cst_27 = arith.constant 0.000000e+00 : bf16
    %66 = vector.broadcast %cst_27 : bf16 to vector<8x2x64xbf16>
    %67 = tpu.concatenate %66, %65, %66 in 1 : vector<8x2x64xbf16>, vector<8x16x64xbf16>, vector<8x2x64xbf16> -> vector<8x20x64xbf16>
    %68 = vector.extract_strided_slice %67 {offsets = [0, 0, 0], sizes = [8, 16, 64], strides = [1, 1, 1]} : vector<8x20x64xbf16> to vector<8x16x64xbf16>
    %69 = vector.extract_strided_slice %67 {offsets = [0, 2, 0], sizes = [8, 16, 64], strides = [1, 1, 1]} : vector<8x20x64xbf16> to vector<8x16x64xbf16>
    %70 = vector.extract_strided_slice %67 {offsets = [0, 4, 0], sizes = [8, 16, 64], strides = [1, 1, 1]} : vector<8x20x64xbf16> to vector<8x16x64xbf16>
    %71 = tpu.concatenate %68, %69, %70 in 2 : vector<8x16x64xbf16>, vector<8x16x64xbf16>, vector<8x16x64xbf16> -> vector<8x16x192xbf16>
    %72 = vector.shape_cast %71 : vector<8x16x192xbf16> to vector<128x192xbf16>
    %c0_28 = arith.constant 0 : index
    %c0_29 = arith.constant 0 : index
    %73 = vector.load %arg8[%c0_28, %c0_29] : memref<192x128xbf16, #tpu.memory_space<vmem>>, vector<192x128xbf16>
    %cst_30 = arith.constant dense<0.000000e+00> : vector<128x128xf32>
    %74 = tpu.matmul %72, %73, %cst_30 {dimension_numbers = #tpu.dot_dimension_numbers<[1], [0], [0], [1], [0, 0, 1, 1], [], []>} : vector<128x192xbf16>, vector<192x128xbf16>, vector<128x128xf32> -> vector<128x128xf32>
    %75 = vector.shape_cast %74 : vector<128x128xf32> to vector<8x16x128xf32>
    %c0_31 = arith.constant 0 : index
    %c0_32 = arith.constant 0 : index
    %c0_33 = arith.constant 0 : index
    %76 = vector.load %arg9[%c0_31, %c0_32, %c0_33] : memref<1x1x128xf32, #tpu.memory_space<vmem>>, vector<1x1x128xf32>
    %77 = vector.broadcast %76 : vector<1x1x128xf32> to vector<8x16x128xf32>
    %78 = arith.addf %75, %77 : vector<8x16x128xf32>
    %cst_34 = arith.constant 0.000000e+00 : f32
    %79 = vector.broadcast %cst_34 : f32 to vector<8x16x128xf32>
    %80 = arith.subf %79, %78 : vector<8x16x128xf32>
    %81 = math.exp %80 : vector<8x16x128xf32>
    %cst_35 = arith.constant 1.000000e+00 : f32
    %82 = vector.broadcast %cst_35 : f32 to vector<8x16x128xf32>
    %83 = arith.addf %82, %81 : vector<8x16x128xf32>
    %84 = tpu.reciprocal %83 {approx = true} : vector<8x16x128xf32> -> vector<8x16x128xf32>
    %85 = arith.mulf %78, %84 : vector<8x16x128xf32>
    %86 = arith.truncf %85 : vector<8x16x128xf32> to vector<8x16x128xbf16>
    %cst_36 = arith.constant 0.000000e+00 : bf16
    %87 = vector.broadcast %cst_36 : bf16 to vector<8x4x128xbf16>
    %88 = tpu.concatenate %87, %86, %87 in 1 : vector<8x4x128xbf16>, vector<8x16x128xbf16>, vector<8x4x128xbf16> -> vector<8x24x128xbf16>
    %89 = vector.extract_strided_slice %88 {offsets = [0, 0, 0], sizes = [8, 16, 128], strides = [1, 1, 1]} : vector<8x24x128xbf16> to vector<8x16x128xbf16>
    %90 = vector.extract_strided_slice %88 {offsets = [0, 4, 0], sizes = [8, 16, 128], strides = [1, 1, 1]} : vector<8x24x128xbf16> to vector<8x16x128xbf16>
    %91 = vector.extract_strided_slice %88 {offsets = [0, 8, 0], sizes = [8, 16, 128], strides = [1, 1, 1]} : vector<8x24x128xbf16> to vector<8x16x128xbf16>
    %92 = tpu.concatenate %89, %90, %91 in 2 : vector<8x16x128xbf16>, vector<8x16x128xbf16>, vector<8x16x128xbf16> -> vector<8x16x384xbf16>
    %93 = vector.shape_cast %92 : vector<8x16x384xbf16> to vector<128x384xbf16>
    %c0_37 = arith.constant 0 : index
    %c0_38 = arith.constant 0 : index
    %94 = vector.load %arg10[%c0_37, %c0_38] : memref<384x128xbf16, #tpu.memory_space<vmem>>, vector<384x128xbf16>
    %cst_39 = arith.constant dense<0.000000e+00> : vector<128x128xf32>
    %95 = tpu.matmul %93, %94, %cst_39 {dimension_numbers = #tpu.dot_dimension_numbers<[1], [0], [0], [1], [0, 0, 1, 1], [], []>} : vector<128x384xbf16>, vector<384x128xbf16>, vector<128x128xf32> -> vector<128x128xf32>
    %96 = vector.shape_cast %95 : vector<128x128xf32> to vector<8x16x128xf32>
    %c0_40 = arith.constant 0 : index
    %c0_41 = arith.constant 0 : index
    %c0_42 = arith.constant 0 : index
    %97 = vector.load %arg11[%c0_40, %c0_41, %c0_42] : memref<1x1x128xf32, #tpu.memory_space<vmem>>, vector<1x1x128xf32>
    %98 = vector.broadcast %97 : vector<1x1x128xf32> to vector<8x16x128xf32>
    %99 = arith.addf %96, %98 : vector<8x16x128xf32>
    %cst_43 = arith.constant 0.000000e+00 : f32
    %100 = vector.broadcast %cst_43 : f32 to vector<8x16x128xf32>
    %101 = arith.subf %100, %99 : vector<8x16x128xf32>
    %102 = math.exp %101 : vector<8x16x128xf32>
    %cst_44 = arith.constant 1.000000e+00 : f32
    %103 = vector.broadcast %cst_44 : f32 to vector<8x16x128xf32>
    %104 = arith.addf %103, %102 : vector<8x16x128xf32>
    %105 = tpu.reciprocal %104 {approx = true} : vector<8x16x128xf32> -> vector<8x16x128xf32>
    %106 = arith.mulf %99, %105 : vector<8x16x128xf32>
    %107 = arith.truncf %106 : vector<8x16x128xf32> to vector<8x16x128xbf16>
    %cst_45 = arith.constant 0.000000e+00 : bf16
    %108 = vector.broadcast %cst_45 : bf16 to vector<8x1x128xbf16>
    %109 = tpu.concatenate %108, %107, %108 in 1 : vector<8x1x128xbf16>, vector<8x16x128xbf16>, vector<8x1x128xbf16> -> vector<8x18x128xbf16>
    %110 = vector.extract_strided_slice %109 {offsets = [0, 0, 0], sizes = [8, 16, 128], strides = [1, 1, 1]} : vector<8x18x128xbf16> to vector<8x16x128xbf16>
    %111 = vector.extract_strided_slice %109 {offsets = [0, 1, 0], sizes = [8, 16, 128], strides = [1, 1, 1]} : vector<8x18x128xbf16> to vector<8x16x128xbf16>
    %112 = vector.extract_strided_slice %109 {offsets = [0, 2, 0], sizes = [8, 16, 128], strides = [1, 1, 1]} : vector<8x18x128xbf16> to vector<8x16x128xbf16>
    %113 = tpu.concatenate %110, %111, %112 in 2 : vector<8x16x128xbf16>, vector<8x16x128xbf16>, vector<8x16x128xbf16> -> vector<8x16x384xbf16>
    %114 = vector.shape_cast %113 : vector<8x16x384xbf16> to vector<128x384xbf16>
    %c0_46 = arith.constant 0 : index
    %c0_47 = arith.constant 0 : index
    %115 = vector.load %arg12[%c0_46, %c0_47] : memref<384x128xbf16, #tpu.memory_space<vmem>>, vector<384x128xbf16>
    %cst_48 = arith.constant dense<0.000000e+00> : vector<128x128xf32>
    %116 = tpu.matmul %114, %115, %cst_48 {dimension_numbers = #tpu.dot_dimension_numbers<[1], [0], [0], [1], [0, 0, 1, 1], [], []>} : vector<128x384xbf16>, vector<384x128xbf16>, vector<128x128xf32> -> vector<128x128xf32>
    %117 = vector.shape_cast %116 : vector<128x128xf32> to vector<8x16x128xf32>
    %c0_49 = arith.constant 0 : index
    %c0_50 = arith.constant 0 : index
    %c0_51 = arith.constant 0 : index
    %118 = vector.load %arg13[%c0_49, %c0_50, %c0_51] : memref<1x1x128xf32, #tpu.memory_space<vmem>>, vector<1x1x128xf32>
    %119 = vector.broadcast %118 : vector<1x1x128xf32> to vector<8x16x128xf32>
    %120 = arith.addf %117, %119 : vector<8x16x128xf32>
    %cst_52 = arith.constant 0.000000e+00 : f32
    %121 = vector.broadcast %cst_52 : f32 to vector<8x16x128xf32>
    %122 = arith.subf %121, %120 : vector<8x16x128xf32>
    %123 = math.exp %122 : vector<8x16x128xf32>
    %cst_53 = arith.constant 1.000000e+00 : f32
    %124 = vector.broadcast %cst_53 : f32 to vector<8x16x128xf32>
    %125 = arith.addf %124, %123 : vector<8x16x128xf32>
    %126 = tpu.reciprocal %125 {approx = true} : vector<8x16x128xf32> -> vector<8x16x128xf32>
    %127 = arith.mulf %120, %126 : vector<8x16x128xf32>
    %128 = arith.truncf %127 : vector<8x16x128xf32> to vector<8x16x128xbf16>
    %cst_54 = arith.constant 0.000000e+00 : bf16
    %129 = vector.broadcast %cst_54 : bf16 to vector<8x1x128xbf16>
    %130 = tpu.concatenate %129, %128, %129 in 1 : vector<8x1x128xbf16>, vector<8x16x128xbf16>, vector<8x1x128xbf16> -> vector<8x18x128xbf16>
    %131 = vector.extract_strided_slice %130 {offsets = [0, 0, 0], sizes = [8, 16, 128], strides = [1, 1, 1]} : vector<8x18x128xbf16> to vector<8x16x128xbf16>
    %132 = vector.extract_strided_slice %130 {offsets = [0, 1, 0], sizes = [8, 16, 128], strides = [1, 1, 1]} : vector<8x18x128xbf16> to vector<8x16x128xbf16>
    %133 = vector.extract_strided_slice %130 {offsets = [0, 2, 0], sizes = [8, 16, 128], strides = [1, 1, 1]} : vector<8x18x128xbf16> to vector<8x16x128xbf16>
    %134 = tpu.concatenate %131, %132, %133 in 2 : vector<8x16x128xbf16>, vector<8x16x128xbf16>, vector<8x16x128xbf16> -> vector<8x16x384xbf16>
    %135 = vector.shape_cast %134 : vector<8x16x384xbf16> to vector<128x384xbf16>
    %c0_55 = arith.constant 0 : index
    %c0_56 = arith.constant 0 : index
    %136 = vector.load %arg14[%c0_55, %c0_56] : memref<384x128xbf16, #tpu.memory_space<vmem>>, vector<384x128xbf16>
    %cst_57 = arith.constant dense<0.000000e+00> : vector<128x128xf32>
    %137 = tpu.matmul %135, %136, %cst_57 {dimension_numbers = #tpu.dot_dimension_numbers<[1], [0], [0], [1], [0, 0, 1, 1], [], []>} : vector<128x384xbf16>, vector<384x128xbf16>, vector<128x128xf32> -> vector<128x128xf32>
    %138 = vector.shape_cast %137 : vector<128x128xf32> to vector<8x16x128xf32>
    %c0_58 = arith.constant 0 : index
    %c0_59 = arith.constant 0 : index
    %c0_60 = arith.constant 0 : index
    %139 = vector.load %arg15[%c0_58, %c0_59, %c0_60] : memref<1x1x128xf32, #tpu.memory_space<vmem>>, vector<1x1x128xf32>
    %140 = vector.broadcast %139 : vector<1x1x128xf32> to vector<8x16x128xf32>
    %141 = arith.addf %138, %140 : vector<8x16x128xf32>
    %142 = arith.addf %141, %106 : vector<8x16x128xf32>
    %cst_61 = arith.constant 0.000000e+00 : f32
    %143 = vector.broadcast %cst_61 : f32 to vector<8x16x128xf32>
    %144 = arith.subf %143, %142 : vector<8x16x128xf32>
    %145 = math.exp %144 : vector<8x16x128xf32>
    %cst_62 = arith.constant 1.000000e+00 : f32
    %146 = vector.broadcast %cst_62 : f32 to vector<8x16x128xf32>
    %147 = arith.addf %146, %145 : vector<8x16x128xf32>
    %148 = tpu.reciprocal %147 {approx = true} : vector<8x16x128xf32> -> vector<8x16x128xf32>
    %149 = arith.mulf %142, %148 : vector<8x16x128xf32>
    %cst_63 = arith.constant dense<0.000000e+00> : vector<8x128xf32>
    %150 = vector.multi_reduction <add>, %149, %cst_63 [1] : vector<8x16x128xf32> to vector<8x128xf32>
    %cst_64 = arith.constant 1.600000e+01 : f32
    %151 = vector.broadcast %cst_64 : f32 to vector<8x128xf32>
    %152 = arith.divf %150, %151 : vector<8x128xf32>
    %c0_65 = arith.constant 0 : index
    %c0_66 = arith.constant 0 : index
    %153 = vector.load %arg16[%c0_65, %c0_66] : memref<8x128xf32, #tpu.memory_space<vmem>>, vector<8x128xf32>
    tpu.vector_store %arg16[%c0_65, %c0_66], %152 {strides = array<i32>} : memref<8x128xf32, #tpu.memory_space<vmem>>, vector<8x128xf32>,
    return
  }
  func.func @transform_0(%arg0: i32) -> (i32, i32, i32) {
    %c0_i32 = arith.constant 0 : i32
    %c0_i32_0 = arith.constant 0 : i32
    %c0_i32_1 = arith.constant 0 : i32
    return %arg0, %c0_i32, %c0_i32_0 : i32, i32, i32
  }
  func.func @transform_1(%arg0: i32) -> (i32, i32) {
    %c0_i32 = arith.constant 0 : i32
    %c0_i32_0 = arith.constant 0 : i32
    %c0_i32_1 = arith.constant 0 : i32
    return %c0_i32, %c0_i32_0 : i32, i32
  }
  func.func @transform_2(%arg0: i32) -> (i32, i32, i32) {
    %c0_i32 = arith.constant 0 : i32
    %c0_i32_0 = arith.constant 0 : i32
    %c0_i32_1 = arith.constant 0 : i32
    %c0_i32_2 = arith.constant 0 : i32
    return %c0_i32, %c0_i32_0, %c0_i32_1 : i32, i32, i32
  }
  func.func @transform_3(%arg0: i32) -> (i32, i32) {
    %c0_i32 = arith.constant 0 : i32
    %c0_i32_0 = arith.constant 0 : i32
    %c0_i32_1 = arith.constant 0 : i32
    return %c0_i32, %c0_i32_0 : i32, i32
  }
  func.func @transform_4(%arg0: i32) -> (i32, i32, i32) {
    %c0_i32 = arith.constant 0 : i32
    %c0_i32_0 = arith.constant 0 : i32
    %c0_i32_1 = arith.constant 0 : i32
    %c0_i32_2 = arith.constant 0 : i32
    return %c0_i32, %c0_i32_0, %c0_i32_1 : i32, i32, i32
  }
  func.func @transform_5(%arg0: i32) -> (i32, i32) {
    %c0_i32 = arith.constant 0 : i32
    %c0_i32_0 = arith.constant 0 : i32
    %c0_i32_1 = arith.constant 0 : i32
    return %c0_i32, %c0_i32_0 : i32, i32
  }
  func.func @transform_6(%arg0: i32) -> (i32, i32, i32) {
    %c0_i32 = arith.constant 0 : i32
    %c0_i32_0 = arith.constant 0 : i32
    %c0_i32_1 = arith.constant 0 : i32
    %c0_i32_2 = arith.constant 0 : i32
    return %c0_i32, %c0_i32_0, %c0_i32_1 : i32, i32, i32
  }
  func.func @transform_7(%arg0: i32) -> (i32, i32) {
    %c0_i32 = arith.constant 0 : i32
    %c0_i32_0 = arith.constant 0 : i32
    %c0_i32_1 = arith.constant 0 : i32
    return %c0_i32, %c0_i32_0 : i32, i32
  }
  func.func @transform_8(%arg0: i32) -> (i32, i32, i32) {
    %c0_i32 = arith.constant 0 : i32
    %c0_i32_0 = arith.constant 0 : i32
    %c0_i32_1 = arith.constant 0 : i32
    %c0_i32_2 = arith.constant 0 : i32
    return %c0_i32, %c0_i32_0, %c0_i32_1 : i32, i32, i32
  }
  func.func @transform_9(%arg0: i32) -> (i32, i32) {
    %c0_i32 = arith.constant 0 : i32
    %c0_i32_0 = arith.constant 0 : i32
    %c0_i32_1 = arith.constant 0 : i32
    return %c0_i32, %c0_i32_0 : i32, i32
  }
  func.func @transform_10(%arg0: i32) -> (i32, i32, i32) {
    %c0_i32 = arith.constant 0 : i32
    %c0_i32_0 = arith.constant 0 : i32
    %c0_i32_1 = arith.constant 0 : i32
    %c0_i32_2 = arith.constant 0 : i32
    return %c0_i32, %c0_i32_0, %c0_i32_1 : i32, i32, i32
  }
  func.func @transform_11(%arg0: i32) -> (i32, i32) {
    %c0_i32 = arith.constant 0 : i32
    %c0_i32_0 = arith.constant 0 : i32
    %c0_i32_1 = arith.constant 0 : i32
    return %c0_i32, %c0_i32_0 : i32, i32
  }
  func.func @transform_12(%arg0: i32) -> (i32, i32, i32) {
    %c0_i32 = arith.constant 0 : i32
    %c0_i32_0 = arith.constant 0 : i32
    %c0_i32_1 = arith.constant 0 : i32
    %c0_i32_2 = arith.constant 0 : i32
    return %c0_i32, %c0_i32_0, %c0_i32_1 : i32, i32, i32
  }
  func.func @transform_13(%arg0: i32) -> (i32, i32) {
    %c0_i32 = arith.constant 0 : i32
    %c0_i32_0 = arith.constant 0 : i32
    %c0_i32_1 = arith.constant 0 : i32
    return %c0_i32, %c0_i32_0 : i32, i32
  }
  func.func @transform_14(%arg0: i32) -> (i32, i32, i32) {
    %c0_i32 = arith.constant 0 : i32
    %c0_i32_0 = arith.constant 0 : i32
    %c0_i32_1 = arith.constant 0 : i32
    %c0_i32_2 = arith.constant 0 : i32
    return %c0_i32, %c0_i32_0, %c0_i32_1 : i32, i32, i32
  }
  func.func @transform_15(%arg0: i32) -> (i32, i32) {
    %c0_i32 = arith.constant 0 : i32
    %c0_i32_0 = arith.constant 0 : i32
    return %arg0, %c0_i32 : i32, i32
  }
}

</mosaic_0001>

<bundles_post_ra>
// kernel: hybrid_ert_quantum_cnn_forward.1
= control target key start
LH: loop header
LB: loop body
LE: loop exit
PB: predicated region body
PF: predicated region fallthrough
CT: control target
= control target key end

     0   :  { %vm68_vm0 = vcmask 64512   ;;  %v6387_v17 = vmov 0   ;;  %vm461_vm1 = vcmask 1041408   ;;  %vm462_vm2 = vsmask.f32 1280  ;;  %s6390_s17 = smov 96   ;;  %s8495_s1 = inlined_call_operand.vmem [shape: f32[8,64], index: 1, kind: input, shape index: {}]   ;;  %s8496_s0 = inlined_call_operand.vmem [shape: f32[8,16,8], index: 0, kind: input, shape index: {}]   ;;  %s8497_s3 = inlined_call_operand.vmem [shape: bf16[448,32], index: 3, kind: input, shape index: {}]   ;;  %s8498_s2 = inlined_call_operand.vmem [shape: f32[1,1,64], index: 2, kind: input, shape index: {}]   ;;  %s8499_s4 = inlined_call_operand.vmem [shape: f32[1,1,32], index: 4, kind: input, shape index: {}]   ;;  %s8500_s5 = inlined_call_operand.vmem [shape: bf16[224,64], index: 5, kind: input, shape index: {}]   ;;  %s8501_s7 = inlined_call_operand.vmem [shape: bf16[192,128], index: 7, kind: input, shape index: {}]   ;;  %s8502_s6 = inlined_call_operand.vmem [shape: f32[1,1,64], index: 6, kind: input, shape index: {}]   ;;  %s8503_s9 = inlined_call_operand.vmem [shape: bf16[384,128], index: 9, kind: input, shape index: {}]   ;;  %s8504_s8 = inlined_call_operand.vmem [shape: f32[1,1,128], index: 8, kind: input, shape index: {}]   ;;  %s8505_s11 = inlined_call_operand.vmem [shape: bf16[384,128], index: 11, kind: input, shape index: {}]   ;;  %s8506_s10 = inlined_call_operand.vmem [shape: f32[1,1,128], index: 10, kind: input, shape index: {}]   ;;  %s8507_s13 = inlined_call_operand.vmem [shape: bf16[384,128], index: 13, kind: input, shape index: {}]   ;;  %s8508_s12 = inlined_call_operand.vmem [shape: f32[1,1,128], index: 12, kind: input, shape index: {}]   ;;  %s8509_s14 = inlined_call_operand.vmem [shape: f32[1,1,128], index: 14, kind: input, shape index: {}]   ;;  %s8510_s15 = inlined_call_operand.vmem [shape: f32[8,128], index: 15, kind: output, shape index: {}]  }
   0x1   :  { %v67_v0 = vld [vmem:[%s8495_s1] sm:$0xff]  ;;  %v52_v2 = vld [vmem:[%s8496_s0 + $0x8] sm:$0xff]  ;;  %v53_v3 = vld [vmem:[%s8496_s0 + $0x10] sm:$0xff]  ;;  %vm821_vm4 = vcmask 1044480   ;;  %vm846_vm5 = vcmask 523264   ;;  %vm723_vm9 = vcmask 1045504  }
   0x2   :  { %v51_v1 = vld [vmem:[%s8496_s0] sm:$0xff]  ;;  %5687 = vmatprep.subr.mxu0 %v67_v0  ;;  %v54_v4 = vld [vmem:[%s8496_s0 + $0x18] sm:$0xff]  ;;  %v56_v6 = vld [vmem:[%s8496_s0 + $0x28] sm:$0xff]  ;;  %vm748_vm6 = vsmask.f32 5376  ;;  %vm609_vm10 = vcmask 1046528  }
   0x3   :  { %5689 = vmatprep.mubr.msk.f32.mxu0 %vm68_vm0, %v51_v1  ;;  %5688 = vmatpush3.msra.mxu0 %v67_v0  ;;  %v55_v5 = vld [vmem:[%s8496_s0 + $0x20] sm:$0xff]  ;;  %v57_v7 = vld [vmem:[%s8496_s0 + $0x30] sm:$0xff]  ;;  %v58_v8 = vld [vmem:[%s8496_s0 + $0x38] sm:$0xff]  ;;  %vm634_vm7 = vsmask.f32 6400  ;;  %vm1984_vm11 = vcmask 261120  }
   0x4   :  { %5690 = vmatmul.mubr.msk.f32.vlgmr.msra.gmra.mrb[0].mxu0 %vm68_vm0, %v52_v2  ;;  %v59_v9 = vld [vmem:[%s8496_s0 + $0x40] sm:$0xff]  ;;  %v60_v10 = vld [vmem:[%s8496_s0 + $0x48] sm:$0xff]  ;;  %v61_v11 = vld [vmem:[%s8496_s0 + $0x50] sm:$0xff]  ;;  %1280 = vmatprep.subr.bf16.mxu0 %v6387_v17  ;;  %vm480_vm8 = vsmask.f32 7424  ;;  %vm2017_vm12 = vcmask 785408  }
   0x5   :  { %5692 = vmatprep.mubr.msk.f32.mxu0 %vm68_vm0, %v53_v3  ;;  %v62_v12 = vld [vmem:[%s8496_s0 + $0x58] sm:$0xff]  ;;  %v63_v13 = vld [vmem:[%s8496_s0 + $0x60] sm:$0xff]  ;;  %v64_v14 = vld [vmem:[%s8496_s0 + $0x68] sm:$0xff]  ;;  %vm2450_vm13 = vcmask 1040384   ;;  %vm3021_vm14 = vcmask 1043456  }
   0x6   :  { %v65_v15 = vld [vmem:[%s8496_s0 + $0x70] sm:$0xff]  ;;  %v66_v16 = vld [vmem:[%s8496_s0 + $0x78] sm:$0xff]  ;;  %v5813_v18 = vld [vmem:[%s8497_s3 + $0x80] sm:$0xff]  }
   0x7   :  { %1281 = vmatpush1.bf16.msra.mxu0 %v5813_v18  ;;  %v5814_v19 = vld [vmem:[%s8497_s3 + $0x88] sm:$0xff]   ;;  %v5815_v20 = vld [vmem:[%s8497_s3 + $0x90] sm:$0xff]   ;;  %v5818_v21 = vld [vmem:[%s8497_s3 + $0x40] sm:$0xff]  }
   0x8   :  { %5693 = vmatmul.mubr.msk.f32.gmra.mrb[2].mxu0 %vm68_vm0, %v54_v4  ;;  %1282 = vmatprep.subr.bf16.mxu0 %v6387_v17  ;;  %v5819_v22 = vld [vmem:[%s8497_s3] sm:$0xff]   ;;  %v5821_v23 = vld [vmem:[%s8497_s3 + $0x48] sm:$0xff]   ;;  %v5816_v26 = vld [vmem:[%s8497_s3 + $0x98] sm:$0xff]  }
   0x9   :  { %5695 = vmatprep.mubr.msk.f32.mxu0 %vm68_vm0, %v55_v5  ;;  %5383 = vmatprep.subr.bf16.mxu1 %v5818_v21  ;;  %v6562_v24 = vld [vmem:[%s8498_s2] ss:$0 sm:$0xff]  ;;  %v5822_v25 = vld [vmem:[%s8497_s3 + $0x8] sm:$0xff]   ;;  %v5824_v27 = vld [vmem:[%s8497_s3 + $0x50] sm:$0xff]  }
   0xa   :  { %5384 = vmatpush3.bf16.msra.mxu1 %v5819_v22  ;;  %v5825_v28 = vld [vmem:[%s8497_s3 + $0x10] sm:$0xff]   ;;  %v5817_v30 = vld [vmem:[%s8497_s3 + $0xa0] sm:$0xff]   ;;  %v5827_v33 = vld [vmem:[%s8497_s3 + $0x58] sm:$0xff]  }
   0xb   :  { %1283 = vmatpush1.bf16.msra.mxu0 %v5814_v19  ;;  %5385 = vmatprep.subr.bf16.mxu1 %v5821_v23  ;;  %v5820_v36 = vld [vmem:[%s8497_s3 + $0xa8] sm:$0xff]   ;;  %v5828_v37 = vld [vmem:[%s8497_s3 + $0x18] sm:$0xff]   ;;  %v5830_v43 = vld [vmem:[%s8497_s3 + $0x60] sm:$0xff]  }
   0xc   :  { %5696 = vmatmul.mubr.msk.f32.gmra.mrb[4].mxu0 %vm68_vm0, %v56_v6  ;;  %1284 = vmatprep.subr.bf16.mxu0 %v6387_v17  ;;  %v5831_v46 = vld [vmem:[%s8497_s3 + $0x20] sm:$0xff]   ;;  %v5833_v48 = vld [vmem:[%s8497_s3 + $0x68] sm:$0xff]   ;;  %v5823_v54 = vld [vmem:[%s8497_s3 + $0xb0] sm:$0xff]  }
   0xd   :  { %5698 = vmatprep.mubr.msk.f32.mxu0 %vm68_vm0, %v57_v7  ;;  %v5834_v58 = vld [vmem:[%s8497_s3 + $0x28] sm:$0xff]   ;;  %v5836_v61 = vld [vmem:[%s8497_s3 + $0x70] sm:$0xff]   ;;  %v5826_v1 = vld [vmem:[%s8497_s3 + $0xb8] sm:$0xff]  }
   0xe   :  { %5386 = vmatpush3.bf16.msra.mxu1 %v5822_v25  ;;  %v5837_v5 = vld [vmem:[%s8497_s3 + $0x30] sm:$0xff]   ;;  %vm6716_vm3 = vmand %vm461_vm1, %vm462_vm2  ;;  %vm5157_vm2 = vcmask 1041409  }
   0xf   :  { %1285 = vmatpush1.bf16.msra.mxu0 %v5815_v20  ;;  %5387 = vmatprep.subr.bf16.mxu1 %v5824_v27  ;;  %v5832_v27 = vld [vmem:[%s8497_s3 + $0xc8] sm:$0xff]   ;;  %vm7819_vm15 = vmneg %vm461_vm1 }
  0x10   :  { %5699 = vmatmul.mubr.msk.f32.gmra.mrb[6].mxu0 %vm68_vm0, %v58_v8  ;;  %1286 = vmatprep.subr.bf16.mxu0 %v6387_v17 }
  0x11   :  { %5701 = vmatprep.mubr.msk.f32.mxu0 %vm68_vm0, %v59_v9 }
  0x12   :  { %5388 = vmatpush3.bf16.msra.mxu1 %v5825_v28 }
  0x13   :  { %1287 = vmatpush1.bf16.msra.mxu0 %v5816_v26  ;;  %5389 = vmatprep.subr.bf16.mxu1 %v5827_v33 }
  0x14   :  { %5702 = vmatmul.mubr.msk.f32.gmra.mrb[8].mxu0 %vm68_vm0, %v60_v10  ;;  %1288 = vmatprep.subr.bf16.mxu0 %v6387_v17 }
  0x15   :  { %5704 = vmatprep.mubr.msk.f32.mxu0 %vm68_vm0, %v61_v11 }
  0x16   :  { %5390 = vmatpush3.bf16.msra.mxu1 %v5828_v37 }
  0x17   :  { %1289 = vmatpush1.bf16.msra.mxu0 %v5817_v30  ;;  %5391 = vmatprep.subr.bf16.mxu1 %v5830_v43  ;;  %v5835_v43 = vld [vmem:[%s8497_s3 + $0xd0] sm:$0xff]  }
  0x18   :  { %5705 = vmatmul.mubr.msk.f32.gmra.mrb[10].mxu0 %vm68_vm0, %v62_v12  ;;  %1290 = vmatprep.subr.bf16.mxu0 %v6387_v17  ;;  %v5829_v12 = vld [vmem:[%s8497_s3 + $0xc0] sm:$0xff]  }
  0x19   :  { %5707 = vmatprep.mubr.msk.f32.mxu0 %vm68_vm0, %v63_v13 }
  0x1a   :  { %5392 = vmatpush3.bf16.msra.mxu1 %v5831_v46 }
  0x1b   :  { %1291 = vmatpush1.bf16.msra.mxu0 %v5820_v36  ;;  %5393 = vmatprep.subr.bf16.mxu1 %v5833_v48 }
  0x1c   :  { %5708 = vmatmul.mubr.msk.f32.gmra.mrb[12].mxu0 %vm68_vm0, %v64_v14  ;;  %1292 = vmatprep.subr.bf16.mxu0 %v6387_v17 }
  0x1d   :  { %5710 = vmatprep.mubr.msk.f32.mxu0 %vm68_vm0, %v65_v15 }
  0x1e   :  { %5394 = vmatpush3.bf16.msra.mxu1 %v5834_v58 }
  0x1f   :  { %1293 = vmatpush1.bf16.msra.mxu0 %v5823_v54  ;;  %5395 = vmatprep.subr.bf16.mxu1 %v5836_v61 }
  0x20   :  { %5711 = vmatmul.mubr.msk.f32.gmra.mrb[14].mxu0 %vm68_vm0, %v66_v16  ;;  %1294 = vmatprep.subr.bf16.mxu0 %v6387_v17  ;;  %vm3640_vm0 = vsmask.f32 256 }
  0x22   :  { %5396 = vmatpush3.bf16.msra.mxu1 %v5837_v5 }
  0x23   :  { %1295 = vmatpush1.bf16.msra.mxu0 %v5826_v1 }
  0x24   :  { %1296 = vmatprep.subr.bf16.mxu0 %v6387_v17 }
  0x27   :  { %1297 = vmatpush1.bf16.msra.mxu0 %v5829_v12 }
  0x28   :  { %1298 = vmatprep.subr.bf16.mxu0 %v6387_v17 }
  0x2b   :  { %1299 = vmatpush1.bf16.msra.mxu0 %v5832_v27 }
  0x2c   :  { %1300 = vmatprep.subr.bf16.mxu0 %v6387_v17 }
  0x2f   :  { %1301 = vmatpush1.bf16.msra.mxu0 %v5835_v43 }
  0x30   :  { %1302 = vmatprep.subr.bf16.mxu0 %v6387_v17 }
  0xd7   :  { %v5691_v29 = vpop.f32.mrb[0].mxu0 }
  0xd8   :  { %v6581_v31 = vadd.f32 %v5691_v29, %v6562_v24  ;;  %v183_v32 = vpop.f32.mrb[1].mxu0 }
  0xd9   :  { %v6587_v34 = vadd.f32 %v6562_v24, %v183_v32 }
  0xda   :  { %v286_v35 = vsub.f32 0.0, %v6581_v31 }
  0xdb   :  { %v285_v38 = vsub.f32 0.0, %v6587_v34  ;;  %v5694_v39 = vpop.f32.mrb[2].mxu0 }
  0xdc   :  { %v303_v40 = vmul.f32 1.442695, %v286_v35  ;;  %v6599_v41 = vadd.f32 %v5694_v39, %v6562_v24  ;;  %v193_v42 = vpop.f32.mrb[3].mxu0 }
  0xdd   :  { %v301_v44 = vmul.f32 1.442695, %v285_v38  ;;  %v6605_v45 = vadd.f32 %v6562_v24, %v193_v42 }
  0xde   :  { %5939 = vpow2.f32 %v303_v40  ;;  %v288_v47 = vsub.f32 0.0, %v6599_v41 }
  0xdf   :  { %5941 = vpow2.f32 %v301_v44  ;;  %v287_v49 = vsub.f32 0.0, %v6605_v45  ;;  %v5697_v50 = vpop.f32.mrb[4].mxu0 }
  0xe0   :  { %v307_v51 = vmul.f32 1.442695, %v288_v47  ;;  %v6617_v52 = vadd.f32 %v5697_v50, %v6562_v24  ;;  %v203_v53 = vpop.f32.mrb[5].mxu0 }
  0xe1   :  { %v305_v55 = vmul.f32 1.442695, %v287_v49  ;;  %v6623_v56 = vadd.f32 %v6562_v24, %v203_v53 }
  0xe2   :  { %5943 = vpow2.f32 %v307_v51  ;;  %v290_v57 = vsub.f32 0.0, %v6617_v52 }
  0xe3   :  { %5945 = vpow2.f32 %v305_v55  ;;  %v289_v59 = vsub.f32 0.0, %v6623_v56  ;;  %v5700_v60 = vpop.f32.mrb[6].mxu0 }
  0xe4   :  { %v311_v62 = vmul.f32 1.442695, %v290_v57  ;;  %v6635_v63 = vadd.f32 %v5700_v60, %v6562_v24  ;;  %v213_v0 = vpop.f32.mrb[7].mxu0 }
  0xe5   :  { %v309_v2 = vmul.f32 1.442695, %v289_v59  ;;  %v6641_v3 = vadd.f32 %v6562_v24, %v213_v0  ;;  %v5838_v59 = vld [vmem:[%s8497_s3 + $0xd8] sm:$0xff]  }
  0xe6   :  { %5947 = vpow2.f32 %v311_v62  ;;  %v292_v4 = vsub.f32 0.0, %v6635_v63  ;;  %1303 = vmatpush1.bf16.msra.mxu0 %v5838_v59 }
  0xe7   :  { %5949 = vpow2.f32 %v309_v2  ;;  %v291_v6 = vsub.f32 0.0, %v6641_v3  ;;  %v5703_v7 = vpop.f32.mrb[8].mxu0  ;;  %2700 = vmatprep.subr.bf16.mxu0 %v6387_v17 }
  0xe8   :  { %v5940_v8 = vpop.eup %5939  ;;  %v315_v9 = vmul.f32 1.442695, %v292_v4  ;;  %v6650_v10 = vadd.f32 %v5703_v7, %v6562_v24  ;;  %v223_v11 = vpop.f32.mrb[9].mxu0 }
  0xe9   :  { %v5942_v13 = vpop.eup %5941  ;;  %v334_v14 = vadd.f32 1.0, %v5940_v8  ;;  %v313_v15 = vmul.f32 1.442695, %v291_v6  ;;  %v6656_v16 = vadd.f32 %v6562_v24, %v223_v11 }
  0xea   :  { %v333_v18 = vadd.f32 1.0, %v5942_v13  ;;  %5951 = vpow2.f32 %v315_v9  ;;  %v294_v19 = vsub.f32 0.0, %v6650_v10 }
  0xeb   :  { %5953 = vrcp.f32 %v334_v14  ;;  %v293_v20 = vsub.f32 0.0, %v6656_v16  ;;  %v5706_v21 = vpop.f32.mrb[10].mxu0 }
  0xec   :  { %v5944_v22 = vpop.eup %5943  ;;  %5955 = vrcp.f32 %v333_v18  ;;  %v319_v23 = vmul.f32 1.442695, %v294_v19  ;;  %v6662_v25 = vadd.f32 %v5706_v21, %v6562_v24  ;;  %v233_v26 = vpop.f32.mrb[11].mxu0 }
  0xed   :  { %v5946_v28 = vpop.eup %5945  ;;  %v336_v29 = vadd.f32 1.0, %v5944_v22  ;;  %5957 = vpow2.f32 %v313_v15  ;;  %v317_v30 = vmul.f32 1.442695, %v293_v20  ;;  %v6668_v32 = vadd.f32 %v6562_v24, %v233_v26 }
  0xee   :  { %v335_v33 = vadd.f32 1.0, %v5946_v28  ;;  %5959 = vpow2.f32 %v319_v23  ;;  %v296_v35 = vsub.f32 0.0, %v6662_v25 }
  0xef   :  { %5961 = vrcp.f32 %v336_v29  ;;  %v295_v36 = vsub.f32 0.0, %v6668_v32  ;;  %v5709_v37 = vpop.f32.mrb[12].mxu0 }
  0xf0   :  { %v5948_v38 = vpop.eup %5947  ;;  %5963 = vrcp.f32 %v335_v33  ;;  %v323_v39 = vmul.f32 1.442695, %v296_v35  ;;  %v6674_v40 = vadd.f32 %v5709_v37, %v6562_v24  ;;  %v243_v42 = vpop.f32.mrb[13].mxu0 }
  0xf1   :  { %v5950_v44 = vpop.eup %5949  ;;  %v338_v46 = vadd.f32 1.0, %v5948_v38  ;;  %5965 = vpow2.f32 %v317_v30  ;;  %v321_v47 = vmul.f32 1.442695, %v295_v36  ;;  %v6680_v48 = vadd.f32 %v6562_v24, %v243_v42 }
  0xf2   :  { %v337_v49 = vadd.f32 1.0, %v5950_v44  ;;  %5967 = vpow2.f32 %v323_v39  ;;  %v298_v50 = vsub.f32 0.0, %v6674_v40 }
  0xf3   :  { %5969 = vrcp.f32 %v338_v46  ;;  %v297_v51 = vsub.f32 0.0, %v6680_v48  ;;  %v5712_v53 = vpop.f32.mrb[14].mxu0 }
  0xf4   :  { %v5952_v54 = vpop.eup %5951  ;;  %5971 = vrcp.f32 %v337_v49  ;;  %v327_v55 = vmul.f32 1.442695, %v298_v50  ;;  %v6686_v57 = vadd.f32 %v5712_v53, %v6562_v24  ;;  %v253_v58 = vpop.f32.mrb[15].mxu0 }
  0xf5   :  { %v5954_v60 = vpop.eup %5953  ;;  %v340_v61 = vadd.f32 1.0, %v5952_v54  ;;  %5973 = vpow2.f32 %v321_v47  ;;  %v325_v62 = vmul.f32 1.442695, %v297_v51  ;;  %v6697_v4 = vadd.f32 %v6562_v24, %v253_v58 }
  0xf6   :  { %v5956_v0 = vpop.eup %5955  ;;  %v6693_v1 = vmul.f32 %v5954_v60, %v6581_v31  ;;  %5975 = vpow2.f32 %v327_v55  ;;  %v300_v2 = vsub.f32 0.0, %v6686_v57 }
  0xf7   :  { %v5958_v5 = vpop.eup %5957  ;;  %v6700_v6 = vmul.f32 %v5956_v0, %v6587_v34  ;;  %5977 = vrcp.f32 %v340_v61  ;;  %v299_v34 = vsub.f32 0.0, %v6697_v4 }
  0xf8   :  { %v5960_v7 = vpop.eup %5959  ;;  %v339_v8 = vadd.f32 1.0, %v5958_v5  ;;  %5979 = vpow2.f32 %v325_v62  ;;  %v331_v9 = vmul.f32 1.442695, %v300_v2 }
  0xf9   :  { %v5962_v11 = vpop.eup %5961  ;;  %v381_v31 = vpack.c.bf16 %v6693_v1, %v6700_v6  ;;  %v342_v12 = vadd.f32 1.0, %v5960_v7  ;;  %v329_v30 = vmul.f32 1.442695, %v299_v34 }
  0xfa   :  { %v5964_v24 = vpop.eup %5963  ;;  %v6706_v13 = vmul.f32 %v5962_v11, %v6599_v41  ;;  %5981 = vrcp.f32 %v339_v8 }
  0xfb   :  { %v5966_v14 = vpop.eup %5965  ;;  %v390_v15 = vshrl.u32 %v381_v31, 16  ;;  %v393_v18 = vshll.u32 %v381_v31, 16  ;;  %v6710_v19 = vmul.f32 %v5964_v24, %v6605_v45  ;;  %5983 = vrcp.f32 %v342_v12 }
  0xfc   :  { %v5968_v20 = vpop.eup %5967  ;;  %v341_v21 = vadd.f32 1.0, %v5966_v14  ;;  %5985 = vpow2.f32 %v331_v9 }
  0xfd   :  { %v5970_v22 = vpop.eup %5969  ;;  %v392_v23 = vrot.slane %v390_v15, 6  ;;  %v395_v26 = vrot.slane %v393_v18, 7  ;;  %v382_v41 = vpack.c.bf16 %v6706_v13, %v6710_v19  ;;  %v344_v27 = vadd.f32 1.0, %v5968_v20  ;;  %v5839_v15 = vld [vmem:[%s8497_s3 + $0x78] sm:$0xff]  }
  0xfe   :  { %v5972_v28 = vpop.eup %5971  ;;  %v6721_v45 = vmul.f32 %v5970_v22, %v6617_v52  ;;  %5987 = vrcp.f32 %v341_v21  ;;  %5397 = vmatprep.subr.bf16.mxu1 %v5839_v15 }
  0xff   :  { %v5974_v33 = vpop.eup %5973  ;;  %v396_v35 = vor.u32 %v395_v26, %v392_v23  ;;  %v398_v36 = vshrl.u32 %v382_v41, 16  ;;  %v401_v37 = vshll.u32 %v382_v41, 16  ;;  %v6724_v38 = vmul.f32 %v5972_v28, %v6623_v56  ;;  %v5840_v28 = vld [vmem:[%s8497_s3 + $0x38] sm:$0xff]   ;;  %s6388_s3 = smov 64  }
 0x100   :  { %v5976_v39 = vpop.eup %5975  ;;  %5989 = vrcp.f32 %v344_v27  ;;  %v343_v42 = vadd.f32 1.0, %v5974_v33  ;;  %5398 = vmatpush3.bf16.msra.mxu1 %v5840_v28 }
 0x101   :  { %v5978_v43 = vpop.eup %5977  ;;  %v6728_v44 = vsel %vm6716_vm3, 0, %v396_v35  ;;  %v6732_v52 = vsel %vm6716_vm3, %v396_v35, 0  ;;  %v400_v46 = vrot.slane %v398_v36, 6  ;;  %v403_v47 = vrot.slane %v401_v37, 7  ;;  %2210 = vmatprep.subr.bf16.mxu1 %v6387_v17 }
 0x102   :  { %v5980_v49 = vpop.eup %5979  ;;  %v383_v56 = vpack.c.bf16 %v6721_v45, %v6724_v38  ;;  %v6737_v50 = vmul.f32 %v5978_v43, %v6635_v63  ;;  %5991 = vrcp.f32 %v343_v42  ;;  %v346_v51 = vadd.f32 1.0, %v5976_v39 }
 0x103   :  { %v404_v53 = vor.u32 %v403_v47, %v400_v46  ;;  %v345_v54 = vadd.f32 1.0, %v5980_v49  ;;  %5993 = vpow2.f32 %v329_v30  ;;  %v822_v55 = vrot.slane %v6728_v44, 3 }
 0x104   :  { %v5982_v58 = vpop.eup %5981  ;;  %v406_v59 = vshrl.u32 %v383_v56, 16  ;;  %v409_v60 = vshll.u32 %v383_v56, 16  ;;  %5995 = vrcp.f32 %v346_v51  ;;  %v823_v61 = vrot.slane %v6732_v52, 3 }
 0x105   :  { %v5984_v62 = vpop.eup %5983  ;;  %v6743_v0 = vsel %vm6716_vm3, 0, %v404_v53  ;;  %v6746_v63 = vmul.f32 %v5982_v58, %v6641_v3  ;;  %5997 = vrcp.f32 %v345_v54  ;;  %v6756_v12 = vshrl.u32 %v6728_v44, 16 }
 0x106   :  { %v5986_v2 = vpop.eup %5985  ;;  %v408_v5 = vrot.slane %v406_v59, 6  ;;  %v411_v7 = vrot.slane %v409_v60, 7  ;;  %v6749_v8 = vmul.f32 %v5984_v62, %v6650_v10  ;;  %v824_v9 = vsel %vm821_vm4, %v822_v55, %v823_v61 }
 0x107   :  { %v384_v11 = vpack.c.bf16 %v6737_v50, %v6746_v63  ;;  %v348_v31 = vadd.f32 1.0, %v5986_v2  ;;  %5222 = vmatprep.mubr.msk.bf16.mxu0 %vm846_vm5, %v824_v9  ;;  %v6759_v3 = vshll.u32 %v6728_v44, 16  ;;  %v6762_v14 = vshll.u32 %v6732_v52, 16 }
 0x108   :  { %v5988_v24 = vpop.eup %5987  ;;  %v412_v34 = vor.u32 %v411_v7, %v408_v5  ;;  %v638_v10 = vshrl.u32 %v6732_v52, 16  ;;  %v6770_v18 = vsel %vm6716_vm3, %v404_v53, 0  ;;  %v749_v26 = vrot.slane %v6756_v12, 2 }
 0x109   :  { %v414_v20 = vshrl.u32 %v384_v11, 16  ;;  %v417_v21 = vshll.u32 %v384_v11, 16  ;;  %v6773_v22 = vmul.f32 %v5988_v24, %v6656_v16  ;;  %5999 = vrcp.f32 %v348_v31 }
 0x10a   :  { %v5990_v23 = vpop.eup %5989  ;;  %v750_v41 = vrot.slane %v6759_v3, 3  ;;  %v6778_v27 = vshrl.u32 %v6743_v0, 16  ;;  %v6785_v30 = vsel %vm6716_vm3, 0, %v412_v34  ;;  %v752_v42 = vrot.slane %v638_v10, 2 }
 0x10b   :  { %v416_v16 = vrot.slane %v414_v20, 6  ;;  %v419_v33 = vrot.slane %v417_v21, 7  ;;  %v385_v35 = vpack.c.bf16 %v6749_v8, %v6773_v22  ;;  %v6790_v37 = vmul.f32 %v5990_v23, %v6662_v25 }
 0x10c   :  { %v5992_v36 = vpop.eup %5991  ;;  %v751_v39 = vor.u32 %v750_v41, %v749_v26  ;;  %v753_v43 = vrot.slane %v6762_v14, 3  ;;  %v635_v51 = vrot.slane %v6756_v12, 1  ;;  %v6800_v25 = vsel %vm6716_vm3, %v412_v34, 0 }
 0x10d   :  { %v5994_v46 = vpop.eup %5993  ;;  %v422_v47 = vshrl.u32 %v385_v35, 16  ;;  %v425_v49 = vshll.u32 %v385_v35, 16  ;;  %v6794_v56 = vmul.f32 %v5992_v36, %v6668_v32  ;;  %v636_v58 = vrot.slane %v6759_v3, 2 }
 0x10e   :  { %v5996_v53 = vpop.eup %5995  ;;  %v347_v54 = vadd.f32 1.0, %v5994_v46  ;;  %v754_v55 = vor.u32 %v753_v43, %v752_v42  ;;  %v420_v60 = vor.u32 %v419_v33, %v416_v16  ;;  %v640_v32 = vrot.slane %v638_v10, 1 }
 0x10f   :  { %v5998_v59 = vpop.eup %5997  ;;  %v424_v61 = vrot.slane %v422_v47, 6  ;;  %v427_v62 = vrot.slane %v425_v49, 7  ;;  %v386_v2 = vpack.c.bf16 %v6790_v37, %v6794_v56  ;;  %v6806_v5 = vmul.f32 %v5996_v53, %v6674_v40 }
 0x110   :  { %v6809_v7 = vmul.f32 %v5998_v59, %v6680_v48  ;;  %6001 = vrcp.f32 %v347_v54  ;;  %v755_v11 = vsel %vm748_vm6, %v751_v39, %v754_v55  ;;  %v637_v31 = vor.u32 %v636_v58, %v635_v51 }
 0x111   :  { %v428_v9 = vor.u32 %v427_v62, %v424_v61  ;;  %v641_v24 = vrot.slane %v6762_v14, 2  ;;  %v430_v34 = vshrl.u32 %v386_v2, 16  ;;  %v433_v15 = vshll.u32 %v386_v2, 16  ;;  %805 = vrot.lane.b32.xlu1 %v755_v11, %s6388_s3 }
 0x112   :  { %v387_v10 = vpack.c.bf16 %v6806_v5, %v6809_v7  ;;  %v486_v40 = vrot.slane %v6759_v3, 1  ;;  %v6819_v48 = vsel %vm6716_vm3, 0, %v420_v60  ;;  %v6823_v20 = vsel %vm6716_vm3, %v420_v60, 0 }
 0x113   :  { %v6827_v21 = vsel %vm6716_vm3, 0, %v428_v9  ;;  %v642_v23 = vor.u32 %v641_v24, %v640_v32  ;;  %v6000_v26 = vpop.eup %5999  ;;  %v432_v41 = vrot.slane %v430_v34, 6  ;;  %v435_v28 = vrot.slane %v433_v15, 7 }
 0x114   :  { %v438_v16 = vshrl.u32 %v387_v10, 16  ;;  %v441_v33 = vshll.u32 %v387_v10, 16  ;;  %v487_v35 = vor.u32 %v486_v40, %v6756_v12  ;;  %v491_v36 = vrot.slane %v6762_v14, 1 }
 0x115   :  { %v643_v3 = vsel %vm634_vm7, %v637_v31, %v642_v23  ;;  %v496_v39 = vshll.u32 %v6743_v0, 16  ;;  %v436_v42 = vor.u32 %v435_v28, %v432_v41  ;;  %v501_v47 = vshll.u32 %v6770_v18, 16 }
 0x116   :  { %v440_v43 = vrot.slane %v438_v16, 6  ;;  %v443_v46 = vrot.slane %v441_v33, 7  ;;  %707 = vrot.lane.b32.xlu0 %v643_v3, %s6388_s3  ;;  %v6837_v49 = vsel %vm6716_vm3, %v428_v9, 0  ;;  %v644_v51 = vrot.slane %v6778_v27, 1 }
 0x117   :  { %v645_v53 = vrot.slane %v496_v39, 2  ;;  %v647_v12 = vshrl.u32 %v6770_v18, 16  ;;  %v6843_v14 = vsel %vm6716_vm3, 0, %v436_v42  ;;  %v6846_v54 = vmul.f32 %v6000_v26, %v6686_v57 }
 0x118   :  { %v492_v55 = vsel %vm480_vm8, %v487_v35, %v491_v36  ;;  %v650_v58 = vrot.slane %v501_v47, 2  ;;  %v756_v61 = vrot.slane %v6778_v27, 2  ;;  %v757_v62 = vrot.slane %v496_v39, 3 }
 0x119   :  { %v646_v59 = vor.u32 %v645_v53, %v644_v51  ;;  %v649_v60 = vrot.slane %v647_v12, 1  ;;  %v6852_v2 = vsel %vm6716_vm3, %v436_v42, 0  ;;  %v444_v9 = vor.u32 %v443_v46, %v440_v43 }
 0x11a   :  { %v6002_v32 = vpop.eup %6001  ;;  %577 = vrot.lane.b32.xlu0 %v492_v55, %s6388_s3  ;;  %v759_v11 = vrot.slane %v647_v12, 2  ;;  %v760_v31 = vrot.slane %v501_v47, 3  ;;  %v758_v34 = vor.u32 %v757_v62, %v756_v61  ;;  %v498_v15 = vrot.slane %v496_v39, 1 }
 0x11b   :  { %v6856_v57 = vmul.f32 %v6002_v32, %v6697_v4  ;;  %v651_v24 = vor.u32 %v650_v58, %v649_v60  ;;  %v503_v40 = vrot.slane %v501_v47, 1  ;;  %v506_v23 = vshrl.u32 %v6785_v30, 16 }
 0x11c   :  { %v761_v10 = vor.u32 %v760_v31, %v759_v11  ;;  %v508_v26 = vshll.u32 %v6785_v30, 16  ;;  %v499_v16 = vor.u32 %v498_v15, %v6778_v27  ;;  %v513_v33 = vshll.u32 %v6800_v25, 16 }
 0x11d   :  { %v388_v41 = vpack.c.bf16 %v6846_v54, %v6856_v57  ;;  %v652_v28 = vsel %vm634_vm7, %v646_v59, %v651_v24  ;;  %v6867_v4 = vsel %vm6716_vm3, 0, %v444_v9  ;;  %v653_v3 = vrot.slane %v506_v23, 1 }
 0x11e   :  { %709 = vrot.lane.b32.xlu1 %v652_v28, %s6388_s3  ;;  %v654_v35 = vrot.slane %v508_v26, 2  ;;  %v656_v36 = vshrl.u32 %v6800_v25, 16  ;;  %v504_v43 = vsel %vm480_vm8, %v499_v16, %v503_v40  ;;  %v659_v46 = vrot.slane %v513_v33, 2 }
 0x11f   :  { %v446_v39 = vshrl.u32 %v388_v41, 16  ;;  %v449_v42 = vshll.u32 %v388_v41, 16  ;;  %v762_v47 = vsel %vm748_vm6, %v758_v34, %v761_v10  ;;  %579 = vrot.lane.b32.xlu0 %v504_v43, %s6388_s3  ;;  %v510_v53 = vrot.slane %v508_v26, 1 }
 0x120   :  { %v655_v27 = vor.u32 %v654_v35, %v653_v3  ;;  %v658_v51 = vrot.slane %v656_v36, 1  ;;  %v763_v58 = vrot.slane %v506_v23, 2  ;;  %v764_v59 = vrot.slane %v508_v26, 3 }
 0x121   :  { %v448_v12 = vrot.slane %v446_v39, 6  ;;  %v451_v55 = vrot.slane %v449_v42, 7  ;;  %v511_v61 = vor.u32 %v510_v53, %v506_v23  ;;  %v766_v62 = vrot.slane %v656_v36, 2 }
 0x122   :  { %807 = vrot.lane.b32.xlu1 %v762_v47, %s6388_s3  ;;  %v660_v60 = vor.u32 %v659_v46, %v658_v51  ;;  %v767_v32 = vrot.slane %v513_v33, 3  ;;  %v515_v11 = vrot.slane %v513_v33, 1  ;;  %v765_v31 = vor.u32 %v764_v59, %v763_v58 }
 0x123   :  { %v518_v24 = vshrl.u32 %v6819_v48, 16  ;;  %v520_v34 = vshll.u32 %v6819_v48, 16  ;;  %v6879_v15 = vsel %vm6716_vm3, %v444_v9, 0  ;;  %v525_v26 = vshll.u32 %v6823_v20, 16 }
 0x124   :  { %v661_v10 = vsel %vm634_vm7, %v655_v27, %v660_v60  ;;  %v768_v40 = vor.u32 %v767_v32, %v766_v62  ;;  %v452_v41 = vor.u32 %v451_v55, %v448_v12  ;;  %v516_v23 = vsel %vm480_vm8, %v511_v61, %v515_v11 }
 0x125   :  { %711 = vrot.lane.b32.xlu0 %v661_v10, %s6388_s3  ;;  %v662_v28 = vrot.slane %v518_v24, 1  ;;  %v663_v16 = vrot.slane %v520_v34, 2  ;;  %v665_v3 = vshrl.u32 %v6823_v20, 16  ;;  %v668_v9 = vrot.slane %v525_v26, 2 }
 0x126   :  { %581 = vrot.lane.b32.xlu1 %v516_v23, %s6388_s3  ;;  %v769_v33 = vsel %vm748_vm6, %v765_v31, %v768_v40  ;;  %v770_v35 = vrot.slane %v518_v24, 2  ;;  %v771_v39 = vrot.slane %v520_v34, 3  ;;  %v774_v42 = vrot.slane %v525_v26, 3 }
 0x127   :  { %v664_v36 = vor.u32 %v663_v16, %v662_v28  ;;  %v522_v43 = vrot.slane %v520_v34, 1  ;;  %v667_v46 = vrot.slane %v665_v3, 1  ;;  %v773_v47 = vrot.slane %v665_v3, 2 }
 0x128   :  { %v527_v27 = vrot.slane %v525_v26, 1  ;;  %v530_v51 = vshrl.u32 %v6827_v21, 16  ;;  %v772_v53 = vor.u32 %v771_v39, %v770_v35  ;;  %v532_v55 = vshll.u32 %v6827_v21, 16 }
 0x129   :  { %809 = vrot.lane.b32.xlu0 %v769_v33, %s6388_s3  ;;  %v523_v12 = vor.u32 %v522_v43, %v518_v24  ;;  %v537_v58 = vshll.u32 %v6837_v49, 16  ;;  %v669_v59 = vor.u32 %v668_v9, %v667_v46  ;;  %v775_v60 = vor.u32 %v774_v42, %v773_v47 }
 0x12a   :  { %v671_v61 = vrot.slane %v530_v51, 1  ;;  %v674_v62 = vshrl.u32 %v6837_v49, 16  ;;  %v6895_v32 = vsel %vm6716_vm3, 0, %v452_v41  ;;  %v672_v11 = vrot.slane %v532_v55, 2 }
 0x12b   :  { %v677_v31 = vrot.slane %v537_v58, 2  ;;  %v534_v34 = vrot.slane %v532_v55, 1  ;;  %v670_v10 = vsel %vm634_vm7, %v664_v36, %v669_v59  ;;  %v776_v24 = vsel %vm748_vm6, %v772_v53, %v775_v60 }
 0x12c   :  { %v528_v40 = vsel %vm480_vm8, %v523_v12, %v527_v27  ;;  %v676_v26 = vrot.slane %v674_v62, 1  ;;  %713 = vrot.lane.b32.xlu1 %v670_v10, %s6388_s3  ;;  %v673_v23 = vor.u32 %v672_v11, %v671_v61  ;;  %v539_v28 = vrot.slane %v537_v58, 1 }
 0x12d   :  { %583 = vrot.lane.b32.xlu0 %v528_v40, %s6388_s3  ;;  %v777_v16 = vrot.slane %v530_v51, 2  ;;  %v778_v33 = vrot.slane %v532_v55, 3  ;;  %v780_v9 = vrot.slane %v674_v62, 2  ;;  %v781_v35 = vrot.slane %v537_v58, 3 }
 0x12e   :  { %v678_v3 = vor.u32 %v677_v31, %v676_v26  ;;  %v542_v39 = vshrl.u32 %v6843_v14, 16  ;;  %v535_v42 = vor.u32 %v534_v34, %v530_v51  ;;  %v544_v43 = vshll.u32 %v6843_v14, 16 }
 0x12f   :  { %v779_v36 = vor.u32 %v778_v33, %v777_v16  ;;  %v549_v46 = vshll.u32 %v6852_v2, 16  ;;  %v782_v27 = vor.u32 %v781_v35, %v780_v9  ;;  %v683_v12 = vshrl.u32 %v6852_v2, 16 }
 0x130   :  { %v679_v47 = vsel %vm634_vm7, %v673_v23, %v678_v3  ;;  %v680_v53 = vrot.slane %v542_v39, 1  ;;  %811 = vrot.lane.b32.xlu1 %v776_v24, %s6388_s3  ;;  %v681_v55 = vrot.slane %v544_v43, 2  ;;  %v784_v59 = vrot.slane %v542_v39, 2 }
 0x131   :  { %715 = vrot.lane.b32.xlu0 %v679_v47, %s6388_s3  ;;  %v686_v58 = vrot.slane %v549_v46, 2  ;;  %v785_v60 = vrot.slane %v544_v43, 3  ;;  %v6911_v51 = vsel %vm6716_vm3, %v452_v41, 0  ;;  %v685_v61 = vrot.slane %v683_v12, 1 }
 0x132   :  { %v787_v62 = vrot.slane %v683_v12, 2  ;;  %v788_v11 = vrot.slane %v549_v46, 3  ;;  %v540_v31 = vsel %vm480_vm8, %v535_v42, %v539_v28  ;;  %v783_v34 = vsel %vm748_vm6, %v779_v36, %v782_v27 }
 0x133   :  { %v682_v10 = vor.u32 %v681_v55, %v680_v53  ;;  %v546_v40 = vrot.slane %v544_v43, 1  ;;  %v687_v24 = vor.u32 %v686_v58, %v685_v61  ;;  %v551_v26 = vrot.slane %v549_v46, 1 }
 0x134   :  { %v554_v23 = vshrl.u32 %v6867_v4, 16  ;;  %v556_v16 = vshll.u32 %v6867_v4, 16  ;;  %585 = vrot.lane.b32.xlu1 %v540_v31, %s6388_s3  ;;  %v786_v41 = vor.u32 %v785_v60, %v784_v59  ;;  %v561_v3 = vshll.u32 %v6879_v15, 16 }
 0x135   :  { %813 = vrot.lane.b32.xlu0 %v783_v34, %s6388_s3  ;;  %v547_v33 = vor.u32 %v546_v40, %v542_v39  ;;  %v692_v28 = vshrl.u32 %v6879_v15, 16  ;;  %v789_v9 = vor.u32 %v788_v11, %v787_v62  ;;  %v566_v36 = vshrl.u32 %v6895_v32, 16 }
 0x136   :  { %v689_v35 = vrot.slane %v554_v23, 1  ;;  %v690_v42 = vrot.slane %v556_v16, 2  ;;  %v688_v43 = vsel %vm634_vm7, %v682_v10, %v687_v24  ;;  %v695_v47 = vrot.slane %v561_v3, 2 }
 0x137   :  { %v694_v46 = vrot.slane %v692_v28, 1  ;;  %v558_v27 = vrot.slane %v556_v16, 1  ;;  %v552_v53 = vsel %vm480_vm8, %v547_v33, %v551_v26  ;;  %v791_v55 = vrot.slane %v554_v23, 2 }
 0x138   :  { %v691_v12 = vor.u32 %v690_v42, %v689_v35  ;;  %v792_v58 = vrot.slane %v556_v16, 3  ;;  %717 = vrot.lane.b32.xlu1 %v688_v43, %s6388_s3  ;;  %v563_v59 = vrot.slane %v561_v3, 1  ;;  %v794_v60 = vrot.slane %v692_v28, 2 }
 0x139   :  { %587 = vrot.lane.b32.xlu0 %v552_v53, %s6388_s3  ;;  %v696_v39 = vor.u32 %v695_v47, %v694_v46  ;;  %v795_v61 = vrot.slane %v561_v3, 3  ;;  %v559_v62 = vor.u32 %v558_v27, %v554_v23  ;;  %v568_v11 = vshll.u32 %v6895_v32, 16 }
 0x13a   :  { %v573_v31 = vshll.u32 %v6911_v51, 16  ;;  %v698_v34 = vrot.slane %v566_v36, 1  ;;  %v793_v10 = vor.u32 %v792_v58, %v791_v55  ;;  %v701_v24 = vshrl.u32 %v6911_v51, 16 }
 0x13b   :  { %v796_v40 = vor.u32 %v795_v61, %v794_v60  ;;  %v790_v26 = vsel %vm748_vm6, %v786_v41, %v789_v9  ;;  %v697_v16 = vsel %vm634_vm7, %v691_v12, %v696_v39  ;;  %v699_v33 = vrot.slane %v568_v11, 2 }
 0x13c   :  { %v704_v35 = vrot.slane %v573_v31, 2  ;;  %815 = vrot.lane.b32.xlu1 %v790_v26, %s6388_s3  ;;  %v703_v23 = vrot.slane %v701_v24, 1  ;;  %v564_v3 = vsel %vm480_vm8, %v559_v62, %v563_v59  ;;  %v570_v42 = vrot.slane %v568_v11, 1 }
 0x13d   :  { %719 = vrot.lane.b32.xlu0 %v697_v16, %s6388_s3  ;;  %v700_v28 = vor.u32 %v699_v33, %v698_v34  ;;  %v797_v43 = vsel %vm748_vm6, %v793_v10, %v796_v40  ;;  %v798_v47 = vrot.slane %v566_v36, 2  ;;  %v799_v27 = vrot.slane %v568_v11, 3 }
 0x13e   :  { %v705_v46 = vor.u32 %v704_v35, %v703_v23  ;;  %v801_v53 = vrot.slane %v701_v24, 2  ;;  %v802_v41 = vrot.slane %v573_v31, 3  ;;  %v571_v9 = vor.u32 %v570_v42, %v566_v36 }
 0x13f   :  { %v575_v12 = vrot.slane %v573_v31, 1  ;;  %v800_v58 = vor.u32 %v799_v27, %v798_v47  ;;  %v724_v36 = vrot.slane %v6728_v44, 2  ;;  %v725_v61 = vrot.slane %v6732_v52, 2 }
 0x140   :  { %589 = vrot.lane.b32.xlu1 %v564_v3, %s6388_s3  ;;  %v706_v55 = vsel %vm634_vm7, %v700_v28, %v705_v46  ;;  %v803_v39 = vor.u32 %v802_v41, %v801_v53  ;;  %v825_v62 = vrot.slane %v6743_v0, 3  ;;  %v826_v11 = vrot.slane %v6770_v18, 3 }
 0x141   :  { %817 = vrot.lane.b32.xlu0 %v797_v43, %s6388_s3  ;;  %v576_v59 = vsel %vm480_vm8, %v571_v9, %v575_v12  ;;  %v726_v31 = vsel %vm723_vm9, %v724_v36, %v725_v61  ;;  %v610_v10 = vrot.slane %v6728_v44, 1  ;;  %v611_v40 = vrot.slane %v6732_v52, 1 }
 0x142   :  { %v804_v60 = vsel %vm748_vm6, %v800_v58, %v803_v39  ;;  %v827_v26 = vsel %vm821_vm4, %v825_v62, %v826_v11  ;;  %v613_v3 = vrot.slane %v6743_v0, 1  ;;  %v614_v28 = vrot.slane %v6770_v18, 1 }
 0x143   :  { %v612_v33 = vsel %vm609_vm10, %v610_v10, %v611_v40  ;;  %v727_v46 = vrot.slane %v6743_v0, 2  ;;  %v728_v47 = vrot.slane %v6770_v18, 2  ;;  %v828_v41 = vrot.slane %v6785_v30, 3 }
 0x144   :  { %721 = vrot.lane.b32.xlu1 %v706_v55, %s6388_s3  ;;  %v615_v43 = vsel %vm609_vm10, %v613_v3, %v614_v28  ;;  %v829_v9 = vrot.slane %v6800_v25, 3  ;;  %v616_v12 = vrot.slane %v6785_v30, 1  ;;  %v730_v61 = vrot.slane %v6785_v30, 2 }
 0x145   :  { %591 = vrot.lane.b32.xlu0 %v576_v59, %s6388_s3  ;;  %v729_v58 = vsel %vm723_vm9, %v727_v46, %v728_v47  ;;  %v731_v62 = vrot.slane %v6800_v25, 2  ;;  %v834_v46 = vrot.slane %v6827_v21, 3  ;;  %v835_v47 = vrot.slane %v6837_v49, 3 }
 0x146   :  { %v830_v59 = vsel %vm821_vm4, %v828_v41, %v829_v9 }
 0x147   :  { %v732_v40 = vsel %vm723_vm9, %v730_v61, %v731_v62  ;;  %v838_v61 = vrot.slane %v6852_v2, 3 }
 0x148   :  { %819 = vrot.lane.b32.xlu1 %v804_v60, %s6388_s3 }
 0x183   :  { %v806_v34 = vpop.permute.xlu1 %805 }
 0x184   :  { %v905_v24 = vsel %vm846_vm5, %v726_v31, %v806_v34  ;;  %v831_v34 = vrot.slane %v6819_v48, 3 }
 0x185   :  { %1313 = vmatmul.mubr.bf16.vlgmr.msra.gmra.mrb[16].mxu0 %v905_v24  ;;  %v619_v24 = vrot.slane %v6819_v48, 1 }
 0x186   :  { %5223 = vmatprep.mubr.msk.bf16.mxu0 %vm846_vm5, %v827_v26  ;;  %v620_v26 = vrot.slane %v6823_v20, 1 }
 0x188   :  { %v708_v16 = vpop.permute.xlu0 %707  ;;  %v621_v3 = vsel %vm609_vm10, %v619_v24, %v620_v26  ;;  %v739_v26 = vrot.slane %v6843_v14, 2 }
 0x189   :  { %v873_v35 = vsel %vm846_vm5, %v612_v33, %v708_v16 }
 0x18a   :  { %1215 = vmatprep.mubr.bf16.mxu1 %v873_v35 }
 0x18c   :  { %v578_v23 = vpop.permute.xlu0 %577 }
 0x18d   :  { %v848_v52 = vsel %vm846_vm5, %v6728_v44, %v578_v23  ;;  %v617_v44 = vrot.slane %v6800_v25, 1 }
 0x18e   :  { %1216 = vmatmul.mubr.bf16.vlgmr.msra.gmra.mrb[0].mxu1 %v848_v52  ;;  %v733_v52 = vrot.slane %v6819_v48, 2 }
 0x18f   :  { %v618_v36 = vsel %vm609_vm10, %v616_v12, %v617_v44  ;;  %v836_v44 = vsel %vm821_vm4, %v834_v46, %v835_v47  ;;  %v742_v46 = vrot.slane %v6867_v4, 2  ;;  %v743_v47 = vrot.slane %v6879_v15, 2 }
 0x190   :  { %v710_v42 = vpop.permute.xlu1 %709 }
 0x191   :  { %v877_v27 = vsel %vm846_vm5, %v615_v43, %v710_v42  ;;  %v580_v53 = vpop.permute.xlu0 %579  ;;  %v734_v42 = vrot.slane %v6823_v20, 2  ;;  %v622_v43 = vrot.slane %v6827_v21, 1 }
 0x192   :  { %1223 = vmatprep.mubr.bf16.mxu1 %v877_v27  ;;  %v851_v18 = vsel %vm846_vm5, %v6743_v0, %v580_v53  ;;  %v832_v0 = vrot.slane %v6823_v20, 3 }
 0x193   :  { %v735_v41 = vsel %vm723_vm9, %v733_v52, %v734_v42 }
 0x194   :  { %v808_v55 = vpop.permute.xlu1 %807  ;;  %v833_v33 = vsel %vm821_vm4, %v831_v34, %v832_v0 }
 0x195   :  { %v909_v39 = vsel %vm846_vm5, %v729_v58, %v808_v55 }
 0x196   :  { %1321 = vmatmul.mubr.bf16.gmra.mrb[20].mxu0 %v909_v39  ;;  %1224 = vmatmul.mubr.bf16.gmra.mrb[4].mxu1 %v851_v18  ;;  %v736_v18 = vrot.slane %v6827_v21, 2 }
 0x197   :  { %5224 = vmatprep.mubr.msk.bf16.mxu0 %vm846_vm5, %v830_v59  ;;  %v712_v60 = vpop.permute.xlu0 %711  ;;  %v737_v59 = vrot.slane %v6837_v49, 2 }
 0x198   :  { %v881_v11 = vsel %vm846_vm5, %v618_v36, %v712_v60  ;;  %v582_v31 = vpop.permute.xlu1 %581  ;;  %v625_v60 = vrot.slane %v6843_v14, 1  ;;  %v837_v36 = vrot.slane %v6843_v14, 3 }
 0x199   :  { %1231 = vmatprep.mubr.bf16.mxu1 %v881_v11  ;;  %v854_v25 = vsel %vm846_vm5, %v6785_v30, %v582_v31  ;;  %v623_v30 = vrot.slane %v6837_v49, 1  ;;  %v738_v11 = vsel %vm723_vm9, %v736_v18, %v737_v59  ;;  %v745_v18 = vrot.slane %v6895_v32, 2 }
 0x19a   :  { %v839_v49 = vsel %vm821_vm4, %v837_v36, %v838_v61  ;;  %v746_v59 = vrot.slane %v6911_v51, 2 }
 0x19b   :  { %v810_v10 = vpop.permute.xlu0 %809  ;;  %v624_v20 = vsel %vm609_vm10, %v622_v43, %v623_v30 }
 0x19c   :  { %v913_v16 = vsel %vm846_vm5, %v732_v40, %v810_v10  ;;  %v747_v36 = vsel %vm723_vm9, %v745_v18, %v746_v59 }
 0x19e   :  { %1329 = vmatmul.mubr.bf16.gmra.mrb[24].mxu0 %v913_v16  ;;  %1232 = vmatmul.mubr.bf16.gmra.mrb[8].mxu1 %v854_v25  ;;  %v714_v35 = vpop.permute.xlu1 %713  ;;  %v740_v16 = vrot.slane %v6852_v2, 2  ;;  %v628_v25 = vrot.slane %v6867_v4, 1 }
 0x19f   :  { %5225 = vmatprep.mubr.msk.bf16.mxu0 %vm846_vm5, %v833_v33  ;;  %v584_v23 = vpop.permute.xlu0 %583  ;;  %v885_v28 = vsel %vm846_vm5, %v621_v3, %v714_v35  ;;  %v840_v33 = vrot.slane %v6867_v4, 3  ;;  %v841_v35 = vrot.slane %v6879_v15, 3 }
 0x1a0   :  { %1239 = vmatprep.mubr.bf16.mxu1 %v885_v28  ;;  %v857_v12 = vsel %vm846_vm5, %v6819_v48, %v584_v23  ;;  %v626_v48 = vrot.slane %v6852_v2, 1  ;;  %v741_v3 = vsel %vm723_vm9, %v739_v26, %v740_v16 }
 0x1a1   :  { %v842_v2 = vsel %vm821_vm4, %v840_v33, %v841_v35 }
 0x1a2   :  { %v812_v27 = vpop.permute.xlu1 %811  ;;  %v627_v10 = vsel %vm609_vm10, %v625_v60, %v626_v48 }
 0x1a3   :  { %v716_v53 = vpop.permute.xlu0 %715  ;;  %v917_v9 = vsel %vm846_vm5, %v735_v41, %v812_v27  ;;  %v631_v27 = vrot.slane %v6895_v32, 1  ;;  %v843_v41 = vrot.slane %v6895_v32, 3 }
 0x1a4   :  { %v889_v55 = vsel %vm846_vm5, %v624_v20, %v716_v53  ;;  %v632_v53 = vrot.slane %v6911_v51, 1  ;;  %v744_v20 = vsel %vm723_vm9, %v742_v46, %v743_v47 }
 0x1a6   :  { %1337 = vmatmul.mubr.bf16.gmra.mrb[28].mxu0 %v917_v9  ;;  %1240 = vmatmul.mubr.bf16.gmra.mrb[12].mxu1 %v857_v12  ;;  %v586_v58 = vpop.permute.xlu1 %585  ;;  %v844_v9 = vrot.slane %v6911_v51, 3  ;;  %v7054_v51 = vld [vmem:[%s8499_s4] ss:$0 sm:$0xff] }
 0x1a7   :  { %5226 = vmatprep.mubr.msk.bf16.mxu0 %vm846_vm5, %v836_v44  ;;  %v814_v39 = vpop.permute.xlu0 %813  ;;  %1247 = vmatprep.mubr.bf16.mxu1 %v889_v55  ;;  %v860_v0 = vsel %vm846_vm5, %v6827_v21, %v586_v58  ;;  %v629_v21 = vrot.slane %v6879_v15, 1  ;;  %v633_v58 = vsel %vm609_vm10, %v631_v27, %v632_v53 }
 0x1a8   :  { %v921_v34 = vsel %vm846_vm5, %v738_v11, %v814_v39  ;;  %v845_v15 = vsel %vm821_vm4, %v843_v41, %v844_v9  ;;  %v5841_v41 = vld [vmem:[%s8500_s5] sm:$0xff]  }
 0x1a9   :  { %v630_v43 = vsel %vm609_vm10, %v628_v25, %v629_v21  ;;  %2211 = vmatpush1.bf16.msra.mxu1 %v5841_v41 }
 0x1aa   :  { %v718_v62 = vpop.permute.xlu1 %717  ;;  %2212 = vmatprep.subr.bf16.mxu1 %v6387_v17 }
 0x1ab   :  { %v588_v31 = vpop.permute.xlu0 %587  ;;  %v893_v40 = vsel %vm846_vm5, %v627_v10, %v718_v62 }
 0x1ac   :  { %v863_v42 = vsel %vm846_vm5, %v6843_v14, %v588_v31 }
 0x1ae   :  { %1345 = vmatmul.mubr.bf16.gmra.mrb[32].mxu0 %v921_v34  ;;  %1248 = vmatmul.mubr.bf16.gmra.mrb[16].mxu1 %v860_v0  ;;  %v816_v24 = vpop.permute.xlu1 %815 }
 0x1af   :  { %5227 = vmatprep.mubr.msk.bf16.mxu0 %vm846_vm5, %v839_v49  ;;  %1255 = vmatprep.mubr.bf16.mxu1 %v893_v40  ;;  %v720_v23 = vpop.permute.xlu0 %719  ;;  %v925_v52 = vsel %vm846_vm5, %v741_v3, %v816_v24 }
 0x1b0   :  { %v897_v30 = vsel %vm846_vm5, %v630_v43, %v720_v23 }
 0x1b2   :  { %v590_v28 = vpop.permute.xlu1 %589 }
 0x1b3   :  { %v818_v14 = vpop.permute.xlu0 %817  ;;  %v866_v55 = vsel %vm846_vm5, %v6867_v4, %v590_v28 }
 0x1b4   :  { %v929_v44 = vsel %vm846_vm5, %v744_v20, %v818_v14 }
 0x1b6   :  { %1353 = vmatmul.mubr.bf16.gmra.mrb[36].mxu0 %v925_v52  ;;  %1256 = vmatmul.mubr.bf16.gmra.mrb[20].mxu1 %v863_v42  ;;  %v722_v12 = vpop.permute.xlu1 %721 }
 0x1b7   :  { %5228 = vmatprep.mubr.msk.bf16.mxu0 %vm846_vm5, %v842_v2  ;;  %1263 = vmatprep.mubr.bf16.mxu1 %v897_v30  ;;  %v901_v39 = vsel %vm846_vm5, %v633_v58, %v722_v12  ;;  %v592_v48 = vpop.permute.xlu0 %591 }
 0x1b8   :  { %v869_v61 = vsel %vm846_vm5, %v6895_v32, %v592_v48 }
 0x1ba   :  { %v820_v60 = vpop.permute.xlu1 %819 }
 0x1bb   :  { %v933_v4 = vsel %vm846_vm5, %v747_v36, %v820_v60 }
 0x1be   :  { %1361 = vmatmul.mubr.bf16.gmra.mrb[40].mxu0 %v929_v44  ;;  %1264 = vmatmul.mubr.bf16.gmra.mrb[24].mxu1 %v866_v55 }
 0x1bf   :  { %5229 = vmatprep.mubr.msk.bf16.mxu0 %vm846_vm5, %v845_v15  ;;  %1271 = vmatprep.mubr.bf16.mxu1 %v901_v39  ;;  %v5842_v15 = vld [vmem:[%s8500_s5 + $0x8] sm:$0xff]  }
 0x1c0   :  { %2213 = vmatpush1.bf16.msra.mxu1 %v5842_v15 }
 0x1c1   :  { %2214 = vmatprep.subr.bf16.mxu1 %v6387_v17 }
 0x1c6   :  { %1369 = vmatmul.mubr.bf16.gmra.mrb[44].mxu0 %v933_v4  ;;  %1272 = vmatmul.mubr.bf16.gmra.mrb[28].mxu1 %v869_v61 }
 0x258   :  { %v1314_v62 = vpop.f32.mrb[16].mxu0 }
 0x259   :  { %v1316_v11 = vpop.f32.mrb[17].mxu0 }
 0x25a   :  { %v1317_v31 = vpop.f32.mrb[18].mxu0 }
 0x25b   :  { %v1319_v34 = vpop.f32.mrb[19].mxu0 }
 0x261   :  { %v5399_v0 = vpop.f32.mrb[0].mxu1 }
 0x262   :  { %v5400_v10 = vpop.f32.mrb[1].mxu1 }
 0x263   :  { %v5401_v49 = vadd.f32 %v5400_v10, %v5399_v0  ;;  %v5402_v40 = vpop.f32.mrb[2].mxu1  ;;  %v5843_v0 = vld [vmem:[%s8500_s5 + $0x10] sm:$0xff]  }
 0x264   :  { %v5403_v24 = vpop.f32.mrb[3].mxu1  ;;  %2215 = vmatpush1.bf16.msra.mxu1 %v5843_v0 }
 0x265   :  { %v1315_v26 = vadd.f32 %v5401_v49, %v1314_v62  ;;  %v5404_v16 = vadd.f32 %v5403_v24, %v5402_v40  ;;  %2216 = vmatprep.subr.bf16.mxu1 %v6387_v17 }
 0x267   :  { %v7057_v32 = vadd.f32 %v7054_v51, %v1315_v26  ;;  %v1318_v25 = vadd.f32 %v5404_v16, %v1317_v31  ;;  %v5844_v26 = vld [vmem:[%s8500_s5 + $0x18] sm:$0xff]  }
 0x268   :  { %2217 = vmatpush1.bf16.msra.mxu1 %v5844_v26 }
 0x269   :  { %v1400_v21 = vsub.f32 0.0, %v7057_v32  ;;  %v7061_v33 = vadd.f32 %v7054_v51, %v1318_v25  ;;  %v1322_v35 = vpop.f32.mrb[20].mxu0  ;;  %v5405_v23 = vpop.f32.mrb[4].mxu1  ;;  %2218 = vmatprep.subr.bf16.mxu1 %v6387_v17 }
 0x26a   :  { %v1324_v3 = vpop.f32.mrb[21].mxu0  ;;  %v5406_v28 = vpop.f32.mrb[5].mxu1 }
 0x26b   :  { %v1416_v52 = vmul.f32 1.442695, %v1400_v21  ;;  %v1401_v42 = vsub.f32 0.0, %v7061_v33  ;;  %v1325_v43 = vpop.f32.mrb[22].mxu0  ;;  %v5407_v2 = vadd.f32 %v5406_v28, %v5405_v23  ;;  %v5408_v30 = vpop.f32.mrb[6].mxu1 }
 0x26c   :  { %v1327_v46 = vpop.f32.mrb[23].mxu0  ;;  %v5409_v47 = vpop.f32.mrb[7].mxu1 }
 0x26d   :  { %6003 = vpow2.f32 %v1416_v52  ;;  %v1418_v27 = vmul.f32 1.442695, %v1401_v42  ;;  %v1323_v53 = vadd.f32 %v5407_v2, %v1322_v35  ;;  %v5410_v14 = vadd.f32 %v5409_v47, %v5408_v30  ;;  %v5845_v47 = vld [vmem:[%s8500_s5 + $0x20] sm:$0xff]  }
 0x26e   :  { %2219 = vmatpush1.bf16.msra.mxu1 %v5845_v47 }
 0x26f   :  { %6005 = vpow2.f32 %v1418_v27  ;;  %v7068_v9 = vadd.f32 %v7054_v51, %v1323_v53  ;;  %v1326_v12 = vadd.f32 %v5410_v14, %v1325_v43  ;;  %2220 = vmatprep.subr.bf16.mxu1 %v6387_v17 }
 0x271   :  { %v1402_v20 = vsub.f32 0.0, %v7068_v9  ;;  %v7072_v44 = vadd.f32 %v7054_v51, %v1326_v12  ;;  %v1330_v55 = vpop.f32.mrb[24].mxu0  ;;  %v5411_v58 = vpop.f32.mrb[8].mxu1 }
 0x272   :  { %v1332_v39 = vpop.f32.mrb[25].mxu0  ;;  %v5412_v18 = vpop.f32.mrb[9].mxu1 }
 0x273   :  { %v1420_v59 = vmul.f32 1.442695, %v1402_v20  ;;  %v1403_v60 = vsub.f32 0.0, %v7072_v44  ;;  %v1333_v48 = vpop.f32.mrb[26].mxu0  ;;  %v5413_v36 = vadd.f32 %v5412_v18, %v5411_v58  ;;  %v5414_v4 = vpop.f32.mrb[10].mxu1  ;;  %v5846_v39 = vld [vmem:[%s8500_s5 + $0x28] sm:$0xff]  }
 0x274   :  { %v1335_v61 = vpop.f32.mrb[27].mxu0  ;;  %v5415_v62 = vpop.f32.mrb[11].mxu1  ;;  %2221 = vmatpush1.bf16.msra.mxu1 %v5846_v39 }
 0x275   :  { %6007 = vpow2.f32 %v1420_v59  ;;  %v1422_v11 = vmul.f32 1.442695, %v1403_v60  ;;  %v1331_v31 = vadd.f32 %v5413_v36, %v1330_v55  ;;  %v5416_v34 = vadd.f32 %v5415_v62, %v5414_v4  ;;  %2222 = vmatprep.subr.bf16.mxu1 %v6387_v17 }
 0x277   :  { %v6004_v10 = vpop.eup %6003  ;;  %6009 = vpow2.f32 %v1422_v11  ;;  %v7084_v49 = vadd.f32 %v7054_v51, %v1331_v31  ;;  %v1334_v40 = vadd.f32 %v5416_v34, %v1333_v48 }
 0x278   :  { %v1448_v24 = vadd.f32 1.0, %v6004_v10 }
 0x279   :  { %v6006_v16 = vpop.eup %6005  ;;  %v1404_v25 = vsub.f32 0.0, %v7084_v49  ;;  %v7091_v21 = vadd.f32 %v7054_v51, %v1334_v40  ;;  %v1338_v35 = vpop.f32.mrb[28].mxu0 }
 0x27a   :  { %v5417_v23 = vpop.f32.mrb[12].mxu1  ;;  %6011 = vrcp.f32 %v1448_v24  ;;  %v1449_v3 = vadd.f32 1.0, %v6006_v16  ;;  %v1340_v28 = vpop.f32.mrb[29].mxu0  ;;  %v5847_v16 = vld [vmem:[%s8500_s5 + $0x30] sm:$0xff]  }
 0x27b   :  { %v5418_v52 = vpop.f32.mrb[13].mxu1  ;;  %v1424_v42 = vmul.f32 1.442695, %v1404_v25  ;;  %v1405_v43 = vsub.f32 0.0, %v7091_v21  ;;  %v1341_v2 = vpop.f32.mrb[30].mxu0  ;;  %2223 = vmatpush1.bf16.msra.mxu1 %v5847_v16 }
 0x27c   :  { %v5419_v30 = vadd.f32 %v5418_v52, %v5417_v23  ;;  %v5420_v46 = vpop.f32.mrb[14].mxu1  ;;  %6013 = vrcp.f32 %v1449_v3  ;;  %v1343_v27 = vpop.f32.mrb[31].mxu0  ;;  %2224 = vmatprep.subr.bf16.mxu1 %v6387_v17 }
 0x27d   :  { %v5421_v53 = vpop.f32.mrb[15].mxu1  ;;  %6015 = vpow2.f32 %v1424_v42  ;;  %v1426_v14 = vmul.f32 1.442695, %v1405_v43 }
 0x27e   :  { %v1339_v41 = vadd.f32 %v5419_v30, %v1338_v35  ;;  %v5422_v12 = vadd.f32 %v5421_v53, %v5420_v46  ;;  %v5848_v46 = vld [vmem:[%s8500_s5 + $0x38] sm:$0xff]  }
 0x27f   :  { %v6008_v20 = vpop.eup %6007  ;;  %6017 = vpow2.f32 %v1426_v14  ;;  %2225 = vmatpush1.bf16.msra.mxu1 %v5848_v46 }
 0x280   :  { %v7100_v55 = vadd.f32 %v7054_v51, %v1339_v41  ;;  %v1342_v58 = vadd.f32 %v5422_v12, %v1341_v2  ;;  %v1450_v15 = vadd.f32 1.0, %v6008_v20  ;;  %2226 = vmatprep.subr.bf16.mxu1 %v6387_v17 }
 0x281   :  { %v6010_v18 = vpop.eup %6009  ;;  %v1346_v48 = vpop.f32.mrb[32].mxu0 }
 0x282   :  { %v1406_v59 = vsub.f32 0.0, %v7100_v55  ;;  %v7107_v60 = vadd.f32 %v7054_v51, %v1342_v58  ;;  %v5423_v36 = vpop.f32.mrb[16].mxu1  ;;  %6019 = vrcp.f32 %v1450_v15  ;;  %v1451_v4 = vadd.f32 1.0, %v6010_v18  ;;  %v1348_v61 = vpop.f32.mrb[33].mxu0 }
 0x283   :  { %v5424_v62 = vpop.f32.mrb[17].mxu1  ;;  %v1349_v34 = vpop.f32.mrb[34].mxu0 }
 0x284   :  { %v1428_v11 = vmul.f32 1.442695, %v1406_v59  ;;  %v1407_v31 = vsub.f32 0.0, %v7107_v60  ;;  %v5425_v0 = vadd.f32 %v5424_v62, %v5423_v36  ;;  %v5426_v10 = vpop.f32.mrb[18].mxu1  ;;  %v6012_v40 = vpop.eup %6011  ;;  %6021 = vrcp.f32 %v1451_v4 }
 0x285   :  { %v1351_v24 = vpop.f32.mrb[35].mxu0  ;;  %v5427_v26 = vpop.f32.mrb[19].mxu1  ;;  %v1480_v52 = vmul.f32 %v6012_v40, %v7057_v32 }
 0x286   :  { %6023 = vpow2.f32 %v1428_v11  ;;  %v1430_v25 = vmul.f32 1.442695, %v1407_v31  ;;  %v1347_v35 = vadd.f32 %v5425_v0, %v1346_v48  ;;  %v6014_v23 = vpop.eup %6013  ;;  %v5428_v3 = vadd.f32 %v5427_v26, %v5426_v10  ;;  %v5849_v11 = vld [vmem:[%s8500_s5 + $0x40] sm:$0xff]  }
 0x287   :  { %v6016_v28 = vpop.eup %6015  ;;  %v1481_v42 = vmul.f32 %v6014_v23, %v7061_v33  ;;  %2227 = vmatpush1.bf16.msra.mxu1 %v5849_v11 }
 0x288   :  { %6025 = vpow2.f32 %v1430_v25  ;;  %v7118_v43 = vadd.f32 %v7054_v51, %v1347_v35  ;;  %v1452_v2 = vadd.f32 1.0, %v6016_v28  ;;  %v1350_v30 = vadd.f32 %v5428_v3, %v1349_v34  ;;  %2228 = vmatprep.subr.bf16.mxu1 %v6387_v17 }
 0x289   :  { %v6018_v47 = vpop.eup %6017  ;;  %v1496_v27 = vpack.c.bf16 %v1481_v42, %v1480_v52  ;;  %v1354_v14 = vpop.f32.mrb[36].mxu0  ;;  %v5850_v52 = vld [vmem:[%s8500_s5 + $0x48] sm:$0xff]  }
 0x28a   :  { %v1408_v53 = vsub.f32 0.0, %v7118_v43  ;;  %v5429_v41 = vpop.f32.mrb[20].mxu1  ;;  %6027 = vrcp.f32 %v1452_v2  ;;  %v1453_v32 = vadd.f32 1.0, %v6018_v47  ;;  %v7126_v33 = vadd.f32 %v7054_v51, %v1350_v30  ;;  %v1356_v12 = vpop.f32.mrb[37].mxu0 }
 0x28b   :  { %v5430_v20 = vpop.f32.mrb[21].mxu1  ;;  %v1505_v58 = vshrl.u32 %v1496_v27, 16  ;;  %v1508_v15 = vshll.u32 %v1496_v27, 16  ;;  %v1357_v18 = vpop.f32.mrb[38].mxu0  ;;  %2229 = vmatpush1.bf16.msra.mxu1 %v5850_v52 }
 0x28c   :  { %v1432_v39 = vmul.f32 1.442695, %v1408_v53  ;;  %v5431_v59 = vadd.f32 %v5430_v20, %v5429_v41  ;;  %v5432_v48 = vpop.f32.mrb[22].mxu1  ;;  %v6020_v36 = vpop.eup %6019  ;;  %6029 = vrcp.f32 %v1453_v32  ;;  %v1409_v4 = vsub.f32 0.0, %v7126_v33  ;;  %2230 = vmatprep.subr.bf16.mxu1 %v6387_v17 }
 0x28d   :  { %v1359_v61 = vpop.f32.mrb[39].mxu0  ;;  %v5433_v62 = vpop.f32.mrb[23].mxu1  ;;  %v1507_v31 = vrot.slane %v1505_v58, 6  ;;  %v1510_v34 = vrot.slane %v1508_v15, 7  ;;  %v1482_v25 = vmul.f32 %v6020_v36, %v7068_v9 }
 0x28e   :  { %6031 = vpow2.f32 %v1432_v39  ;;  %v6022_v0 = vpop.eup %6021  ;;  %v1434_v10 = vmul.f32 1.442695, %v1409_v4  ;;  %v1355_v40 = vadd.f32 %v5431_v59, %v1354_v14  ;;  %v5434_v24 = vadd.f32 %v5433_v62, %v5432_v48 }
 0x28f   :  { %v1511_v16 = vor.u32 %v1510_v34, %v1507_v31  ;;  %v1483_v35 = vmul.f32 %v6022_v0, %v7072_v44 }
 0x290   :  { %v6024_v26 = vpop.eup %6023  ;;  %6033 = vpow2.f32 %v1434_v10  ;;  %v7136_v3 = vadd.f32 %v7054_v51, %v1355_v40  ;;  %v1358_v28 = vadd.f32 %v5434_v24, %v1357_v18  ;;  %v5851_v18 = vld [vmem:[%s8500_s5 + $0x50] sm:$0xff]  }
 0x291   :  { %v1454_v23 = vadd.f32 1.0, %v6024_v26  ;;  %v7143_v2 = vsel %vm6716_vm3, 0, %v1511_v16  ;;  %v1497_v30 = vpack.c.bf16 %v1483_v35, %v1482_v25  ;;  %v1362_v9 = vpop.f32.mrb[40].mxu0  ;;  %v5435_v46 = vpop.f32.mrb[24].mxu1  ;;  %v7147_v44 = vsel %vm6716_vm3, %v1511_v16, 0  ;;  %2231 = vmatpush1.bf16.msra.mxu1 %v5851_v18 }
 0x292   :  { %v6026_v42 = vpop.eup %6025  ;;  %v1410_v27 = vsub.f32 0.0, %v7136_v3  ;;  %v7152_v53 = vadd.f32 %v7054_v51, %v1358_v28  ;;  %v1364_v14 = vpop.f32.mrb[41].mxu0  ;;  %v1944_v39 = vrot.slane %v7143_v2, 3  ;;  %v1945_v62 = vrot.slane %v7147_v44, 3  ;;  %2232 = vmatprep.subr.bf16.mxu1 %v6387_v17 }
 0x293   :  { %6035 = vrcp.f32 %v1454_v23  ;;  %v1455_v47 = vadd.f32 1.0, %v6026_v42  ;;  %v5436_v41 = vpop.f32.mrb[25].mxu1  ;;  %v1513_v32 = vshrl.u32 %v1497_v30, 16  ;;  %v1516_v12 = vshll.u32 %v1497_v30, 16  ;;  %v1365_v20 = vpop.f32.mrb[42].mxu0  ;;  %v5852_v30 = vld [vmem:[%s8500_s5 + $0x58] sm:$0xff]  }
 0x294   :  { %v5437_v58 = vadd.f32 %v5436_v41, %v5435_v46  ;;  %v5438_v15 = vpop.f32.mrb[26].mxu1  ;;  %v6028_v59 = vpop.eup %6027  ;;  %v1436_v48 = vmul.f32 1.442695, %v1410_v27  ;;  %v1411_v36 = vsub.f32 0.0, %v7152_v53  ;;  %v1946_v24 = vsel %vm821_vm4, %v1944_v39, %v1945_v62 }
 0x295   :  { %6037 = vrcp.f32 %v1455_v47  ;;  %v1367_v4 = vpop.f32.mrb[43].mxu0  ;;  %v5439_v61 = vpop.f32.mrb[27].mxu1  ;;  %v1515_v11 = vrot.slane %v1513_v32, 6  ;;  %v1518_v31 = vrot.slane %v1516_v12, 7  ;;  %v1484_v16 = vmul.f32 %v6028_v59, %v7084_v49  ;;  %1968 = vrot.lane.b32.xlu1 %v1946_v24, %s6388_s3  ;;  %2233 = vmatpush1.bf16.msra.mxu1 %v5852_v30 }
 0x296   :  { %v1363_v34 = vadd.f32 %v5437_v58, %v1362_v9  ;;  %v6030_v0 = vpop.eup %6029  ;;  %6039 = vpow2.f32 %v1436_v48  ;;  %v1438_v10 = vmul.f32 1.442695, %v1411_v36  ;;  %v5440_v40 = vadd.f32 %v5439_v61, %v5438_v15  ;;  %v5853_v48 = vld [vmem:[%s8500_s5 + $0x60] sm:$0xff]   ;;  %2234 = vmatprep.subr.bf16.mxu1 %v6387_v17 }
 0x297   :  { %v1485_v25 = vmul.f32 %v6030_v0, %v7091_v21  ;;  %v1720_v23 = vrot.slane %v7143_v2, 1  ;;  %v1721_v42 = vrot.slane %v7147_v44, 1  ;;  %v1519_v49 = vor.u32 %v1518_v31, %v1515_v11 }
 0x298   :  { %v6032_v26 = vpop.eup %6031  ;;  %v7165_v35 = vadd.f32 %v7054_v51, %v1363_v34  ;;  %6041 = vpow2.f32 %v1438_v10  ;;  %v1366_v52 = vadd.f32 %v5440_v40, %v1365_v20  ;;  %v7175_v47 = vshrl.u32 %v7143_v2, 16 }
 0x299   :  { %v1456_v28 = vadd.f32 1.0, %v6032_v26  ;;  %v1498_v9 = vpack.c.bf16 %v1485_v25, %v1484_v16  ;;  %v1370_v46 = vpop.f32.mrb[44].mxu0  ;;  %v5441_v27 = vpop.f32.mrb[28].mxu1  ;;  %v1722_v32 = vsel %vm609_vm10, %v1720_v23, %v1721_v42  ;;  %v7183_v20 = vshll.u32 %v7143_v2, 16  ;;  %2235 = vmatpush1.bf16.msra.mxu1 %v5853_v48 }
 0x29a   :  { %v1412_v21 = vsub.f32 0.0, %v7165_v35  ;;  %v6034_v14 = vpop.eup %6033  ;;  %v7179_v41 = vadd.f32 %v7054_v51, %v1366_v52  ;;  %v1372_v12 = vpop.f32.mrb[45].mxu0  ;;  %1744 = vrot.lane.b32.xlu0 %v1722_v32, %s6388_s3  ;;  %v7191_v62 = vshll.u32 %v7147_v44, 16  ;;  %v1763_v11 = vshrl.u32 %v7147_v44, 16  ;;  %v5854_v32 = vld [vmem:[%s8500_s5 + $0x68] sm:$0xff]   ;;  %2236 = vmatprep.subr.bf16.mxu1 %v6387_v17  ;;  %s6389_s5 = smov 32  }
 0x29b   :  { %6043 = vrcp.f32 %v1456_v28  ;;  %v5442_v58 = vpop.f32.mrb[29].mxu1  ;;  %v1521_v15 = vshrl.u32 %v1498_v9, 16  ;;  %v1457_v39 = vadd.f32 1.0, %v6034_v14  ;;  %v1373_v59 = vpop.f32.mrb[46].mxu0  ;;  %v1872_v31 = vrot.slane %v7175_v47, 2 }
 0x29c   :  { %v1440_v18 = vmul.f32 1.442695, %v1412_v21  ;;  %v1413_v4 = vsub.f32 0.0, %v7179_v41  ;;  %v1375_v61 = vpop.f32.mrb[47].mxu0  ;;  %v5444_v34 = vpop.f32.mrb[30].mxu1  ;;  %v7197_v0 = vsel %vm6716_vm3, 0, %v1519_v49  ;;  %v5443_v14 = vadd.f32 %v5442_v58, %v5441_v27 }
 0x29d   :  { %v6036_v36 = vpop.eup %6035  ;;  %v1524_v10 = vshll.u32 %v1498_v9, 16  ;;  %6045 = vrcp.f32 %v1457_v39  ;;  %v5445_v40 = vpop.f32.mrb[31].mxu1  ;;  %v1873_v16 = vrot.slane %v7183_v20, 3  ;;  %v1875_v25 = vrot.slane %v1763_v11, 2  ;;  %2237 = vmatpush1.bf16.msra.mxu1 %v5854_v32 }
 0x29e   :  { %6047 = vpow2.f32 %v1440_v18  ;;  %v1442_v26 = vmul.f32 1.442695, %v1413_v4  ;;  %v1486_v23 = vmul.f32 %v6036_v36, %v7100_v55  ;;  %v1876_v52 = vrot.slane %v7191_v62, 3 }
 0x29f   :  { %v6038_v24 = vpop.eup %6037  ;;  %v1597_v42 = vrot.slane %v7183_v20, 1  ;;  %v1523_v9 = vrot.slane %v1521_v15, 6  ;;  %v1874_v21 = vor.u32 %v1873_v16, %v1872_v31  ;;  %v1526_v12 = vrot.slane %v1524_v10, 7 }
 0x2a0   :  { %v1487_v28 = vmul.f32 %v6038_v24, %v7107_v60  ;;  %v6040_v30 = vpop.eup %6039  ;;  %6049 = vpow2.f32 %v1442_v26  ;;  %v1877_v55 = vor.u32 %v1876_v52, %v1875_v25  ;;  %v1602_v4 = vrot.slane %v7191_v62, 1 }
 0x2a1   :  { %v1458_v18 = vadd.f32 1.0, %v6040_v30  ;;  %v1598_v36 = vor.u32 %v1597_v42, %v7175_v47  ;;  %v1371_v15 = vadd.f32 %v5443_v14, %v1370_v46  ;;  %v5446_v61 = vadd.f32 %v5445_v40, %v5444_v34 }
 0x2a2   :  { %v1499_v39 = vpack.c.bf16 %v1487_v28, %v1486_v23  ;;  %v6042_v60 = vpop.eup %6041  ;;  %v7213_v58 = vsel %vm6716_vm3, %v1519_v49, 0  ;;  %v1878_v10 = vsel %vm748_vm6, %v1874_v21, %v1877_v55  ;;  %v7220_v25 = vor.u32 %v1526_v12, %v1523_v9 }
 0x2a3   :  { %6051 = vrcp.f32 %v1458_v18  ;;  %v1459_v27 = vadd.f32 1.0, %v6042_v60  ;;  %v1603_v24 = vsel %vm480_vm8, %v1598_v36, %v1602_v4  ;;  %v7218_v26 = vadd.f32 %v7054_v51, %v1371_v15  ;;  %1928 = vrot.lane.b32.xlu1 %v1878_v10, %s6389_s5 }
 0x2a4   :  { %v1529_v31 = vshrl.u32 %v1499_v39, 16  ;;  %v1374_v16 = vadd.f32 %v5446_v61, %v1373_v59  ;;  %v1532_v34 = vshll.u32 %v1499_v39, 16  ;;  %1688 = vrot.lane.b32.xlu0 %v1603_v24, %s6389_s5  ;;  %v1723_v23 = vrot.slane %v7197_v0, 1 }
 0x2a5   :  { %v6044_v48 = vpop.eup %6043  ;;  %6053 = vrcp.f32 %v1459_v27  ;;  %v1414_v49 = vsub.f32 0.0, %v7218_v26  ;;  %v1724_v59 = vrot.slane %v7213_v58, 1  ;;  %v1760_v42 = vrot.slane %v7175_v47, 1 }
 0x2a6   :  { %v1531_v46 = vrot.slane %v1529_v31, 6  ;;  %v7226_v40 = vadd.f32 %v7054_v51, %v1374_v16  ;;  %v1488_v52 = vmul.f32 %v6044_v48, %v7118_v43  ;;  %v1761_v30 = vrot.slane %v7183_v20, 2 }
 0x2a7   :  { %v6046_v28 = vpop.eup %6045  ;;  %v1765_v9 = vrot.slane %v1763_v11, 1  ;;  %v1444_v32 = vmul.f32 1.442695, %v1414_v49  ;;  %v1725_v51 = vsel %vm609_vm10, %v1723_v23, %v1724_v59  ;;  %v1534_v39 = vrot.slane %v1532_v34, 7 }
 0x2a8   :  { %v6048_v21 = vpop.eup %6047  ;;  %v1489_v14 = vmul.f32 %v6046_v28, %v7126_v33  ;;  %v1415_v12 = vsub.f32 0.0, %v7226_v40  ;;  %1746 = vrot.lane.b32.xlu1 %v1725_v51, %s6388_s3  ;;  %v1762_v55 = vor.u32 %v1761_v30, %v1760_v42  ;;  %v1766_v43 = vrot.slane %v7191_v62, 2 }
 0x2a9   :  { %v1460_v18 = vadd.f32 1.0, %v6048_v21  ;;  %6055 = vpow2.f32 %v1444_v32  ;;  %v1605_v11 = vshrl.u32 %v7197_v0, 16  ;;  %v1607_v4 = vshll.u32 %v7197_v0, 16 }
 0x2aa   :  { %v6050_v60 = vpop.eup %6049  ;;  %v1500_v47 = vpack.c.bf16 %v1489_v14, %v1488_v52  ;;  %v1446_v20 = vmul.f32 1.442695, %v1415_v12  ;;  %v1767_v36 = vor.u32 %v1766_v43, %v1765_v9  ;;  %v1612_v15 = vshll.u32 %v7213_v58, 16 }
 0x2ab   :  { %6057 = vrcp.f32 %v1460_v18  ;;  %v1461_v33 = vadd.f32 1.0, %v6050_v60  ;;  %v1609_v27 = vrot.slane %v1607_v4, 1  ;;  %v1947_v62 = vrot.slane %v7197_v0, 3 }
 0x2ac   :  { %6059 = vpow2.f32 %v1446_v20  ;;  %v1768_v31 = vsel %vm634_vm7, %v1762_v55, %v1767_v36  ;;  %v7246_v48 = vsel %vm6716_vm3, 0, %v7220_v25  ;;  %v7248_v10 = vor.u32 %v1534_v39, %v1531_v46 }
 0x2ad   :  { %v6052_v61 = vpop.eup %6051  ;;  %6061 = vrcp.f32 %v1461_v33  ;;  %v1537_v24 = vshrl.u32 %v1500_v47, 16  ;;  %1832 = vrot.lane.b32.xlu0 %v1768_v31, %s6390_s17  ;;  %v1614_v16 = vrot.slane %v1612_v15, 1  ;;  %v1610_v49 = vor.u32 %v1609_v27, %v1605_v11 }
 0x2ae   :  { %v1948_v23 = vrot.slane %v7213_v58, 3  ;;  %v1769_v59 = vrot.slane %v1605_v11, 1  ;;  %v1770_v28 = vrot.slane %v1607_v4, 2  ;;  %v1490_v52 = vmul.f32 %v6052_v61, %v7136_v3 }
 0x2af   :  { %v6054_v34 = vpop.eup %6053  ;;  %v1772_v30 = vshrl.u32 %v7213_v58, 16  ;;  %v1775_v9 = vrot.slane %v1612_v15, 2  ;;  %v1540_v46 = vshll.u32 %v1500_v47, 16  ;;  %v1615_v21 = vsel %vm480_vm8, %v1610_v49, %v1614_v16 }
 0x2b0   :  { %v1491_v42 = vmul.f32 %v6054_v34, %v7152_v53  ;;  %v1949_v14 = vsel %vm821_vm4, %v1947_v62, %v1948_v23  ;;  %v1879_v32 = vrot.slane %v1605_v11, 2  ;;  %1690 = vrot.lane.b32.xlu1 %v1615_v21, %s6389_s5  ;;  %v1771_v51 = vor.u32 %v1770_v28, %v1769_v59 }
 0x2b1   :  { %1970 = vrot.lane.b32.xlu0 %v1949_v14, %s6388_s3  ;;  %v1774_v39 = vrot.slane %v1772_v30, 1  ;;  %v1880_v18 = vrot.slane %v1607_v4, 3  ;;  %v1882_v3 = vrot.slane %v1772_v30, 2  ;;  %v1883_v55 = vrot.slane %v1612_v15, 3 }
 0x2b2   :  { %v1501_v12 = vpack.c.bf16 %v1491_v42, %v1490_v52  ;;  %v7262_v53 = vsel %vm6716_vm3, %v7220_v25, 0  ;;  %v7267_v60 = vsel %vm6716_vm3, 0, %v7248_v10  ;;  %v1539_v47 = vrot.slane %v1537_v24, 6 }
 0x2b3   :  { %v6056_v43 = vpop.eup %6055  ;;  %v1776_v20 = vor.u32 %v1775_v9, %v1774_v39  ;;  %v1881_v11 = vor.u32 %v1880_v18, %v1879_v32  ;;  %v1542_v36 = vrot.slane %v1540_v46, 7  ;;  %v1884_v4 = vor.u32 %v1883_v55, %v1882_v3 }
 0x2b4   :  { %v1462_v61 = vadd.f32 1.0, %v6056_v43  ;;  %v1950_v15 = vrot.slane %v7246_v48, 3  ;;  %v1545_v27 = vshrl.u32 %v1501_v12, 16  ;;  %v1951_v62 = vrot.slane %v7262_v53, 3 }
 0x2b5   :  { %v6058_v33 = vpop.eup %6057  ;;  %v1777_v25 = vsel %vm634_vm7, %v1771_v51, %v1776_v20  ;;  %v1726_v16 = vrot.slane %v7246_v48, 1  ;;  %v1548_v49 = vshll.u32 %v1501_v12, 16  ;;  %v1885_v23 = vsel %vm748_vm6, %v1881_v11, %v1884_v4 }
 0x2b6   :  { %v6060_v31 = vpop.eup %6059  ;;  %6063 = vrcp.f32 %v1462_v61  ;;  %1834 = vrot.lane.b32.xlu1 %v1777_v25, %s6390_s17  ;;  %v1492_v59 = vmul.f32 %v6058_v33, %v7165_v35  ;;  %1930 = vrot.lane.b32.xlu0 %v1885_v23, %s6389_s5  ;;  %v1727_v52 = vrot.slane %v7262_v53, 1  ;;  %v1617_v42 = vshrl.u32 %v7246_v48, 16 }
 0x2b7   :  { %v6062_v34 = vpop.eup %6061  ;;  %v1463_v24 = vadd.f32 1.0, %v6060_v31  ;;  %v1619_v30 = vshll.u32 %v7246_v48, 16  ;;  %v1624_v9 = vshll.u32 %v7262_v53, 16  ;;  %v1781_v46 = vshrl.u32 %v7262_v53, 16 }
 0x2b8   :  { %v1493_v28 = vmul.f32 %v6062_v34, %v7179_v41  ;;  %v1952_v14 = vsel %vm821_vm4, %v1950_v15, %v1951_v62  ;;  %v1728_v35 = vsel %vm609_vm10, %v1726_v16, %v1727_v52  ;;  %v1886_v41 = vrot.slane %v1617_v42, 2 }
 0x2b9   :  { %6065 = vrcp.f32 %v1463_v24  ;;  %v1887_v32 = vrot.slane %v1619_v30, 3  ;;  %v1889_v12 = vrot.slane %v1781_v46, 2  ;;  %v1890_v51 = vrot.slane %v1624_v9, 3 }
 0x2ba   :  { %v7283_v21 = vpack.c.bf16 %v1493_v28, %v1492_v59  ;;  %1972 = vrot.lane.b32.xlu1 %v1952_v14, %s6388_s3  ;;  %v1621_v39 = vrot.slane %v1619_v30, 1  ;;  %v1543_v18 = vor.u32 %v1542_v36, %v1539_v47  ;;  %v1547_v3 = vrot.slane %v1545_v27, 6  ;;  %1748 = vrot.lane.b32.xlu0 %v1728_v35, %s6388_s3 }
 0x2bb   :  { %v1550_v55 = vrot.slane %v1548_v49, 7  ;;  %v7292_v43 = vsel %vm6716_vm3, %v7248_v10, 0  ;;  %v1888_v20 = vor.u32 %v1887_v32, %v1886_v41  ;;  %v1891_v11 = vor.u32 %v1890_v51, %v1889_v12 }
 0x2bc   :  { %v1622_v33 = vor.u32 %v1621_v39, %v1617_v42  ;;  %v1626_v61 = vrot.slane %v1624_v9, 1  ;;  %v1729_v4 = vrot.slane %v7267_v60, 1  ;;  %v1730_v15 = vrot.slane %v7292_v43, 1 }
 0x2bd   :  { %v1778_v31 = vrot.slane %v1617_v42, 1  ;;  %v1892_v47 = vsel %vm748_vm6, %v1888_v20, %v1891_v11  ;;  %v1779_v27 = vrot.slane %v1619_v30, 2  ;;  %v1783_v25 = vrot.slane %v1781_v46, 1 }
 0x2be   :  { %v1627_v36 = vsel %vm480_vm8, %v1622_v33, %v1626_v61  ;;  %v7300_v62 = vsel %vm6716_vm3, 0, %v1543_v18  ;;  %v7302_v10 = vor.u32 %v1550_v55, %v1547_v3  ;;  %1932 = vrot.lane.b32.xlu1 %v1892_v47, %s6389_s5  ;;  %v1784_v16 = vrot.slane %v1624_v9, 2 }
 0x2bf   :  { %1692 = vrot.lane.b32.xlu0 %v1627_v36, %s6389_s5  ;;  %v1629_v34 = vshrl.u32 %v7267_v60, 16  ;;  %v1553_v24 = vshrl.u32 %v7283_v21, 16  ;;  %v1780_v23 = vor.u32 %v1779_v27, %v1778_v31  ;;  %v1631_v59 = vshll.u32 %v7267_v60, 16 }
 0x2c0   :  { %v6064_v49 = vpop.eup %6063  ;;  %v1636_v28 = vshll.u32 %v7292_v43, 16  ;;  %v1556_v52 = vshll.u32 %v7283_v21, 16  ;;  %v1731_v42 = vsel %vm609_vm10, %v1729_v4, %v1730_v15  ;;  %v1785_v30 = vor.u32 %v1784_v16, %v1783_v25 }
 0x2c1   :  { %v1953_v46 = vrot.slane %v7267_v60, 3  ;;  %v1494_v9 = vmul.f32 %v6064_v49, %v7218_v26  ;;  %v1633_v35 = vrot.slane %v1631_v59, 1  ;;  %v1787_v41 = vrot.slane %v1629_v34, 1 }
 0x2c2   :  { %v1788_v32 = vrot.slane %v1631_v59, 2  ;;  %1750 = vrot.lane.b32.xlu1 %v1731_v42, %s6388_s3  ;;  %v1786_v51 = vsel %vm634_vm7, %v1780_v23, %v1785_v30  ;;  %v1954_v39 = vrot.slane %v7292_v43, 3  ;;  %v1790_v21 = vshrl.u32 %v7292_v43, 16 }
 0x2c3   :  { %v6066_v14 = vpop.eup %6065  ;;  %1836 = vrot.lane.b32.xlu0 %v1786_v51, %s6390_s17  ;;  %v1634_v3 = vor.u32 %v1633_v35, %v1629_v34  ;;  %v1638_v55 = vrot.slane %v1636_v28, 1  ;;  %v1793_v20 = vrot.slane %v1636_v28, 2  ;;  %v1893_v11 = vrot.slane %v1629_v34, 2 }
 0x2c4   :  { %v1495_v12 = vmul.f32 %v6066_v14, %v7226_v40  ;;  %v1792_v33 = vrot.slane %v1790_v21, 1  ;;  %v1894_v61 = vrot.slane %v1631_v59, 3  ;;  %v1896_v4 = vrot.slane %v1790_v21, 2 }
 0x2c5   :  { %v1639_v40 = vsel %vm480_vm8, %v1634_v3, %v1638_v55  ;;  %v1789_v15 = vor.u32 %v1788_v32, %v1787_v41  ;;  %v1897_v31 = vrot.slane %v1636_v28, 3  ;;  %v7325_v47 = vsel %vm6716_vm3, %v1543_v18, 0 }
 0x2c6   :  { %v7320_v26 = vpack.c.bf16 %v1495_v12, %v1494_v9  ;;  %1694 = vrot.lane.b32.xlu1 %v1639_v40, %s6389_s5  ;;  %v1955_v36 = vsel %vm821_vm4, %v1953_v46, %v1954_v39  ;;  %v1794_v27 = vor.u32 %v1793_v20, %v1792_v33  ;;  %v1895_v25 = vor.u32 %v1894_v61, %v1893_v11 }
 0x2c7   :  { %v1555_v16 = vrot.slane %v1553_v24, 6  ;;  %v1558_v34 = vrot.slane %v1556_v52, 7  ;;  %1974 = vrot.lane.b32.xlu0 %v1955_v36, %s6388_s3  ;;  %v1898_v49 = vor.u32 %v1897_v31, %v1896_v4  ;;  %v7333_v23 = vsel %vm6716_vm3, 0, %v7302_v10 }
 0x2c8   :  { %v1956_v59 = vrot.slane %v7300_v62, 3  ;;  %v1957_v18 = vrot.slane %v7325_v47, 3  ;;  %v1641_v28 = vshrl.u32 %v7300_v62, 16  ;;  %v1795_v42 = vsel %vm634_vm7, %v1789_v15, %v1794_v27 }
 0x2c9   :  { %v1732_v30 = vrot.slane %v7300_v62, 1  ;;  %v1733_v24 = vrot.slane %v7325_v47, 1  ;;  %v1643_v52 = vshll.u32 %v7300_v62, 16  ;;  %v1899_v46 = vsel %vm748_vm6, %v1895_v25, %v1898_v49 }
 0x2ca   :  { %1838 = vrot.lane.b32.xlu1 %v1795_v42, %s6390_s17  ;;  %v1648_v14 = vshll.u32 %v7325_v47, 16  ;;  %v1799_v9 = vshrl.u32 %v7325_v47, 16  ;;  %v1900_v35 = vrot.slane %v1641_v28, 2  ;;  %v1559_v41 = vor.u32 %v1558_v34, %v1555_v16 }
 0x2cb   :  { %v1561_v32 = vshrl.u32 %v7320_v26, 16  ;;  %1934 = vrot.lane.b32.xlu0 %v1899_v46, %s6389_s5  ;;  %v1901_v12 = vrot.slane %v1643_v52, 3  ;;  %v1645_v51 = vrot.slane %v1643_v52, 1  ;;  %v1958_v39 = vsel %vm821_vm4, %v1956_v59, %v1957_v18 }
 0x2cc   :  { %v1903_v21 = vrot.slane %v1799_v9, 2  ;;  %v1904_v3 = vrot.slane %v1648_v14, 3  ;;  %v7352_v55 = vsel %vm6716_vm3, %v7302_v10, 0  ;;  %v1734_v20 = vsel %vm609_vm10, %v1732_v30, %v1733_v24 }
 0x2cd   :  { %v1902_v11 = vor.u32 %v1901_v12, %v1900_v35  ;;  %v1646_v33 = vor.u32 %v1645_v51, %v1641_v28  ;;  %v1796_v61 = vrot.slane %v1641_v28, 1  ;;  %v1797_v40 = vrot.slane %v1643_v52, 2 }
 0x2ce   :  { %1976 = vrot.lane.b32.xlu1 %v1958_v39, %s6388_s3  ;;  %v1905_v4 = vor.u32 %v1904_v3, %v1903_v21  ;;  %v1801_v15 = vrot.slane %v1799_v9, 1  ;;  %v1802_v31 = vrot.slane %v1648_v14, 2  ;;  %v1564_v36 = vshll.u32 %v7320_v26, 16 }
 0x2cf   :  { %1752 = vrot.lane.b32.xlu0 %v1734_v20, %s6388_s3  ;;  %v1735_v27 = vrot.slane %v7333_v23, 1  ;;  %v1736_v10 = vrot.slane %v7352_v55, 1  ;;  %v1655_v25 = vshll.u32 %v7333_v23, 16  ;;  %v1650_v16 = vrot.slane %v1648_v14, 1 }
 0x2d0   :  { %v1798_v34 = vor.u32 %v1797_v40, %v1796_v61  ;;  %v1803_v49 = vor.u32 %v1802_v31, %v1801_v15  ;;  %v1653_v59 = vshrl.u32 %v7333_v23, 16  ;;  %v1906_v18 = vsel %vm748_vm6, %v1902_v11, %v1905_v4 }
 0x2d1   :  { %v1657_v28 = vrot.slane %v1655_v25, 1  ;;  %v1660_v42 = vshll.u32 %v7352_v55, 16  ;;  %v7366_v26 = vsel %vm6716_vm3, 0, %v1559_v41  ;;  %v1651_v30 = vsel %vm480_vm8, %v1646_v33, %v1650_v16 }
 0x2d2   :  { %1936 = vrot.lane.b32.xlu1 %v1906_v18, %s6389_s5  ;;  %v1808_v24 = vshrl.u32 %v7352_v55, 16  ;;  %v1563_v52 = vrot.slane %v1561_v32, 6  ;;  %v1566_v46 = vrot.slane %v1564_v36, 7  ;;  %v1737_v14 = vsel %vm609_vm10, %v1735_v27, %v1736_v10 }
 0x2d3   :  { %1696 = vrot.lane.b32.xlu0 %v1651_v30, %s6389_s5  ;;  %v1959_v9 = vrot.slane %v7333_v23, 3  ;;  %v1804_v35 = vsel %vm634_vm7, %v1798_v34, %v1803_v49  ;;  %v1960_v12 = vrot.slane %v7352_v55, 3  ;;  %v1805_v51 = vrot.slane %v1653_v59, 1 }
 0x2d4   :  { %v1806_v39 = vrot.slane %v1655_v25, 2  ;;  %v1658_v21 = vor.u32 %v1657_v28, %v1653_v59  ;;  %v1810_v3 = vrot.slane %v1808_v24, 1  ;;  %v1811_v20 = vrot.slane %v1660_v42, 2 }
 0x2d5   :  { %v1907_v11 = vrot.slane %v1653_v59, 2  ;;  %v1908_v32 = vrot.slane %v1655_v25, 3  ;;  %v1910_v33 = vrot.slane %v1808_v24, 2  ;;  %v1911_v61 = vrot.slane %v1660_v42, 3 }
 0x2d6   :  { %1754 = vrot.lane.b32.xlu1 %v1737_v14, %s6388_s3  ;;  %v7379_v4 = vsel %vm6716_vm3, %v1559_v41, 0  ;;  %v1662_v40 = vrot.slane %v1660_v42, 1  ;;  %v1567_v15 = vor.u32 %v1566_v46, %v1563_v52  ;;  %v1807_v31 = vor.u32 %v1806_v39, %v1805_v51 }
 0x2d7   :  { %1840 = vrot.lane.b32.xlu0 %v1804_v35, %s6390_s17  ;;  %v1665_v36 = vshrl.u32 %v7366_v26, 16  ;;  %v1667_v27 = vshll.u32 %v7366_v26, 16  ;;  %v1812_v16 = vor.u32 %v1811_v20, %v1810_v3  ;;  %v1672_v25 = vshll.u32 %v7379_v4, 16 }
 0x2d8   :  { %v1663_v10 = vsel %vm480_vm8, %v1658_v21, %v1662_v40  ;;  %v1817_v34 = vshrl.u32 %v7379_v4, 16  ;;  %v1961_v41 = vsel %vm821_vm4, %v1959_v9, %v1960_v12  ;;  %v1909_v49 = vor.u32 %v1908_v32, %v1907_v11 }
 0x2d9   :  { %v1912_v59 = vor.u32 %v1911_v61, %v1910_v33  ;;  %v1962_v18 = vrot.slane %v7366_v26, 3  ;;  %v1963_v28 = vrot.slane %v7379_v4, 3  ;;  %v7394_v42 = vsel %vm6716_vm3, 0, %v1567_v15 }
 0x2da   :  { %1698 = vrot.lane.b32.xlu1 %v1663_v10, %s6389_s5  ;;  %v1914_v30 = vrot.slane %v1665_v36, 2  ;;  %v1915_v24 = vrot.slane %v1667_v27, 3  ;;  %v1813_v52 = vsel %vm634_vm7, %v1807_v31, %v1812_v16  ;;  %v1917_v46 = vrot.slane %v1817_v34, 2 }
 0x2db   :  { %1978 = vrot.lane.b32.xlu0 %v1961_v41, %s6388_s3  ;;  %v1918_v14 = vrot.slane %v1672_v25, 3  ;;  %v1669_v35 = vrot.slane %v1667_v27, 1  ;;  %v1913_v9 = vsel %vm748_vm6, %v1909_v49, %v1912_v59  ;;  %v1738_v12 = vrot.slane %v7366_v26, 1 }
 0x2dc   :  { %v1739_v51 = vrot.slane %v7379_v4, 1  ;;  %v1964_v39 = vsel %vm821_vm4, %v1962_v18, %v1963_v28  ;;  %v7405_v21 = vsel %vm6716_vm3, %v1567_v15, 0  ;;  %v1916_v3 = vor.u32 %v1915_v24, %v1914_v30 }
 0x2dd   :  { %v1814_v20 = vrot.slane %v1665_v36, 1  ;;  %v1815_v11 = vrot.slane %v1667_v27, 2  ;;  %v1679_v32 = vshll.u32 %v7394_v42, 16  ;;  %v1919_v33 = vor.u32 %v1918_v14, %v1917_v46 }
 0x2de   :  { %1842 = vrot.lane.b32.xlu1 %v1813_v52, %s6390_s17  ;;  %v1670_v61 = vor.u32 %v1669_v35, %v1665_v36  ;;  %v1819_v40 = vrot.slane %v1817_v34, 1  ;;  %v1820_v31 = vrot.slane %v1672_v25, 2  ;;  %v1740_v10 = vsel %vm609_vm10, %v1738_v12, %v1739_v51 }
 0x2df   :  { %1938 = vrot.lane.b32.xlu0 %v1913_v9, %s6389_s5  ;;  %v1677_v16 = vshrl.u32 %v7394_v42, 16  ;;  %v1684_v41 = vshll.u32 %v7405_v21, 16  ;;  %v1826_v29 = vshrl.u32 %v7405_v21, 16  ;;  %v1674_v15 = vrot.slane %v1672_v25, 1 }
 0x2e0   :  { %v1741_v27 = vrot.slane %v7394_v42, 1  ;;  %v1742_v49 = vrot.slane %v7405_v21, 1  ;;  %v1681_v36 = vrot.slane %v1679_v32, 1  ;;  %v1920_v34 = vsel %vm748_vm6, %v1916_v3, %v1919_v33 }
 0x2e1   :  { %v1675_v59 = vsel %vm480_vm8, %v1670_v61, %v1674_v15  ;;  %v1816_v18 = vor.u32 %v1815_v11, %v1814_v20  ;;  %v1821_v28 = vor.u32 %v1820_v31, %v1819_v40  ;;  %v1921_v30 = vrot.slane %v1677_v16, 2 }
 0x2e2   :  { %1980 = vrot.lane.b32.xlu1 %v1964_v39, %s6388_s3  ;;  %v1922_v24 = vrot.slane %v1679_v32, 3  ;;  %v1924_v52 = vrot.slane %v1826_v29, 2  ;;  %v1925_v46 = vrot.slane %v1684_v41, 3  ;;  %v1743_v25 = vsel %vm609_vm10, %v1741_v27, %v1742_v49 }
 0x2e3   :  { %1756 = vrot.lane.b32.xlu0 %v1740_v10, %s6388_s3  ;;  %v1682_v14 = vor.u32 %v1681_v36, %v1677_v16  ;;  %v1823_v35 = vrot.slane %v1677_v16, 1  ;;  %v1824_v9 = vrot.slane %v1679_v32, 2  ;;  %v1828_v12 = vrot.slane %v1826_v29, 1 }
 0x2e4   :  { %v1829_v51 = vrot.slane %v1684_v41, 2  ;;  %v1822_v39 = vsel %vm634_vm7, %v1816_v18, %v1821_v28  ;;  %v1923_v3 = vor.u32 %v1922_v24, %v1921_v30  ;;  %v1926_v20 = vor.u32 %v1925_v46, %v1924_v52 }
 0x2e5   :  { %v1686_v11 = vrot.slane %v1684_v41, 1  ;;  %v1825_v61 = vor.u32 %v1824_v9, %v1823_v35  ;;  %v1965_v32 = vrot.slane %v7394_v42, 3  ;;  %v1966_v10 = vrot.slane %v7405_v21, 3 }
 0x2e6   :  { %1940 = vrot.lane.b32.xlu1 %v1920_v34, %s6389_s5  ;;  %v1830_v40 = vor.u32 %v1829_v51, %v1828_v12  ;;  %v1927_v31 = vsel %vm748_vm6, %v1923_v3, %v1926_v20  ;;  %v1848_v15 = vrot.slane %v7143_v2, 2  ;;  %v1849_v27 = vrot.slane %v7147_v44, 2 }
 0x2e7   :  { %1700 = vrot.lane.b32.xlu0 %v1675_v59, %s6389_s5  ;;  %v1687_v33 = vsel %vm480_vm8, %v1682_v14, %v1686_v11  ;;  %v1967_v29 = vsel %vm821_vm4, %v1965_v32, %v1966_v10  ;;  %v1851_v35 = vrot.slane %v7197_v0, 2  ;;  %v1852_v9 = vrot.slane %v7213_v58, 2 }
 0x2e8   :  { %v1831_v16 = vsel %vm634_vm7, %v1825_v61, %v1830_v40  ;;  %v1850_v36 = vsel %vm723_vm9, %v1848_v15, %v1849_v27  ;;  %v1854_v40 = vrot.slane %v7246_v48, 2  ;;  %vm5159_vm3 = vcmask 1042434  }
 0x2e9   :  { %vm5161_vm4 = vcmask 1043459   ;;  %vm5165_vm6 = vcmask 1045509   ;;  %vm5167_vm7 = vcmask 1046534  }
 0x2ea   :  { %1758 = vrot.lane.b32.xlu1 %v1743_v25, %s6388_s3 }
 0x2eb   :  { %1844 = vrot.lane.b32.xlu0 %v1822_v39, %s6390_s17  ;;  %v1853_v39 = vsel %vm723_vm9, %v1851_v35, %v1852_v9  ;;  %v1861_v35 = vrot.slane %v7325_v47, 2 }
 0x2ee   :  { %1702 = vrot.lane.b32.xlu1 %v1687_v33, %s6389_s5 }
 0x2ef   :  { %1942 = vrot.lane.b32.xlu0 %v1927_v31, %s6389_s5 }
 0x2f2   :  { %1846 = vrot.lane.b32.xlu1 %v1831_v16, %s6390_s17 }
 0x2f3   :  { %1982 = vrot.lane.b32.xlu0 %v1967_v29, %s6388_s3 }
 0x307   :  { %v1969_v41 = vpop.permute.xlu1 %1968 }
 0x30c   :  { %v1745_v49 = vpop.permute.xlu0 %1744 }
 0x315   :  { %v1929_v34 = vpop.permute.xlu1 %1928 }
 0x316   :  { %v2044_v59 = vsel %vm1984_vm11, %v1850_v36, %v1929_v34  ;;  %v1689_v28 = vpop.permute.xlu0 %1688 }
 0x317   :  { %v2067_v18 = vsel %vm846_vm5, %v2044_v59, %v1969_v41  ;;  %v1986_v30 = vsel %vm1984_vm11, %v7143_v2, %v1689_v28  ;;  %v1857_v59 = vrot.slane %v7267_v60, 2 }
 0x318   :  { %5245 = vmatprep.mubr.msk.bf16.mxu1 %vm2017_vm12, %v2067_v18  ;;  %v2002_v52 = vsel %vm846_vm5, %v1986_v30, %v1745_v49  ;;  %v1858_v18 = vrot.slane %v7292_v43, 2  ;;  %v1860_v43 = vrot.slane %v7300_v62, 2 }
 0x31a   :  { %v1747_v24 = vpop.permute.xlu1 %1746  ;;  %v1859_v30 = vsel %vm723_vm9, %v1857_v59, %v1858_v18  ;;  %v1862_v9 = vsel %vm723_vm9, %v1860_v43, %v1861_v35 }
 0x31f   :  { %v1833_v44 = vpop.permute.xlu0 %1832 }
 0x320   :  { %v2019_v46 = vsel %vm2017_vm12, %v2002_v52, %v1833_v44 }
 0x321   :  { %2243 = vmatmul.mubr.bf16.vlgmr.msra.gmra.mrb[32].mxu1 %v2019_v46 }
 0x322   :  { %v1691_v25 = vpop.permute.xlu1 %1690 }
 0x323   :  { %v1971_v14 = vpop.permute.xlu0 %1970  ;;  %v1988_v12 = vsel %vm1984_vm11, %v7197_v0, %v1691_v25  ;;  %v1855_v0 = vrot.slane %v7262_v53, 2 }
 0x324   :  { %v2004_v11 = vsel %vm846_vm5, %v1988_v12, %v1747_v24 }
 0x325   :  { %v1856_v31 = vsel %vm723_vm9, %v1854_v40, %v1855_v0  ;;  %v1863_v40 = vrot.slane %v7333_v23, 2  ;;  %v1864_v0 = vrot.slane %v7352_v55, 2  ;;  %v1866_v55 = vrot.slane %v7366_v26, 2 }
 0x328   :  { %v1835_v51 = vpop.permute.xlu1 %1834  ;;  %v1931_v2 = vpop.permute.xlu0 %1930 }
 0x329   :  { %v2047_v3 = vsel %vm1984_vm11, %v1853_v39, %v1931_v2  ;;  %v2022_v61 = vsel %vm2017_vm12, %v2004_v11, %v1835_v51 }
 0x32a   :  { %v2069_v20 = vsel %vm846_vm5, %v2047_v3, %v1971_v14 }
 0x32b   :  { %5246 = vmatprep.mubr.msk.bf16.mxu1 %vm2017_vm12, %v2069_v20 }
 0x32c   :  { %v1973_v33 = vpop.permute.xlu1 %1972  ;;  %2251 = vmatmul.mubr.bf16.gmra.mrb[36].mxu1 %v2022_v61  ;;  %v1749_v58 = vpop.permute.xlu0 %1748 }
 0x330   :  { %v1933_v32 = vpop.permute.xlu1 %1932 }
 0x331   :  { %v1693_v10 = vpop.permute.xlu0 %1692  ;;  %v2050_v16 = vsel %vm1984_vm11, %v1856_v31, %v1933_v32  ;;  %v1865_v32 = vsel %vm723_vm9, %v1863_v40, %v1864_v0 }
 0x332   :  { %v1990_v29 = vsel %vm1984_vm11, %v7246_v48, %v1693_v10  ;;  %v2071_v41 = vsel %vm846_vm5, %v2050_v16, %v1973_v33 }
 0x333   :  { %5247 = vmatprep.mubr.msk.bf16.mxu1 %vm2017_vm12, %v2071_v41  ;;  %v2006_v49 = vsel %vm846_vm5, %v1990_v29, %v1749_v58 }
 0x334   :  { %v1751_v15 = vpop.permute.xlu1 %1750 }
 0x335   :  { %v1837_v27 = vpop.permute.xlu0 %1836 }
 0x336   :  { %v2025_v36 = vsel %vm2017_vm12, %v2006_v49, %v1837_v27  ;;  %v1867_v49 = vrot.slane %v7379_v4, 2 }
 0x337   :  { %2259 = vmatmul.mubr.bf16.gmra.mrb[40].mxu1 %v2025_v36 }
 0x338   :  { %v1695_v53 = vpop.permute.xlu1 %1694  ;;  %v1868_v36 = vsel %vm723_vm9, %v1866_v55, %v1867_v49  ;;  %v5863_v55 = vld [vmem:[%s8501_s7 + $0x40] sm:$0xff]  }
 0x339   :  { %v1975_v34 = vpop.permute.xlu0 %1974  ;;  %v1992_v48 = vsel %vm1984_vm11, %v7267_v60, %v1695_v53 }
 0x33a   :  { %v2008_v46 = vsel %vm846_vm5, %v1992_v48, %v1751_v15 }
 0x33c   :  { %v1839_v28 = vpop.permute.xlu1 %1838 }
 0x33d   :  { %v1935_v24 = vpop.permute.xlu0 %1934  ;;  %v2028_v14 = vsel %vm2017_vm12, %v2008_v46, %v1839_v28  ;;  %v1870_v46 = vrot.slane %v7405_v21, 2  ;;  %v5856_v21 = vld [vmem:[%s8501_s7 + $0x8] sm:$0xff]  }
 0x33e   :  { %v2053_v52 = vsel %vm1984_vm11, %v1859_v30, %v1935_v24 }
 0x33f   :  { %v2073_v44 = vsel %vm846_vm5, %v2053_v52, %v1975_v34 }
 0x340   :  { %5248 = vmatprep.mubr.msk.bf16.mxu1 %vm2017_vm12, %v2073_v44  ;;  %v1977_v25 = vpop.permute.xlu1 %1976  ;;  %v1869_v44 = vrot.slane %v7394_v42, 2 }
 0x341   :  { %2267 = vmatmul.mubr.bf16.gmra.mrb[44].mxu1 %v2028_v14  ;;  %v1753_v60 = vpop.permute.xlu0 %1752 }
 0x342   :  { %v1871_v14 = vsel %vm723_vm9, %v1869_v44, %v1870_v46 }
 0x344   :  { %v1937_v12 = vpop.permute.xlu1 %1936 }
 0x345   :  { %v2056_v51 = vsel %vm1984_vm11, %v1862_v9, %v1937_v12  ;;  %v1697_v39 = vpop.permute.xlu0 %1696 }
 0x346   :  { %v1994_v2 = vsel %vm1984_vm11, %v7300_v62, %v1697_v39  ;;  %v2075_v3 = vsel %vm846_vm5, %v2056_v51, %v1977_v25  ;;  %v5857_v39 = vld [vmem:[%s8501_s7 + $0x10] sm:$0xff]  }
 0x347   :  { %5249 = vmatprep.mubr.msk.bf16.mxu1 %vm2017_vm12, %v2075_v3  ;;  %v2010_v33 = vsel %vm846_vm5, %v1994_v2, %v1753_v60  ;;  %v5858_v2 = vld [vmem:[%s8501_s7 + $0x18] sm:$0xff]   ;;  %v5859_v3 = vld [vmem:[%s8501_s7 + $0x20] sm:$0xff]  }
 0x348   :  { %v1755_v20 = vpop.permute.xlu1 %1754 }
 0x349   :  { %v1841_v11 = vpop.permute.xlu0 %1840 }
 0x34a   :  { %v2031_v47 = vsel %vm2017_vm12, %v2010_v33, %v1841_v11 }
 0x34b   :  { %2275 = vmatmul.mubr.bf16.gmra.mrb[48].mxu1 %v2031_v47 }
 0x34c   :  { %v1699_v61 = vpop.permute.xlu1 %1698 }
 0x34d   :  { %v1979_v58 = vpop.permute.xlu0 %1978  ;;  %v1996_v62 = vsel %vm1984_vm11, %v7333_v23, %v1699_v61  ;;  %v5860_v61 = vld [vmem:[%s8501_s7 + $0x28] sm:$0xff]  }
 0x34e   :  { %v2012_v41 = vsel %vm846_vm5, %v1996_v62, %v1755_v20  ;;  %v7535_v20 = vld [vmem:[%s8502_s6] ss:$0 sm:$0xff] }
 0x350   :  { %v1843_v31 = vpop.permute.xlu1 %1842 }
 0x351   :  { %v1939_v10 = vpop.permute.xlu0 %1938  ;;  %v2034_v27 = vsel %vm2017_vm12, %v2012_v41, %v1843_v31 }
 0x352   :  { %v2059_v16 = vsel %vm1984_vm11, %v1865_v32, %v1939_v10  ;;  %v5861_v10 = vld [vmem:[%s8501_s7 + $0x30] sm:$0xff]  }
 0x353   :  { %v2077_v29 = vsel %vm846_vm5, %v2059_v16, %v1979_v58 }
 0x354   :  { %5250 = vmatprep.mubr.msk.bf16.mxu1 %vm2017_vm12, %v2077_v29  ;;  %v1981_v15 = vpop.permute.xlu1 %1980  ;;  %v5862_v29 = vld [vmem:[%s8501_s7 + $0x38] sm:$0xff]  }
 0x355   :  { %2283 = vmatmul.mubr.bf16.gmra.mrb[52].mxu1 %v2034_v27  ;;  %v1757_v23 = vpop.permute.xlu0 %1756 }
 0x358   :  { %v1941_v53 = vpop.permute.xlu1 %1940 }
 0x359   :  { %v2062_v34 = vsel %vm1984_vm11, %v1868_v36, %v1941_v53  ;;  %v1701_v59 = vpop.permute.xlu0 %1700 }
 0x35a   :  { %v1998_v18 = vsel %vm1984_vm11, %v7366_v26, %v1701_v59  ;;  %v2079_v48 = vsel %vm846_vm5, %v2062_v34, %v1981_v15 }
 0x35b   :  { %5251 = vmatprep.mubr.msk.bf16.mxu1 %vm2017_vm12, %v2079_v48  ;;  %v2014_v24 = vsel %vm846_vm5, %v1998_v18, %v1757_v23  ;;  %v5864_v48 = vld [vmem:[%s8501_s7 + $0x48] sm:$0xff]  }
 0x35c   :  { %v1759_v28 = vpop.permute.xlu1 %1758 }
 0x35d   :  { %v1845_v30 = vpop.permute.xlu0 %1844 }
 0x35e   :  { %v2037_v4 = vsel %vm2017_vm12, %v2014_v24, %v1845_v30 }
 0x35f   :  { %2291 = vmatmul.mubr.bf16.gmra.mrb[56].mxu1 %v2037_v4 }
 0x360   :  { %v1703_v52 = vpop.permute.xlu1 %1702 }
 0x361   :  { %v2000_v25 = vsel %vm1984_vm11, %v7394_v42, %v1703_v52  ;;  %v1943_v26 = vpop.permute.xlu0 %1942  ;;  %v5855_v42 = vld [vmem:[%s8501_s7] sm:$0xff]   ;;  %v5865_v52 = vld [vmem:[%s8501_s7 + $0x50] sm:$0xff]  }
 0x362   :  { %v2016_v35 = vsel %vm846_vm5, %v2000_v25, %v1759_v28  ;;  %v2065_v60 = vsel %vm1984_vm11, %v1871_v14, %v1943_v26  ;;  %2701 = vmatpush1.bf16.msra.mxu0 %v5855_v42  ;;  %v5866_v14 = vld [vmem:[%s8501_s7 + $0x58] sm:$0xff]  }
 0x363   :  { %2702 = vmatprep.subr.bf16.mxu0 %v6387_v17 }
 0x364   :  { %v1847_v43 = vpop.permute.xlu1 %1846 }
 0x365   :  { %v1983_v9 = vpop.permute.xlu0 %1982  ;;  %v2040_v12 = vsel %vm2017_vm12, %v2016_v35, %v1847_v43 }
 0x366   :  { %v2081_v51 = vsel %vm846_vm5, %v2065_v60, %v1983_v9  ;;  %2703 = vmatpush1.bf16.msra.mxu0 %v5856_v21 }
 0x367   :  { %5252 = vmatprep.mubr.msk.bf16.mxu1 %vm2017_vm12, %v2081_v51  ;;  %2704 = vmatprep.subr.bf16.mxu0 %v6387_v17 }
 0x368   :  { %2299 = vmatmul.mubr.bf16.gmra.mrb[60].mxu1 %v2040_v12 }
 0x36a   :  { %2705 = vmatpush1.bf16.msra.mxu0 %v5857_v39 }
 0x36b   :  { %2706 = vmatprep.subr.bf16.mxu0 %v6387_v17 }
 0x36e   :  { %2707 = vmatpush1.bf16.msra.mxu0 %v5858_v2 }
 0x36f   :  { %2708 = vmatprep.subr.bf16.mxu0 %v6387_v17 }
 0x372   :  { %2709 = vmatpush1.bf16.msra.mxu0 %v5859_v3 }
 0x373   :  { %2710 = vmatprep.subr.bf16.mxu0 %v6387_v17 }
 0x376   :  { %2711 = vmatpush1.bf16.msra.mxu0 %v5860_v61 }
 0x377   :  { %2712 = vmatprep.subr.bf16.mxu0 %v6387_v17 }
 0x37a   :  { %2713 = vmatpush1.bf16.msra.mxu0 %v5861_v10 }
 0x37b   :  { %2714 = vmatprep.subr.bf16.mxu0 %v6387_v17 }
 0x37e   :  { %2715 = vmatpush1.bf16.msra.mxu0 %v5862_v29 }
 0x37f   :  { %2716 = vmatprep.subr.bf16.mxu0 %v6387_v17 }
 0x382   :  { %2717 = vmatpush1.bf16.msra.mxu0 %v5863_v55 }
 0x383   :  { %2718 = vmatprep.subr.bf16.mxu0 %v6387_v17 }
 0x386   :  { %2719 = vmatpush1.bf16.msra.mxu0 %v5864_v48 }
 0x387   :  { %2720 = vmatprep.subr.bf16.mxu0 %v6387_v17 }
 0x38a   :  { %2721 = vmatpush1.bf16.msra.mxu0 %v5865_v52 }
 0x38b   :  { %2722 = vmatprep.subr.bf16.mxu0 %v6387_v17 }
 0x38e   :  { %2723 = vmatpush1.bf16.msra.mxu0 %v5866_v14 }
 0x3f4   :  { %v2244_v11 = vpop.f32.mrb[32].mxu1 }
 0x3f5   :  { %v2314_v33 = vadd.f32 %v7535_v20, %v2244_v11  ;;  %v2246_v47 = vpop.f32.mrb[33].mxu1 }
 0x3f6   :  { %v2247_v58 = vpop.f32.mrb[34].mxu1 }
 0x3f7   :  { %v2330_v40 = vsub.f32 0.0, %v2314_v33  ;;  %v2315_v0 = vadd.f32 %v7535_v20, %v2247_v58  ;;  %v2249_v62 = vpop.f32.mrb[35].mxu1 }
 0x3f9   :  { %v2346_v31 = vmul.f32 1.442695, %v2330_v40  ;;  %v2331_v32 = vsub.f32 0.0, %v2315_v0 }
 0x3fb   :  { %6067 = vpow2.f32 %v2346_v31  ;;  %v2348_v16 = vmul.f32 1.442695, %v2331_v32 }
 0x3fd   :  { %6069 = vpow2.f32 %v2348_v16 }
 0x3ff   :  { %v2252_v41 = vpop.f32.mrb[36].mxu1 }
 0x400   :  { %v2316_v15 = vadd.f32 %v7535_v20, %v2252_v41  ;;  %v2254_v27 = vpop.f32.mrb[37].mxu1 }
 0x401   :  { %v2255_v49 = vpop.f32.mrb[38].mxu1 }
 0x402   :  { %v2332_v23 = vsub.f32 0.0, %v2316_v15  ;;  %v2317_v36 = vadd.f32 %v7535_v20, %v2255_v49  ;;  %v2257_v53 = vpop.f32.mrb[39].mxu1 }
 0x404   :  { %v2350_v59 = vmul.f32 1.442695, %v2332_v23  ;;  %v2333_v18 = vsub.f32 0.0, %v2317_v36 }
 0x405   :  { %v6068_v34 = vpop.eup %6067 }
 0x406   :  { %v2378_v28 = vadd.f32 1.0, %v6068_v34  ;;  %6071 = vpow2.f32 %v2350_v59  ;;  %v2352_v24 = vmul.f32 1.442695, %v2333_v18 }
 0x407   :  { %v6070_v30 = vpop.eup %6069 }
 0x408   :  { %6073 = vrcp.f32 %v2378_v28  ;;  %v2379_v4 = vadd.f32 1.0, %v6070_v30 }
 0x409   :  { %6075 = vpow2.f32 %v2352_v24 }
 0x40a   :  { %6077 = vrcp.f32 %v2379_v4  ;;  %v2260_v44 = vpop.f32.mrb[40].mxu1 }
 0x40b   :  { %v2318_v46 = vadd.f32 %v7535_v20, %v2260_v44  ;;  %v2262_v25 = vpop.f32.mrb[41].mxu1 }
 0x40c   :  { %v2263_v26 = vpop.f32.mrb[42].mxu1 }
 0x40d   :  { %v2334_v43 = vsub.f32 0.0, %v2318_v46  ;;  %v2319_v35 = vadd.f32 %v7535_v20, %v2263_v26  ;;  %v2265_v60 = vpop.f32.mrb[43].mxu1 }
 0x40f   :  { %v2354_v9 = vmul.f32 1.442695, %v2334_v43  ;;  %v2335_v12 = vsub.f32 0.0, %v2319_v35 }
 0x410   :  { %v6072_v51 = vpop.eup %6071 }
 0x411   :  { %v2380_v21 = vadd.f32 1.0, %v6072_v51  ;;  %6079 = vpow2.f32 %v2354_v9  ;;  %v2356_v39 = vmul.f32 1.442695, %v2335_v12 }
 0x412   :  { %v6074_v42 = vpop.eup %6073 }
 0x413   :  { %v6076_v2 = vpop.eup %6075  ;;  %6081 = vrcp.f32 %v2380_v21  ;;  %v2410_v47 = vmul.f32 %v6074_v42, %v6700_v6 }
 0x414   :  { %v6078_v3 = vpop.eup %6077  ;;  %v2381_v11 = vadd.f32 1.0, %v6076_v2  ;;  %6083 = vpow2.f32 %v2356_v39  ;;  %v2268_v33 = vpop.f32.mrb[44].mxu1 }
 0x415   :  { %v2411_v61 = vmul.f32 %v6078_v3, %v6693_v1  ;;  %v2320_v17 = vadd.f32 %v7535_v20, %v2268_v33  ;;  %v2270_v58 = vpop.f32.mrb[45].mxu1 }
 0x416   :  { %6085 = vrcp.f32 %v2381_v11  ;;  %v2271_v40 = vpop.f32.mrb[46].mxu1 }
 0x417   :  { %v2426_v0 = vpack.c.bf16 %v2411_v61, %v2410_v47  ;;  %v2336_v62 = vsub.f32 0.0, %v2320_v17  ;;  %v2321_v31 = vadd.f32 %v7535_v20, %v2271_v40  ;;  %v2273_v32 = vpop.f32.mrb[47].mxu1 }
 0x419   :  { %v2442_v10 = vrot.slane %v2426_v0, 7  ;;  %v2358_v16 = vmul.f32 1.442695, %v2336_v62  ;;  %v2337_v29 = vsub.f32 0.0, %v2321_v31 }
 0x41b   :  { %v7577_v41 = vsel %vm2450_vm13, 0, %v2442_v10  ;;  %v2468_v6 = vsel %vm2450_vm13, %v2442_v10, 0  ;;  %v6080_v1 = vpop.eup %6079  ;;  %6087 = vpow2.f32 %v2358_v16  ;;  %v2360_v15 = vmul.f32 1.442695, %v2337_v29 }
 0x41c   :  { %v2532_v27 = vrot.slane %v7577_v41, 2  ;;  %v2533_v55 = vrot.slane %v2468_v6, 2  ;;  %v2382_v49 = vadd.f32 1.0, %v6080_v1  ;;  %v2492_v23 = vrot.slane %v7577_v41, 1 }
 0x41d   :  { %v2493_v36 = vrot.slane %v2468_v6, 1  ;;  %v6082_v53 = vpop.eup %6081  ;;  %6089 = vpow2.f32 %v2360_v15 }
 0x41e   :  { %v2534_v34 = vsel %vm723_vm9, %v2532_v27, %v2533_v55  ;;  %v6084_v59 = vpop.eup %6083  ;;  %v2276_v18 = vpop.f32.mrb[48].mxu1  ;;  %6091 = vrcp.f32 %v2382_v49  ;;  %v2412_v44 = vmul.f32 %v6082_v53, %v6710_v19 }
 0x41f   :  { %5266 = vmatprep.mubr.msk.bf16.mxu0 %vm846_vm5, %v2534_v34  ;;  %v2494_v48 = vsel %vm609_vm10, %v2492_v23, %v2493_v36  ;;  %v2383_v30 = vadd.f32 1.0, %v6084_v59  ;;  %v2322_v24 = vadd.f32 %v7535_v20, %v2276_v18  ;;  %v2278_v4 = vpop.f32.mrb[49].mxu1 }
 0x420   :  { %v6086_v28 = vpop.eup %6085  ;;  %2516 = vrot.lane.b32.xlu0 %v2494_v48, %s6388_s3  ;;  %v2279_v52 = vpop.f32.mrb[50].mxu1 }
 0x421   :  { %v2413_v46 = vmul.f32 %v6086_v28, %v6706_v13  ;;  %6093 = vrcp.f32 %v2383_v30  ;;  %v2338_v25 = vsub.f32 0.0, %v2322_v24  ;;  %v2323_v26 = vadd.f32 %v7535_v20, %v2279_v52  ;;  %v2281_v14 = vpop.f32.mrb[51].mxu1 }
 0x423   :  { %v2427_v43 = vpack.c.bf16 %v2413_v46, %v2412_v44  ;;  %v2362_v35 = vmul.f32 1.442695, %v2338_v25  ;;  %v2339_v60 = vsub.f32 0.0, %v2323_v26 }
 0x425   :  { %v2443_v9 = vrot.slane %v2427_v43, 7  ;;  %v6088_v12 = vpop.eup %6087  ;;  %6095 = vpow2.f32 %v2362_v35  ;;  %v2364_v51 = vmul.f32 1.442695, %v2339_v60 }
 0x426   :  { %v2384_v42 = vadd.f32 1.0, %v6088_v12 }
 0x427   :  { %v7591_v21 = vsel %vm2450_vm13, 0, %v2443_v9  ;;  %v7594_v19 = vsel %vm2450_vm13, %v2443_v9, 0  ;;  %v6090_v13 = vpop.eup %6089  ;;  %6097 = vpow2.f32 %v2364_v51 }
 0x428   :  { %v2495_v39 = vrot.slane %v7591_v21, 1  ;;  %v2496_v2 = vrot.slane %v7594_v19, 1  ;;  %6099 = vrcp.f32 %v2384_v42  ;;  %v2385_v3 = vadd.f32 1.0, %v6090_v13  ;;  %v2284_v11 = vpop.f32.mrb[52].mxu1  ;;  %v6092_v33 = vpop.eup %6091 }
 0x429   :  { %v2324_v47 = vadd.f32 %v7535_v20, %v2284_v11  ;;  %v2286_v61 = vpop.f32.mrb[53].mxu1  ;;  %v2414_v32 = vmul.f32 %v6092_v33, %v6724_v38 }
 0x42a   :  { %v2497_v17 = vsel %vm609_vm10, %v2495_v39, %v2496_v2  ;;  %6101 = vrcp.f32 %v2385_v3  ;;  %v2287_v58 = vpop.f32.mrb[54].mxu1 }
 0x42b   :  { %2518 = vrot.lane.b32.xlu1 %v2497_v17, %s6388_s3  ;;  %v6094_v40 = vpop.eup %6093  ;;  %v2340_v0 = vsub.f32 0.0, %v2324_v47  ;;  %v2325_v62 = vadd.f32 %v7535_v20, %v2287_v58  ;;  %v2289_v31 = vpop.f32.mrb[55].mxu1 }
 0x42c   :  { %v2415_v10 = vmul.f32 %v6094_v40, %v6721_v45 }
 0x42d   :  { %v2366_v16 = vmul.f32 1.442695, %v2340_v0  ;;  %v2341_v29 = vsub.f32 0.0, %v2325_v62 }
 0x42e   :  { %v2428_v6 = vpack.c.bf16 %v2415_v10, %v2414_v32 }
 0x42f   :  { %v6096_v1 = vpop.eup %6095  ;;  %6103 = vpow2.f32 %v2366_v16  ;;  %v2368_v15 = vmul.f32 1.442695, %v2341_v29 }
 0x430   :  { %v2386_v27 = vadd.f32 1.0, %v6096_v1  ;;  %v2444_v55 = vrot.slane %v2428_v6, 7 }
 0x431   :  { %v6098_v49 = vpop.eup %6097  ;;  %6105 = vpow2.f32 %v2368_v15 }
 0x432   :  { %v6100_v23 = vpop.eup %6099  ;;  %6107 = vrcp.f32 %v2386_v27  ;;  %v2387_v36 = vadd.f32 1.0, %v6098_v49  ;;  %v2292_v53 = vpop.f32.mrb[56].mxu1  ;;  %v7605_v34 = vsel %vm2450_vm13, 0, %v2444_v55  ;;  %v7608_v38 = vsel %vm2450_vm13, %v2444_v55, 0 }
 0x433   :  { %v2326_v45 = vadd.f32 %v7535_v20, %v2292_v53  ;;  %v2294_v59 = vpop.f32.mrb[57].mxu1  ;;  %v2498_v18 = vrot.slane %v7605_v34, 1  ;;  %v2499_v48 = vrot.slane %v7608_v38, 1  ;;  %v2416_v24 = vmul.f32 %v6100_v23, %v6746_v63 }
 0x434   :  { %v6102_v28 = vpop.eup %6101  ;;  %6109 = vrcp.f32 %v2387_v36  ;;  %v2295_v30 = vpop.f32.mrb[58].mxu1 }
 0x435   :  { %v2342_v4 = vsub.f32 0.0, %v2326_v45  ;;  %v2327_v52 = vadd.f32 %v7535_v20, %v2295_v30  ;;  %v2500_v44 = vsel %vm609_vm10, %v2498_v18, %v2499_v48  ;;  %v2297_v46 = vpop.f32.mrb[59].mxu1  ;;  %v2417_v25 = vmul.f32 %v6102_v28, %v6737_v50 }
 0x436   :  { %2520 = vrot.lane.b32.xlu0 %v2500_v44, %s6388_s3 }
 0x437   :  { %v2370_v26 = vmul.f32 1.442695, %v2342_v4  ;;  %v2343_v14 = vsub.f32 0.0, %v2327_v52  ;;  %v2429_v43 = vpack.c.bf16 %v2417_v25, %v2416_v24 }
 0x439   :  { %v6104_v35 = vpop.eup %6103  ;;  %6111 = vpow2.f32 %v2370_v26  ;;  %v2372_v60 = vmul.f32 1.442695, %v2343_v14  ;;  %v2445_v9 = vrot.slane %v2429_v43, 7 }
 0x43a   :  { %v2388_v12 = vadd.f32 1.0, %v6104_v35 }
 0x43b   :  { %v6106_v51 = vpop.eup %6105  ;;  %6113 = vpow2.f32 %v2372_v60  ;;  %v2300_v63 = vpop.f32.mrb[60].mxu1  ;;  %v7619_v42 = vsel %vm2450_vm13, 0, %v2445_v9  ;;  %v7622_v13 = vsel %vm2450_vm13, %v2445_v9, 0 }
 0x43c   :  { %v6108_v50 = vpop.eup %6107  ;;  %6115 = vrcp.f32 %v2388_v12  ;;  %v2389_v39 = vadd.f32 1.0, %v6106_v51  ;;  %v2328_v2 = vadd.f32 %v7535_v20, %v2300_v63  ;;  %v2302_v3 = vpop.f32.mrb[61].mxu1  ;;  %v2501_v11 = vrot.slane %v7619_v42, 1 }
 0x43d   :  { %v2303_v33 = vpop.f32.mrb[62].mxu1  ;;  %v2502_v47 = vrot.slane %v7622_v13, 1  ;;  %v2418_v62 = vmul.f32 %v6108_v50, %v6773_v22 }
 0x43e   :  { %v6110_v61 = vpop.eup %6109  ;;  %6117 = vrcp.f32 %v2389_v39  ;;  %v2344_v17 = vsub.f32 0.0, %v2328_v2  ;;  %v2329_v58 = vadd.f32 %v7535_v20, %v2303_v33  ;;  %v2305_v40 = vpop.f32.mrb[63].mxu1  ;;  %v5869_v33 = vld [vmem:[%s8503_s9 + $0x80] sm:$0xff]  }
 0x43f   :  { %v2503_v0 = vsel %vm609_vm10, %v2501_v11, %v2502_v47  ;;  %v2419_v31 = vmul.f32 %v6110_v61, %v6749_v8  ;;  %v5868_v11 = vld [vmem:[%s8503_s9] sm:$0xff]   ;;  %5713 = vmatprep.subr.bf16.mxu0 %v5869_v33 }
 0x440   :  { %v2374_v32 = vmul.f32 1.442695, %v2344_v17  ;;  %v2345_v10 = vsub.f32 0.0, %v2329_v58  ;;  %2522 = vrot.lane.b32.xlu1 %v2503_v0, %s6388_s3  ;;  %v2535_v0 = vrot.slane %v7591_v21, 2 }
 0x441   :  { %v2430_v16 = vpack.c.bf16 %v2419_v31, %v2418_v62  ;;  %v2536_v62 = vrot.slane %v7594_v19, 2 }
 0x442   :  { %6119 = vpow2.f32 %v2374_v32  ;;  %v2376_v29 = vmul.f32 1.442695, %v2345_v10 }
 0x443   :  { %v6112_v6 = vpop.eup %6111  ;;  %v2446_v1 = vrot.slane %v2430_v16, 7  ;;  %v2537_v10 = vsel %vm723_vm9, %v2535_v0, %v2536_v62  ;;  %v2538_v16 = vrot.slane %v7605_v34, 2 }
 0x444   :  { %v2390_v15 = vadd.f32 1.0, %v6112_v6  ;;  %6121 = vpow2.f32 %v2376_v29  ;;  %v2539_v29 = vrot.slane %v7608_v38, 2 }
 0x445   :  { %v6114_v27 = vpop.eup %6113  ;;  %v7633_v20 = vsel %vm2450_vm13, 0, %v2446_v1  ;;  %v7636_v55 = vsel %vm2450_vm13, %v2446_v1, 0 }
 0x446   :  { %v6116_v22 = vpop.eup %6115  ;;  %6123 = vrcp.f32 %v2390_v15  ;;  %v2391_v8 = vadd.f32 1.0, %v6114_v27  ;;  %v2504_v49 = vrot.slane %v7633_v20, 1  ;;  %v2505_v23 = vrot.slane %v7636_v55, 1 }
 0x447   :  { %v2420_v45 = vmul.f32 %v6116_v22, %v6794_v56  ;;  %v2540_v19 = vsel %vm723_vm9, %v2538_v16, %v2539_v29  ;;  %v2542_v15 = vrot.slane %v7622_v13, 2 }
 0x448   :  { %v6118_v36 = vpop.eup %6117  ;;  %6125 = vrcp.f32 %v2391_v8  ;;  %v2506_v53 = vsel %vm609_vm10, %v2504_v49, %v2505_v23  ;;  %v2545_v8 = vrot.slane %v7636_v55, 2 }
 0x449   :  { %2524 = vrot.lane.b32.xlu0 %v2506_v53, %s6388_s3  ;;  %v2421_v59 = vmul.f32 %v6118_v36, %v6790_v37 }
 0x44b   :  { %v2431_v18 = vpack.c.bf16 %v2421_v59, %v2420_v45 }
 0x44c   :  { %v6120_v48 = vpop.eup %6119 }
 0x44d   :  { %v2392_v28 = vadd.f32 1.0, %v6120_v48  ;;  %v2447_v30 = vrot.slane %v2431_v18, 7 }
 0x44e   :  { %v6122_v24 = vpop.eup %6121 }
 0x44f   :  { %6127 = vrcp.f32 %v2392_v28  ;;  %v2393_v4 = vadd.f32 1.0, %v6122_v24  ;;  %v7645_v52 = vsel %vm2450_vm13, 0, %v2447_v30  ;;  %v7648_v44 = vsel %vm2450_vm13, %v2447_v30, 0 }
 0x450   :  { %v6124_v46 = vpop.eup %6123  ;;  %v2507_v25 = vrot.slane %v7645_v52, 1  ;;  %v2508_v56 = vrot.slane %v7648_v44, 1  ;;  %v2548_v36 = vrot.slane %v7648_v44, 2 }
 0x451   :  { %6129 = vrcp.f32 %v2393_v4  ;;  %v2422_v14 = vmul.f32 %v6124_v46, %v6809_v7  ;;  %v5867_v7 = vld [vmem:[%s8503_s9 + $0x40] sm:$0xff]  }
 0x452   :  { %v6126_v37 = vpop.eup %6125  ;;  %v2509_v26 = vsel %vm609_vm10, %v2507_v25, %v2508_v56  ;;  %5447 = vmatprep.subr.bf16.mxu1 %v5867_v7  ;;  %v5871_v56 = vld [vmem:[%s8503_s9 + $0x8] sm:$0xff]   ;;  %v5884_v7 = vld [vmem:[%s8503_s9 + $0x70] sm:$0xff]  }
 0x453   :  { %2526 = vrot.lane.b32.xlu1 %v2509_v26, %s6388_s3  ;;  %v2423_v43 = vmul.f32 %v6126_v37, %v6806_v5  ;;  %5448 = vmatpush3.bf16.msra.mxu1 %v5868_v11  ;;  %v5872_v37 = vld [vmem:[%s8503_s9 + $0x88] sm:$0xff]   ;;  %v5873_v26 = vld [vmem:[%s8503_s9 + $0x50] sm:$0xff]   ;;  %v5888_v11 = vld [vmem:[%s8503_s9 + $0x38] sm:$0xff]  }
 0x455   :  { %v2432_v35 = vpack.c.bf16 %v2423_v43, %v2422_v14  ;;  %v5874_v14 = vld [vmem:[%s8503_s9 + $0x10] sm:$0xff]  }
 0x456   :  { %v5875_v43 = vld [vmem:[%s8503_s9 + $0x90] sm:$0xff]  }
 0x457   :  { %v2448_v60 = vrot.slane %v2432_v35, 7  ;;  %v5876_v35 = vld [vmem:[%s8503_s9 + $0x58] sm:$0xff]  }
 0x459   :  { %v6128_v9 = vpop.eup %6127  ;;  %v7657_v12 = vsel %vm2450_vm13, 0, %v2448_v60  ;;  %v7660_v51 = vsel %vm2450_vm13, %v2448_v60, 0  ;;  %v5877_v60 = vld [vmem:[%s8503_s9 + $0x18] sm:$0xff]  }
 0x45a   :  { %v2510_v63 = vrot.slane %v7657_v12, 1  ;;  %v2511_v50 = vrot.slane %v7660_v51, 1  ;;  %v2424_v2 = vmul.f32 %v6128_v9, %v6856_v57  ;;  %v2551_v59 = vrot.slane %v7660_v51, 2  ;;  %v5878_v9 = vld [vmem:[%s8503_s9 + $0x98] sm:$0xff]   ;;  %v5880_v51 = vld [vmem:[%s8503_s9 + $0x20] sm:$0xff]  }
 0x45b   :  { %v6130_v39 = vpop.eup %6129 }
 0x45c   :  { %v2512_v5 = vsel %vm609_vm10, %v2510_v63, %v2511_v50  ;;  %v2425_v3 = vmul.f32 %v6130_v39, %v6846_v54  ;;  %v5881_v63 = vld [vmem:[%s8503_s9 + $0xa0] sm:$0xff]   ;;  %v5882_v50 = vld [vmem:[%s8503_s9 + $0x68] sm:$0xff]  }
 0x45d   :  { %2528 = vrot.lane.b32.xlu0 %v2512_v5, %s6388_s3  ;;  %v5883_v39 = vld [vmem:[%s8503_s9 + $0x28] sm:$0xff]  }
 0x45e   :  { %v2433_v47 = vpack.c.bf16 %v2425_v3, %v2424_v2  ;;  %v5886_v5 = vld [vmem:[%s8503_s9 + $0xa8] sm:$0xff]   ;;  %v5885_v2 = vld [vmem:[%s8503_s9 + $0x30] sm:$0xff]   ;;  %v5887_v3 = vld [vmem:[%s8503_s9 + $0x78] sm:$0xff]  }
 0x460   :  { %v2449_v61 = vrot.slane %v2433_v47, 7  ;;  %v5890_v47 = vld [vmem:[%s8503_s9 + $0xb8] sm:$0xff]  }
 0x462   :  { %v2467_v17 = vsel %vm2450_vm13, 0, %v2449_v61  ;;  %v2475_v57 = vsel %vm2450_vm13, %v2449_v61, 0  ;;  %v7788_v61 = vld [vmem:[%s8504_s8] ss:$0 sm:$0xff] }
 0x463   :  { %v2513_v54 = vrot.slane %v2467_v17, 1  ;;  %v2514_v58 = vrot.slane %v2475_v57, 1  ;;  %v2553_v30 = vrot.slane %v2467_v17, 2 }
 0x465   :  { %v2515_v40 = vsel %vm609_vm10, %v2513_v54, %v2514_v58 }
 0x466   :  { %2530 = vrot.lane.b32.xlu1 %v2515_v40, %s6388_s3 }
 0x492   :  { %v2517_v31 = vpop.permute.xlu0 %2516 }
 0x493   :  { %v2557_v32 = vsel %vm846_vm5, %v7577_v41, %v2517_v31  ;;  %v2541_v41 = vrot.slane %v7619_v42, 2 }
 0x494   :  { %2733 = vmatmul.mubr.bf16.vlgmr.msra.gmra.mrb[48].mxu0 %v2557_v32 }
 0x495   :  { %5267 = vmatprep.mubr.msk.bf16.mxu0 %vm846_vm5, %v2537_v10  ;;  %5714 = vmatpush3.bf16.msra.mxu0 %v5869_v33  ;;  %v2543_v38 = vsel %vm723_vm9, %v2541_v41, %v2542_v15  ;;  %v5889_v33 = vld [vmem:[%s8503_s9 + $0xb0] sm:$0xff]  }
 0x496   :  { %5715 = vmatprep.subr.bf16.mxu0 %v5872_v37 }
 0x499   :  { %5716 = vmatpush3.bf16.msra.mxu0 %v5872_v37 }
 0x49a   :  { %5717 = vmatprep.subr.bf16.mxu0 %v5875_v43 }
 0x49d   :  { %v2519_v6 = vpop.permute.xlu1 %2518  ;;  %5718 = vmatpush3.bf16.msra.mxu0 %v5875_v43 }
 0x49e   :  { %v2560_v1 = vsel %vm846_vm5, %v7591_v21, %v2519_v6  ;;  %v2544_v21 = vrot.slane %v7633_v20, 2  ;;  %5719 = vmatprep.subr.bf16.mxu0 %v5878_v9 }
 0x49f   :  { %2741 = vmatmul.mubr.bf16.gmra.mrb[52].mxu0 %v2560_v1 }
 0x4a0   :  { %5268 = vmatprep.mubr.msk.bf16.mxu0 %vm846_vm5, %v2540_v19  ;;  %v2546_v13 = vsel %vm723_vm9, %v2544_v21, %v2545_v8 }
 0x4a1   :  { %5720 = vmatpush3.bf16.msra.mxu0 %v5878_v9 }
 0x4a2   :  { %5721 = vmatprep.subr.bf16.mxu0 %v5881_v63 }
 0x4a5   :  { %5722 = vmatpush3.bf16.msra.mxu0 %v5881_v63 }
 0x4a6   :  { %5723 = vmatprep.subr.bf16.mxu0 %v5886_v5 }
 0x4a8   :  { %v2521_v27 = vpop.permute.xlu0 %2520 }
 0x4a9   :  { %v2563_v22 = vsel %vm846_vm5, %v7605_v34, %v2521_v27  ;;  %v2547_v34 = vrot.slane %v7645_v52, 2  ;;  %5724 = vmatpush3.bf16.msra.mxu0 %v5886_v5 }
 0x4aa   :  { %2749 = vmatmul.mubr.bf16.gmra.mrb[56].mxu0 %v2563_v22  ;;  %5725 = vmatprep.subr.bf16.mxu0 %v5889_v33 }
 0x4ab   :  { %5269 = vmatprep.mubr.msk.bf16.mxu0 %vm846_vm5, %v2543_v38  ;;  %v2549_v55 = vsel %vm723_vm9, %v2547_v34, %v2548_v36 }
 0x4ad   :  { %5726 = vmatpush3.bf16.msra.mxu0 %v5889_v33 }
 0x4ae   :  { %5727 = vmatprep.subr.bf16.mxu0 %v5890_v47 }
 0x4b1   :  { %5728 = vmatpush3.bf16.msra.mxu0 %v5890_v47 }
 0x4b2   :  { %v2523_v49 = vpop.permute.xlu1 %2522 }
 0x4b3   :  { %v2566_v23 = vsel %vm846_vm5, %v7619_v42, %v2523_v49  ;;  %v2550_v42 = vrot.slane %v7657_v12, 2 }
 0x4b4   :  { %2757 = vmatmul.mubr.bf16.gmra.mrb[60].mxu0 %v2566_v23 }
 0x4b5   :  { %5270 = vmatprep.mubr.msk.bf16.mxu0 %vm846_vm5, %v2546_v13  ;;  %v2552_v28 = vsel %vm723_vm9, %v2550_v42, %v2551_v59 }
 0x4bb   :  { %v2525_v53 = vpop.permute.xlu0 %2524 }
 0x4bc   :  { %v2569_v45 = vsel %vm846_vm5, %v7633_v20, %v2525_v53  ;;  %v2554_v20 = vrot.slane %v2475_v57, 2 }
 0x4bd   :  { %2765 = vmatmul.mubr.bf16.gmra.mrb[64].mxu0 %v2569_v45 }
 0x4be   :  { %5271 = vmatprep.mubr.msk.bf16.mxu0 %vm846_vm5, %v2549_v55  ;;  %v2555_v44 = vsel %vm723_vm9, %v2553_v30, %v2554_v20 }
 0x4c5   :  { %v2527_v18 = vpop.permute.xlu1 %2526 }
 0x4c6   :  { %v2572_v48 = vsel %vm846_vm5, %v7645_v52, %v2527_v18  ;;  %v5870_v52 = vld [vmem:[%s8503_s9 + $0x48] sm:$0xff]  }
 0x4c7   :  { %2773 = vmatmul.mubr.bf16.gmra.mrb[68].mxu0 %v2572_v48  ;;  %5449 = vmatprep.subr.bf16.mxu1 %v5870_v52 }
 0x4c8   :  { %5272 = vmatprep.mubr.msk.bf16.mxu0 %vm846_vm5, %v2552_v28  ;;  %5450 = vmatpush3.bf16.msra.mxu1 %v5871_v56 }
 0x4c9   :  { %5451 = vmatprep.subr.bf16.mxu1 %v5873_v26 }
 0x4cc   :  { %5452 = vmatpush3.bf16.msra.mxu1 %v5874_v14 }
 0x4cd   :  { %5453 = vmatprep.subr.bf16.mxu1 %v5876_v35 }
 0x4cf   :  { %v2529_v24 = vpop.permute.xlu0 %2528 }
 0x4d0   :  { %v2575_v4 = vsel %vm846_vm5, %v7657_v12, %v2529_v24  ;;  %5454 = vmatpush3.bf16.msra.mxu1 %v5877_v60  ;;  %v5879_v12 = vld [vmem:[%s8503_s9 + $0x60] sm:$0xff]  }
 0x4d1   :  { %2781 = vmatmul.mubr.bf16.gmra.mrb[72].mxu0 %v2575_v4  ;;  %5455 = vmatprep.subr.bf16.mxu1 %v5879_v12 }
 0x4d2   :  { %5273 = vmatprep.mubr.msk.bf16.mxu0 %vm846_vm5, %v2555_v44 }
 0x4d4   :  { %5456 = vmatpush3.bf16.msra.mxu1 %v5880_v51 }
 0x4d5   :  { %5457 = vmatprep.subr.bf16.mxu1 %v5882_v50 }
 0x4d8   :  { %v2531_v46 = vpop.permute.xlu1 %2530  ;;  %5458 = vmatpush3.bf16.msra.mxu1 %v5883_v39 }
 0x4d9   :  { %v2578_v25 = vsel %vm846_vm5, %v2467_v17, %v2531_v46  ;;  %5459 = vmatprep.subr.bf16.mxu1 %v5884_v7  ;;  %vm5163_vm5 = vcmask 1044484  }
 0x4da   :  { %2789 = vmatmul.mubr.bf16.gmra.mrb[76].mxu0 %v2578_v25 }
 0x4dc   :  { %5460 = vmatpush3.bf16.msra.mxu1 %v5885_v2 }
 0x4dd   :  { %5461 = vmatprep.subr.bf16.mxu1 %v5887_v3 }
 0x4e0   :  { %5462 = vmatpush3.bf16.msra.mxu1 %v5888_v11 }
 0x567   :  { %v2734_v17 = vpop.f32.mrb[48].mxu0 }
 0x568   :  { %v2804_v57 = vadd.f32 %v7788_v61, %v2734_v17  ;;  %v2736_v54 = vpop.f32.mrb[49].mxu0  ;;  %v5894_v17 = vld [vmem:[%s8505_s11 + $0x40] sm:$0xff]  }
 0x569   :  { %v2737_v58 = vpop.f32.mrb[50].mxu0  ;;  %5527 = vmatprep.subr.bf16.mxu0 %v5894_v17 }
 0x56a   :  { %v2820_v40 = vsub.f32 0.0, %v2804_v57  ;;  %v2805_v0 = vadd.f32 %v7788_v61, %v2737_v58  ;;  %v2739_v62 = vpop.f32.mrb[51].mxu0 }
 0x56c   :  { %v2836_v31 = vmul.f32 1.442695, %v2820_v40  ;;  %v2821_v32 = vsub.f32 0.0, %v2805_v0 }
 0x56e   :  { %6131 = vpow2.f32 %v2836_v31  ;;  %v2838_v10 = vmul.f32 1.442695, %v2821_v32 }
 0x570   :  { %6133 = vpow2.f32 %v2838_v10 }
 0x572   :  { %v2742_v16 = vpop.f32.mrb[52].mxu0 }
 0x573   :  { %v7793_v29 = vadd.f32 %v7788_v61, %v2742_v16  ;;  %v2744_v6 = vpop.f32.mrb[53].mxu0 }
 0x574   :  { %v2745_v1 = vpop.f32.mrb[54].mxu0 }
 0x575   :  { %v2822_v19 = vsub.f32 0.0, %v7793_v29  ;;  %v7797_v41 = vadd.f32 %v7788_v61, %v2745_v1  ;;  %v2747_v15 = vpop.f32.mrb[55].mxu0 }
 0x577   :  { %v2840_v27 = vmul.f32 1.442695, %v2822_v19  ;;  %v2823_v22 = vsub.f32 0.0, %v7797_v41 }
 0x578   :  { %v6132_v38 = vpop.eup %6131 }
 0x579   :  { %v2868_v21 = vadd.f32 1.0, %v6132_v38  ;;  %6135 = vpow2.f32 %v2840_v27  ;;  %v2842_v8 = vmul.f32 1.442695, %v2823_v22 }
 0x57a   :  { %v6134_v49 = vpop.eup %6133 }
 0x57b   :  { %6137 = vrcp.f32 %v2868_v21  ;;  %v2869_v23 = vadd.f32 1.0, %v6134_v49 }
 0x57c   :  { %6139 = vpow2.f32 %v2842_v8 }
 0x57d   :  { %6141 = vrcp.f32 %v2869_v23  ;;  %v2750_v13 = vpop.f32.mrb[56].mxu0 }
 0x57e   :  { %v7801_v34 = vadd.f32 %v7788_v61, %v2750_v13  ;;  %v2752_v36 = vpop.f32.mrb[57].mxu0 }
 0x57f   :  { %v2753_v53 = vpop.f32.mrb[58].mxu0 }
 0x580   :  { %v2824_v45 = vsub.f32 0.0, %v7801_v34  ;;  %v7805_v55 = vadd.f32 %v7788_v61, %v2753_v53  ;;  %v2755_v42 = vpop.f32.mrb[59].mxu0 }
 0x582   :  { %v2844_v18 = vmul.f32 1.442695, %v2824_v45  ;;  %v2825_v48 = vsub.f32 0.0, %v7805_v55 }
 0x583   :  { %v6136_v59 = vpop.eup %6135 }
 0x584   :  { %v2870_v28 = vadd.f32 1.0, %v6136_v59  ;;  %6143 = vpow2.f32 %v2844_v18  ;;  %v2846_v20 = vmul.f32 1.442695, %v2825_v48 }
 0x585   :  { %v6138_v30 = vpop.eup %6137 }
 0x586   :  { %v6140_v24 = vpop.eup %6139  ;;  %6145 = vrcp.f32 %v2870_v28  ;;  %v2900_v46 = vmul.f32 %v6138_v30, %v2804_v57 }
 0x587   :  { %v6142_v4 = vpop.eup %6141  ;;  %v2871_v44 = vadd.f32 1.0, %v6140_v24  ;;  %6147 = vpow2.f32 %v2846_v20  ;;  %v2758_v52 = vpop.f32.mrb[60].mxu0 }
 0x588   :  { %v2901_v25 = vmul.f32 %v6142_v4, %v2805_v0  ;;  %v7809_v56 = vadd.f32 %v7788_v61, %v2758_v52  ;;  %v2760_v37 = vpop.f32.mrb[61].mxu0 }
 0x589   :  { %6149 = vrcp.f32 %v2871_v44  ;;  %v2761_v14 = vpop.f32.mrb[62].mxu0 }
 0x58a   :  { %v2916_v26 = vpack.c.bf16 %v2901_v25, %v2900_v46  ;;  %v2826_v43 = vsub.f32 0.0, %v7809_v56  ;;  %v7813_v35 = vadd.f32 %v7788_v61, %v2761_v14  ;;  %v2763_v60 = vpop.f32.mrb[63].mxu0 }
 0x58c   :  { %v2932_v9 = vrot.slane %v2916_v26, 6  ;;  %v2848_v12 = vmul.f32 1.442695, %v2826_v43  ;;  %v2827_v51 = vsub.f32 0.0, %v7813_v35 }
 0x58e   :  { %v2942_v63 = vsel %vm461_vm1, 0, %v2932_v9  ;;  %v2965_v50 = vsel %vm461_vm1, %v2932_v9, 0  ;;  %v6144_v39 = vpop.eup %6143  ;;  %6151 = vpow2.f32 %v2848_v12  ;;  %v2850_v7 = vmul.f32 1.442695, %v2827_v51 }
 0x58f   :  { %v2989_v5 = vrot.slane %v2942_v63, 2  ;;  %v2990_v2 = vrot.slane %v2965_v50, 2  ;;  %v2872_v11 = vadd.f32 1.0, %v6144_v39  ;;  %v3022_v33 = vrot.slane %v2942_v63, 4 }
 0x590   :  { %v6146_v3 = vpop.eup %6145  ;;  %v3023_v47 = vrot.slane %v2965_v50, 4  ;;  %6153 = vpow2.f32 %v2850_v7  ;;  %v2766_v54 = vpop.f32.mrb[64].mxu0 }
 0x591   :  { %v6148_v57 = vpop.eup %6147  ;;  %v2991_v58 = vsel %vm723_vm9, %v2989_v5, %v2990_v2  ;;  %6155 = vrcp.f32 %v2872_v11  ;;  %v7825_v0 = vadd.f32 %v7788_v61, %v2766_v54  ;;  %v2768_v62 = vpop.f32.mrb[65].mxu0  ;;  %v2902_v10 = vmul.f32 %v6146_v3, %v7793_v29 }
 0x592   :  { %v2873_v40 = vadd.f32 1.0, %v6148_v57  ;;  %3278 = vmatprep.mubr.bf16.mxu1 %v2991_v58  ;;  %v3024_v31 = vsel %vm3021_vm14, %v3022_v33, %v3023_v47  ;;  %v2769_v16 = vpop.f32.mrb[66].mxu0 }
 0x593   :  { %v6150_v32 = vpop.eup %6149  ;;  %5729 = vmatprep.mubr.bf16.mxu0 %v3024_v31  ;;  %5300 = vmatmul.mubr.msk.bf16.vlgmr.msra.gmra.mrb[64].mxu1 %vm7819_vm15, %v2932_v9  ;;  %v2828_v1 = vsub.f32 0.0, %v7825_v0  ;;  %v7834_v19 = vadd.f32 %v7788_v61, %v2769_v16  ;;  %v2771_v15 = vpop.f32.mrb[67].mxu0 }
 0x594   :  { %v2903_v6 = vmul.f32 %v6150_v32, %v7797_v41  ;;  %6157 = vrcp.f32 %v2873_v40 }
 0x595   :  { %v2852_v22 = vmul.f32 1.442695, %v2828_v1  ;;  %v2829_v38 = vsub.f32 0.0, %v7834_v19 }
 0x596   :  { %v2917_v27 = vpack.c.bf16 %v2903_v6, %v2902_v10 }
 0x597   :  { %6159 = vpow2.f32 %v2852_v22  ;;  %v2854_v29 = vmul.f32 1.442695, %v2829_v38 }
 0x598   :  { %v2933_v21 = vrot.slane %v2917_v27, 6  ;;  %v6152_v8 = vpop.eup %6151 }
 0x599   :  { %v2874_v49 = vadd.f32 1.0, %v6152_v8  ;;  %6161 = vpow2.f32 %v2854_v29 }
 0x59a   :  { %v2945_v23 = vsel %vm461_vm1, 0, %v2933_v21  ;;  %v2966_v41 = vsel %vm461_vm1, %v2933_v21, 0  ;;  %v6154_v13 = vpop.eup %6153  ;;  %v2774_v36 = vpop.f32.mrb[68].mxu0 }
 0x59b   :  { %v2992_v53 = vrot.slane %v2945_v23, 2  ;;  %v2993_v45 = vrot.slane %v2966_v41, 2  ;;  %v3025_v42 = vrot.slane %v2945_v23, 4  ;;  %v3026_v59 = vrot.slane %v2966_v41, 4  ;;  %v6156_v18 = vpop.eup %6155  ;;  %v2776_v30 = vpop.f32.mrb[69].mxu0 }
 0x59c   :  { %6163 = vrcp.f32 %v2874_v49  ;;  %v2875_v48 = vadd.f32 1.0, %v6154_v13  ;;  %v7840_v28 = vadd.f32 %v7788_v61, %v2774_v36  ;;  %v2777_v20 = vpop.f32.mrb[70].mxu0  ;;  %v2904_v37 = vmul.f32 %v6156_v18, %v7801_v34 }
 0x59d   :  { %v2994_v24 = vsel %vm723_vm9, %v2992_v53, %v2993_v45  ;;  %v3027_v4 = vsel %vm3021_vm14, %v3025_v42, %v3026_v59  ;;  %v7846_v25 = vadd.f32 %v7788_v61, %v2777_v20  ;;  %v2779_v52 = vpop.f32.mrb[71].mxu0 }
 0x59e   :  { %v6158_v44 = vpop.eup %6157  ;;  %6165 = vrcp.f32 %v2875_v48  ;;  %v2830_v46 = vsub.f32 0.0, %v7840_v28  ;;  %3286 = vmatprep.mubr.bf16.mxu1 %v2994_v24  ;;  %5730 = vmatmul.mubr.bf16.vlgmr.msra.gmra.mrb[80].mxu0 %v3027_v4 }
 0x59f   :  { %v2905_v26 = vmul.f32 %v6158_v44, %v7805_v55  ;;  %5302 = vmatmul.mubr.msk.bf16.gmra.mrb[68].mxu1 %vm7819_vm15, %v2933_v21  ;;  %v2831_v43 = vsub.f32 0.0, %v7846_v25 }
 0x5a0   :  { %v2856_v14 = vmul.f32 1.442695, %v2830_v46 }
 0x5a1   :  { %v2918_v60 = vpack.c.bf16 %v2905_v26, %v2904_v37  ;;  %v6160_v9 = vpop.eup %6159  ;;  %v2858_v12 = vmul.f32 1.442695, %v2831_v43 }
 0x5a2   :  { %6167 = vpow2.f32 %v2856_v14  ;;  %v2876_v63 = vadd.f32 1.0, %v6160_v9 }
 0x5a3   :  { %v2934_v51 = vrot.slane %v2918_v60, 6  ;;  %v6162_v50 = vpop.eup %6161  ;;  %6169 = vpow2.f32 %v2858_v12 }
 0x5a4   :  { %6171 = vrcp.f32 %v2876_v63  ;;  %v2877_v39 = vadd.f32 1.0, %v6162_v50  ;;  %v2782_v7 = vpop.f32.mrb[72].mxu0 }
 0x5a5   :  { %v2948_v34 = vsel %vm461_vm1, 0, %v2934_v51  ;;  %v2967_v55 = vsel %vm461_vm1, %v2934_v51, 0  ;;  %v7856_v2 = vadd.f32 %v7788_v61, %v2782_v7  ;;  %v2784_v3 = vpop.f32.mrb[73].mxu0 }
 0x5a6   :  { %v6164_v5 = vpop.eup %6163  ;;  %v2995_v11 = vrot.slane %v2948_v34, 2  ;;  %v2996_v33 = vrot.slane %v2967_v55, 2  ;;  %v3028_v47 = vrot.slane %v2948_v34, 4  ;;  %6173 = vrcp.f32 %v2877_v39  ;;  %v2785_v57 = vpop.f32.mrb[74].mxu0 }
 0x5a7   :  { %v3029_v54 = vrot.slane %v2967_v55, 4  ;;  %v2832_v40 = vsub.f32 0.0, %v7856_v2  ;;  %v7860_v62 = vadd.f32 %v7788_v61, %v2785_v57  ;;  %v2787_v31 = vpop.f32.mrb[75].mxu0  ;;  %v2906_v10 = vmul.f32 %v6164_v5, %v7809_v56 }
 0x5a8   :  { %v6166_v58 = vpop.eup %6165  ;;  %v2997_v32 = vsel %vm723_vm9, %v2995_v11, %v2996_v33 }
 0x5a9   :  { %v2907_v16 = vmul.f32 %v6166_v58, %v7813_v35  ;;  %3294 = vmatprep.mubr.bf16.mxu1 %v2997_v32  ;;  %v3030_v6 = vsel %vm3021_vm14, %v3028_v47, %v3029_v54  ;;  %v2860_v1 = vmul.f32 1.442695, %v2832_v40  ;;  %v2833_v15 = vsub.f32 0.0, %v7860_v62 }
 0x5aa   :  { %5733 = vmatprep.mubr.bf16.mxu0 %v3030_v6  ;;  %5304 = vmatmul.mubr.msk.bf16.gmra.mrb[72].mxu1 %vm7819_vm15, %v2934_v51 }
 0x5ab   :  { %v2919_v27 = vpack.c.bf16 %v2907_v16, %v2906_v10  ;;  %6175 = vpow2.f32 %v2860_v1  ;;  %v2862_v38 = vmul.f32 1.442695, %v2833_v15 }
 0x5ac   :  { %v6168_v22 = vpop.eup %6167 }
 0x5ad   :  { %v2935_v21 = vrot.slane %v2919_v27, 6  ;;  %v2878_v29 = vadd.f32 1.0, %v6168_v22  ;;  %v6170_v8 = vpop.eup %6169  ;;  %6177 = vpow2.f32 %v2862_v38  ;;  %v2790_v56 = vpop.f32.mrb[76].mxu0 }
 0x5ae   :  { %v6172_v35 = vpop.eup %6171  ;;  %v2879_v49 = vadd.f32 1.0, %v6170_v8  ;;  %v7870_v23 = vadd.f32 %v7788_v61, %v2790_v56  ;;  %v2792_v41 = vpop.f32.mrb[77].mxu0 }
 0x5af   :  { %6179 = vrcp.f32 %v2878_v29  ;;  %v2951_v13 = vsel %vm461_vm1, 0, %v2935_v21  ;;  %v2793_v36 = vpop.f32.mrb[78].mxu0  ;;  %v2968_v53 = vsel %vm461_vm1, %v2935_v21, 0  ;;  %v2908_v24 = vmul.f32 %v6172_v35, %v7825_v0 }
 0x5b0   :  { %v2998_v45 = vrot.slane %v2951_v13, 2  ;;  %v3031_v42 = vrot.slane %v2951_v13, 4  ;;  %v6174_v59 = vpop.eup %6173  ;;  %6181 = vrcp.f32 %v2879_v49  ;;  %v2834_v18 = vsub.f32 0.0, %v7870_v23  ;;  %v2795_v30 = vpop.f32.mrb[79].mxu0 }
 0x5b1   :  { %v7876_v48 = vadd.f32 %v7788_v61, %v2793_v36  ;;  %v2999_v20 = vrot.slane %v2968_v53, 2  ;;  %v2909_v4 = vmul.f32 %v6174_v59, %v7834_v19  ;;  %v3032_v44 = vrot.slane %v2968_v53, 4 }
 0x5b2   :  { %v2864_v46 = vmul.f32 1.442695, %v2834_v18 }
 0x5b3   :  { %v2835_v52 = vsub.f32 0.0, %v7876_v48  ;;  %v3000_v37 = vsel %vm723_vm9, %v2998_v45, %v2999_v20  ;;  %v2920_v26 = vpack.c.bf16 %v2909_v4, %v2908_v24  ;;  %v3033_v14 = vsel %vm3021_vm14, %v3031_v42, %v3032_v44 }
 0x5b4   :  { %3302 = vmatprep.mubr.bf16.mxu1 %v3000_v37  ;;  %6183 = vpow2.f32 %v2864_v46  ;;  %5734 = vmatmul.mubr.bf16.gmra.mrb[84].mxu0 %v3033_v14  ;;  %v5891_v37 = vld [vmem:[%s8505_s11 + $0x80] sm:$0xff]   ;;  %v5893_v14 = vld [vmem:[%s8505_s11 + $0x90] sm:$0xff]  }
 0x5b5   :  { %v2866_v43 = vmul.f32 1.442695, %v2835_v52  ;;  %5306 = vmatmul.mubr.msk.bf16.gmra.mrb[76].mxu1 %vm7819_vm15, %v2935_v21  ;;  %v6176_v61 = vpop.eup %6175  ;;  %v2936_v0 = vrot.slane %v2920_v26, 6  ;;  %5745 = vmatprep.subr.bf16.mxu1 %v5891_v37  ;;  %v5892_v26 = vld [vmem:[%s8505_s11 + $0x88] sm:$0xff]  }
 0x5b6   :  { %v2880_v60 = vadd.f32 1.0, %v6176_v61  ;;  %5746 = vmatpush3.bf16.msra.mxu1 %v5891_v37  ;;  %v5896_v61 = vld [vmem:[%s8505_s11 + $0x48] sm:$0xff]  }
 0x5b7   :  { %6185 = vpow2.f32 %v2866_v43  ;;  %v6178_v19 = vpop.eup %6177  ;;  %v2954_v9 = vsel %vm461_vm1, 0, %v2936_v0  ;;  %v2969_v12 = vsel %vm461_vm1, %v2936_v0, 0  ;;  %5747 = vmatprep.subr.bf16.mxu1 %v5892_v26  ;;  %v5895_v43 = vld [vmem:[%s8505_s11] sm:$0xff]  }
 0x5b8   :  { %6187 = vrcp.f32 %v2880_v60  ;;  %v2881_v63 = vadd.f32 1.0, %v6178_v19  ;;  %v3001_v50 = vrot.slane %v2954_v9, 2  ;;  %v3002_v39 = vrot.slane %v2969_v12, 2  ;;  %v5902_v60 = vld [vmem:[%s8505_s11 + $0xa0] sm:$0xff]   ;;  %5528 = vmatpush3.bf16.msra.mxu0 %v5895_v43  ;;  %v5898_v19 = vld [vmem:[%s8505_s11 + $0x8] sm:$0xff]  }
 0x5b9   :  { %v6180_v51 = vpop.eup %6179  ;;  %v3034_v7 = vrot.slane %v2954_v9, 4  ;;  %v3035_v34 = vrot.slane %v2969_v12, 4  ;;  %5529 = vmatprep.subr.bf16.mxu0 %v5896_v61  ;;  %v5899_v9 = vld [vmem:[%s8505_s11 + $0x50] sm:$0xff]  }
 0x5ba   :  { %v6182_v55 = vpop.eup %6181  ;;  %6189 = vrcp.f32 %v2881_v63  ;;  %v3003_v5 = vsel %vm723_vm9, %v3001_v50, %v3002_v39  ;;  %v2910_v3 = vmul.f32 %v6180_v51, %v7840_v28  ;;  %5748 = vmatpush3.bf16.msra.mxu1 %v5892_v26  ;;  %v5900_v12 = vld [vmem:[%s8505_s11 + $0x10] sm:$0xff]   ;;  %v5906_v51 = vld [vmem:[%s8505_s11 + $0xa8] sm:$0xff]   ;;  %v5901_v63 = vld [vmem:[%s8505_s11 + $0x58] sm:$0xff]  }
 0x5bb   :  { %v2911_v11 = vmul.f32 %v6182_v55, %v7846_v25  ;;  %3310 = vmatprep.mubr.bf16.mxu1 %v3003_v5  ;;  %v3036_v33 = vsel %vm3021_vm14, %v3034_v7, %v3035_v34  ;;  %5749 = vmatprep.subr.bf16.mxu1 %v5893_v14  ;;  %v5903_v50 = vld [vmem:[%s8505_s11 + $0x18] sm:$0xff]   ;;  %v5904_v39 = vld [vmem:[%s8505_s11 + $0x60] sm:$0xff]   ;;  %v5907_v34 = vld [vmem:[%s8505_s11 + $0x68] sm:$0xff]  }
 0x5bc   :  { %5737 = vmatprep.mubr.bf16.mxu0 %v3036_v33  ;;  %5530 = vmatpush3.bf16.msra.mxu0 %v5898_v19  ;;  %v5905_v7 = vld [vmem:[%s8505_s11 + $0x20] sm:$0xff]   ;;  %v5909_v55 = vld [vmem:[%s8505_s11 + $0xb0] sm:$0xff]   ;;  %v5912_v5 = vld [vmem:[%s8505_s11 + $0xb8] sm:$0xff]  }
 0x5bd   :  { %5308 = vmatmul.mubr.msk.bf16.gmra.mrb[80].mxu1 %vm7819_vm15, %v2936_v0  ;;  %v2921_v47 = vpack.c.bf16 %v2911_v11, %v2910_v3  ;;  %v5897_v0 = vld [vmem:[%s8505_s11 + $0x98] sm:$0xff]   ;;  %5531 = vmatprep.subr.bf16.mxu0 %v5899_v9  ;;  %v5908_v3 = vld [vmem:[%s8505_s11 + $0x28] sm:$0xff]   ;;  %v5910_v11 = vld [vmem:[%s8505_s11 + $0x70] sm:$0xff]  }
 0x5be   :  { %v6184_v57 = vpop.eup %6183  ;;  %5750 = vmatpush3.bf16.msra.mxu1 %v5893_v14  ;;  %v5911_v33 = vld [vmem:[%s8505_s11 + $0x30] sm:$0xff]  }
 0x5bf   :  { %v2937_v54 = vrot.slane %v2921_v47, 6  ;;  %v2882_v58 = vadd.f32 1.0, %v6184_v57  ;;  %5751 = vmatprep.subr.bf16.mxu1 %v5897_v0  ;;  %v5913_v47 = vld [vmem:[%s8505_s11 + $0x78] sm:$0xff]  }
 0x5c0   :  { %5532 = vmatpush3.bf16.msra.mxu0 %v5900_v12  ;;  %v5914_v57 = vld [vmem:[%s8505_s11 + $0x38] sm:$0xff]  }
 0x5c1   :  { %v6186_v40 = vpop.eup %6185  ;;  %6191 = vrcp.f32 %v2882_v58  ;;  %v2957_v32 = vsel %vm461_vm1, 0, %v2937_v54  ;;  %v2970_v28 = vsel %vm461_vm1, %v2937_v54, 0  ;;  %5533 = vmatprep.subr.bf16.mxu0 %v5901_v63 }
 0x5c2   :  { %v2883_v31 = vadd.f32 1.0, %v6186_v40  ;;  %v6188_v10 = vpop.eup %6187  ;;  %v3004_v25 = vrot.slane %v2957_v32, 2  ;;  %v3005_v16 = vrot.slane %v2970_v28, 2  ;;  %v3037_v6 = vrot.slane %v2957_v32, 4  ;;  %5752 = vmatpush3.bf16.msra.mxu1 %v5897_v0 }
 0x5c3   :  { %v3038_v1 = vrot.slane %v2970_v28, 4  ;;  %v2912_v38 = vmul.f32 %v6188_v10, %v7856_v2  ;;  %5753 = vmatprep.subr.bf16.mxu1 %v5902_v60 }
 0x5c4   :  { %6193 = vrcp.f32 %v2883_v31  ;;  %v6190_v15 = vpop.eup %6189  ;;  %v3006_v27 = vsel %vm723_vm9, %v3004_v25, %v3005_v16  ;;  %5534 = vmatpush3.bf16.msra.mxu0 %v5903_v50 }
 0x5c5   :  { %v3039_v22 = vsel %vm3021_vm14, %v3037_v6, %v3038_v1  ;;  %v2913_v21 = vmul.f32 %v6190_v15, %v7860_v62  ;;  %3318 = vmatprep.mubr.bf16.mxu1 %v3006_v27  ;;  %5535 = vmatprep.subr.bf16.mxu0 %v5904_v39  ;;  %v7990_v6 = vld [vmem:[%s8506_s10] ss:$0 sm:$0xff] }
 0x5c6   :  { %5738 = vmatmul.mubr.bf16.gmra.mrb[88].mxu0 %v3039_v22  ;;  %5310 = vmatmul.mubr.msk.bf16.gmra.mrb[84].mxu1 %vm7819_vm15, %v2937_v54 }
 0x5c7   :  { %v2922_v29 = vpack.c.bf16 %v2913_v21, %v2912_v38  ;;  %5754 = vmatpush3.bf16.msra.mxu1 %v5902_v60 }
 0x5c8   :  { %5755 = vmatprep.subr.bf16.mxu1 %v5906_v51  ;;  %5536 = vmatpush3.bf16.msra.mxu0 %v5905_v7 }
 0x5c9   :  { %v2938_v8 = vrot.slane %v2922_v29, 6  ;;  %5537 = vmatprep.subr.bf16.mxu0 %v5907_v34 }
 0x5cb   :  { %v6192_v56 = vpop.eup %6191  ;;  %v2960_v35 = vsel %vm461_vm1, 0, %v2938_v8  ;;  %v2971_v49 = vsel %vm461_vm1, %v2938_v8, 0  ;;  %5756 = vmatpush3.bf16.msra.mxu1 %v5906_v51 }
 0x5cc   :  { %v3007_v41 = vrot.slane %v2960_v35, 2  ;;  %v3008_v13 = vrot.slane %v2971_v49, 2  ;;  %v3040_v36 = vrot.slane %v2960_v35, 4  ;;  %v3041_v45 = vrot.slane %v2971_v49, 4  ;;  %5757 = vmatprep.subr.bf16.mxu1 %v5909_v55  ;;  %5538 = vmatpush3.bf16.msra.mxu0 %v5908_v3 }
 0x5cd   :  { %v2914_v2 = vmul.f32 %v6192_v56, %v7870_v23  ;;  %5539 = vmatprep.subr.bf16.mxu0 %v5910_v11 }
 0x5ce   :  { %v6194_v53 = vpop.eup %6193  ;;  %v3009_v42 = vsel %vm723_vm9, %v3007_v41, %v3008_v13  ;;  %v3042_v59 = vsel %vm3021_vm14, %v3040_v36, %v3041_v45 }
 0x5cf   :  { %v2915_v62 = vmul.f32 %v6194_v53, %v7876_v48  ;;  %3326 = vmatprep.mubr.bf16.mxu1 %v3009_v42  ;;  %5741 = vmatprep.mubr.bf16.mxu0 %v3042_v59 }
 0x5d0   :  { %5312 = vmatmul.mubr.msk.bf16.gmra.mrb[88].mxu1 %vm7819_vm15, %v2938_v8  ;;  %5540 = vmatpush3.bf16.msra.mxu0 %v5911_v33 }
 0x5d1   :  { %v2923_v18 = vpack.c.bf16 %v2915_v62, %v2914_v2  ;;  %5758 = vmatpush3.bf16.msra.mxu1 %v5909_v55  ;;  %5541 = vmatprep.subr.bf16.mxu0 %v5913_v47 }
 0x5d2   :  { %5759 = vmatprep.subr.bf16.mxu1 %v5912_v5 }
 0x5d3   :  { %v2939_v30 = vrot.slane %v2923_v18, 6 }
 0x5d4   :  { %5542 = vmatpush3.bf16.msra.mxu0 %v5914_v57 }
 0x5d5   :  { %v2963_v20 = vsel %vm461_vm1, 0, %v2939_v30  ;;  %v2972_v24 = vsel %vm461_vm1, %v2939_v30, 0  ;;  %5760 = vmatpush3.bf16.msra.mxu1 %v5912_v5  ;;  %vm8041_vm1 = vmand %vm2450_vm13, %vm3640_vm0 }
 0x5d6   :  { %v3010_v4 = vrot.slane %v2963_v20, 2  ;;  %v3011_v44 = vrot.slane %v2972_v24, 2  ;;  %v3043_v23 = vrot.slane %v2963_v20, 4  ;;  %v3044_v46 = vrot.slane %v2972_v24, 4 }
 0x5d8   :  { %v3012_v48 = vsel %vm723_vm9, %v3010_v4, %v3011_v44  ;;  %v3045_v52 = vsel %vm3021_vm14, %v3043_v23, %v3044_v46 }
 0x5d9   :  { %3334 = vmatprep.mubr.bf16.mxu1 %v3012_v48  ;;  %5742 = vmatmul.mubr.bf16.gmra.mrb[92].mxu0 %v3045_v52 }
 0x5da   :  { %5314 = vmatmul.mubr.msk.bf16.gmra.mrb[92].mxu1 %vm7819_vm15, %v2939_v30 }
 0x666   :  { %v5463_v54 = vpop.f32.mrb[64].mxu1 }
 0x667   :  { %v5464_v58 = vpop.f32.mrb[65].mxu1 }
 0x668   :  { %v5465_v40 = vadd.f32 %v5464_v58, %v5463_v54  ;;  %v5466_v31 = vpop.f32.mrb[66].mxu1 }
 0x669   :  { %v5467_v32 = vpop.f32.mrb[67].mxu1 }
 0x66a   :  { %v5468_v28 = vadd.f32 %v5467_v32, %v5466_v31 }
 0x671   :  { %v5731_v10 = vpop.f32.mrb[80].mxu0 }
 0x672   :  { %v5469_v25 = vpop.f32.mrb[68].mxu1  ;;  %v3377_v16 = vpop.f32.mrb[81].mxu0 }
 0x673   :  { %v3378_v1 = vadd.f32 %v5465_v40, %v3377_v16  ;;  %v5470_v15 = vpop.f32.mrb[69].mxu1  ;;  %v5732_v27 = vpop.f32.mrb[82].mxu0 }
 0x674   :  { %v5471_v22 = vadd.f32 %v5470_v15, %v5469_v25  ;;  %v5472_v38 = vpop.f32.mrb[70].mxu1  ;;  %v3380_v21 = vpop.f32.mrb[83].mxu0 }
 0x675   :  { %v7993_v29 = vadd.f32 %v7990_v6, %v3378_v1  ;;  %v3381_v8 = vadd.f32 %v5468_v28, %v3380_v21  ;;  %v5473_v56 = vpop.f32.mrb[71].mxu1 }
 0x676   :  { %v3386_v35 = vadd.f32 %v5731_v10, %v5471_v22  ;;  %v5474_v49 = vadd.f32 %v5473_v56, %v5472_v38 }
 0x677   :  { %v3463_v41 = vsub.f32 0.0, %v7993_v29  ;;  %v7997_v13 = vadd.f32 %v7990_v6, %v3381_v8 }
 0x678   :  { %v8000_v36 = vadd.f32 %v7990_v6, %v3386_v35  ;;  %v3389_v53 = vadd.f32 %v5732_v27, %v5474_v49 }
 0x679   :  { %v3479_v45 = vmul.f32 1.442695, %v3463_v41  ;;  %v3464_v2 = vsub.f32 0.0, %v7997_v13 }
 0x67a   :  { %v3465_v62 = vsub.f32 0.0, %v8000_v36  ;;  %v8005_v42 = vadd.f32 %v7990_v6, %v3389_v53 }
 0x67b   :  { %6195 = vpow2.f32 %v3479_v45  ;;  %v3481_v59 = vmul.f32 1.442695, %v3464_v2 }
 0x67c   :  { %v3483_v18 = vmul.f32 1.442695, %v3465_v62  ;;  %v3466_v30 = vsub.f32 0.0, %v8005_v42 }
 0x67d   :  { %6197 = vpow2.f32 %v3481_v59  ;;  %v5475_v20 = vpop.f32.mrb[72].mxu1 }
 0x67e   :  { %6199 = vpow2.f32 %v3483_v18  ;;  %v3485_v24 = vmul.f32 1.442695, %v3466_v30  ;;  %v5476_v4 = vpop.f32.mrb[73].mxu1 }
 0x67f   :  { %v5477_v44 = vadd.f32 %v5476_v4, %v5475_v20  ;;  %v5478_v23 = vpop.f32.mrb[74].mxu1 }
 0x680   :  { %6201 = vpow2.f32 %v3485_v24  ;;  %v5479_v46 = vpop.f32.mrb[75].mxu1 }
 0x681   :  { %v5480_v48 = vadd.f32 %v5479_v46, %v5478_v23 }
 0x685   :  { %v6196_v52 = vpop.eup %6195 }
 0x686   :  { %v3511_v37 = vadd.f32 1.0, %v6196_v52 }
 0x687   :  { %v6198_v26 = vpop.eup %6197  ;;  %v5735_v43 = vpop.f32.mrb[84].mxu0 }
 0x688   :  { %v6200_v14 = vpop.eup %6199  ;;  %6203 = vrcp.f32 %v3511_v37  ;;  %v3512_v17 = vadd.f32 1.0, %v6198_v26  ;;  %v5481_v61 = vpop.f32.mrb[76].mxu1 }
 0x689   :  { %v3513_v0 = vadd.f32 1.0, %v6200_v14  ;;  %v3393_v60 = vpop.f32.mrb[85].mxu0  ;;  %v5482_v19 = vpop.f32.mrb[77].mxu1 }
 0x68a   :  { %v6202_v9 = vpop.eup %6201  ;;  %6205 = vrcp.f32 %v3512_v17  ;;  %v3394_v12 = vadd.f32 %v5477_v44, %v3393_v60  ;;  %v5483_v51 = vadd.f32 %v5482_v19, %v5481_v61  ;;  %v5736_v63 = vpop.f32.mrb[86].mxu0 }
 0x68b   :  { %v5484_v50 = vpop.f32.mrb[78].mxu1  ;;  %6207 = vrcp.f32 %v3513_v0  ;;  %v3514_v39 = vadd.f32 1.0, %v6202_v9  ;;  %v3396_v7 = vpop.f32.mrb[87].mxu0 }
 0x68c   :  { %v5485_v34 = vpop.f32.mrb[79].mxu1  ;;  %v8009_v55 = vadd.f32 %v7990_v6, %v3394_v12  ;;  %v3402_v5 = vadd.f32 %v5735_v43, %v5483_v51  ;;  %v3397_v3 = vadd.f32 %v5480_v48, %v3396_v7 }
 0x68d   :  { %v5486_v11 = vadd.f32 %v5485_v34, %v5484_v50  ;;  %6209 = vrcp.f32 %v3514_v39 }
 0x68e   :  { %v3467_v33 = vsub.f32 0.0, %v8009_v55  ;;  %v8013_v47 = vadd.f32 %v7990_v6, %v3402_v5  ;;  %v8016_v57 = vadd.f32 %v7990_v6, %v3397_v3 }
 0x68f   :  { %v3405_v54 = vadd.f32 %v5736_v63, %v5486_v11 }
 0x690   :  { %v3487_v58 = vmul.f32 1.442695, %v3467_v33  ;;  %v3469_v40 = vsub.f32 0.0, %v8013_v47  ;;  %v3468_v31 = vsub.f32 0.0, %v8016_v57  ;;  %v5487_v28 = vpop.f32.mrb[80].mxu1 }
 0x691   :  { %v8021_v32 = vadd.f32 %v7990_v6, %v3405_v54  ;;  %v5488_v10 = vpop.f32.mrb[81].mxu1 }
 0x692   :  { %v6204_v25 = vpop.eup %6203  ;;  %6211 = vpow2.f32 %v3487_v58  ;;  %v3491_v16 = vmul.f32 1.442695, %v3469_v40  ;;  %v3489_v1 = vmul.f32 1.442695, %v3468_v31  ;;  %v5490_v27 = vpop.f32.mrb[82].mxu1  ;;  %v5489_v22 = vadd.f32 %v5488_v10, %v5487_v28 }
 0x693   :  { %v3470_v15 = vsub.f32 0.0, %v8021_v32  ;;  %v5491_v38 = vpop.f32.mrb[83].mxu1  ;;  %v8025_v49 = vmul.f32 %v6204_v25, %v7993_v29 }
 0x694   :  { %v6206_v21 = vpop.eup %6205  ;;  %6213 = vpow2.f32 %v3491_v16  ;;  %v5492_v56 = vadd.f32 %v5491_v38, %v5490_v27 }
 0x695   :  { %v3493_v8 = vmul.f32 1.442695, %v3470_v15  ;;  %v6208_v35 = vpop.eup %6207  ;;  %v8028_v41 = vmul.f32 %v6206_v21, %v7997_v13  ;;  %6215 = vpow2.f32 %v3489_v1 }
 0x696   :  { %v8033_v2 = vmul.f32 %v6208_v35, %v8000_v36 }
 0x697   :  { %6217 = vpow2.f32 %v3493_v8  ;;  %v6210_v53 = vpop.eup %6209  ;;  %v3559_v45 = vpack.c.bf16 %v8028_v41, %v8025_v49 }
 0x698   :  { %v8036_v62 = vmul.f32 %v6210_v53, %v8005_v42 }
 0x699   :  { %v3568_v59 = vshrl.u32 %v3559_v45, 16  ;;  %v5739_v18 = vpop.f32.mrb[88].mxu0  ;;  %v5493_v13 = vpop.f32.mrb[84].mxu1  ;;  %v3571_v4 = vshll.u32 %v3559_v45, 16 }
 0x69a   :  { %v3560_v29 = vpack.c.bf16 %v8036_v62, %v8033_v2  ;;  %v3409_v30 = vpop.f32.mrb[89].mxu0  ;;  %v5494_v36 = vpop.f32.mrb[85].mxu1 }
 0x69b   :  { %v3570_v24 = vrot.slane %v3568_v59, 7  ;;  %v3410_v44 = vadd.f32 %v5489_v22, %v3409_v30  ;;  %v5740_v23 = vpop.f32.mrb[90].mxu0  ;;  %v5495_v52 = vadd.f32 %v5494_v36, %v5493_v13  ;;  %v5496_v37 = vpop.f32.mrb[86].mxu1 }
 0x69c   :  { %v6212_v46 = vpop.eup %6211  ;;  %v3575_v42 = vshrl.u32 %v3560_v29, 16  ;;  %v3578_v48 = vshll.u32 %v3560_v29, 16  ;;  %v3412_v26 = vpop.f32.mrb[91].mxu0 }
 0x69d   :  { %v3573_v14 = vor.u32 %v3571_v4, %v3570_v24  ;;  %v3515_v17 = vadd.f32 1.0, %v6212_v46  ;;  %v8046_v43 = vadd.f32 %v7990_v6, %v3410_v44  ;;  %v3413_v61 = vadd.f32 %v5492_v56, %v3412_v26  ;;  %v5497_v0 = vpop.f32.mrb[87].mxu1 }
 0x69e   :  { %v6214_v60 = vpop.eup %6213  ;;  %v3577_v19 = vrot.slane %v3575_v42, 7  ;;  %v3418_v9 = vadd.f32 %v5739_v18, %v5495_v52  ;;  %v5498_v12 = vadd.f32 %v5497_v0, %v5496_v37  ;;  %v3650_v51 = vsel %vm8041_vm1, %v3570_v24, 0 }
 0x69f   :  { %v6216_v63 = vpop.eup %6215  ;;  %6219 = vrcp.f32 %v3515_v17  ;;  %v3517_v50 = vadd.f32 1.0, %v6214_v60  ;;  %v3471_v39 = vsub.f32 0.0, %v8046_v43  ;;  %v8052_v7 = vadd.f32 %v7990_v6, %v3413_v61 }
 0x6a0   :  { %v3580_v5 = vor.u32 %v3578_v48, %v3577_v19  ;;  %v3516_v3 = vadd.f32 1.0, %v6216_v63  ;;  %v8055_v11 = vadd.f32 %v7990_v6, %v3418_v9  ;;  %v3421_v33 = vadd.f32 %v5740_v23, %v5498_v12 }
 0x6a1   :  { %v6218_v34 = vpop.eup %6217  ;;  %6221 = vrcp.f32 %v3517_v50  ;;  %v3495_v58 = vmul.f32 1.442695, %v3471_v39  ;;  %v3472_v40 = vsub.f32 0.0, %v8052_v7  ;;  %v3642_v10 = vsel %vm8041_vm1, 0, %v3573_v14 }
 0x6a2   :  { %v3518_v54 = vadd.f32 1.0, %v6218_v34  ;;  %6223 = vrcp.f32 %v3516_v3  ;;  %v3473_v31 = vsub.f32 0.0, %v8055_v11  ;;  %v8060_v28 = vadd.f32 %v7990_v6, %v3421_v33 }
 0x6a3   :  { %v3497_v25 = vmul.f32 1.442695, %v3472_v40  ;;  %v3778_v16 = vrot.slane %v3642_v10, 1  ;;  %v3779_v1 = vrot.slane %v3650_v51, 1  ;;  %v5499_v22 = vpop.f32.mrb[88].mxu1  ;;  %v8067_v38 = vsel %vm8041_vm1, 0, %v3580_v5 }
 0x6a4   :  { %6225 = vrcp.f32 %v3518_v54  ;;  %v3499_v15 = vmul.f32 1.442695, %v3473_v31  ;;  %v3474_v27 = vsub.f32 0.0, %v8060_v28  ;;  %v5500_v8 = vpop.f32.mrb[89].mxu1  ;;  %v3651_v56 = vsel %vm8041_vm1, %v3577_v19, 0 }
 0x6a5   :  { %6227 = vpow2.f32 %v3495_v58  ;;  %v3780_v21 = vsel %vm609_vm10, %v3778_v16, %v3779_v1  ;;  %v3781_v35 = vrot.slane %v8067_v38, 1  ;;  %v5501_v45 = vadd.f32 %v5500_v8, %v5499_v22  ;;  %v5502_v59 = vpop.f32.mrb[90].mxu1 }
 0x6a6   :  { %6229 = vpow2.f32 %v3497_v25  ;;  %v3501_v53 = vmul.f32 1.442695, %v3474_v27  ;;  %5761 = vmatprep.mubr.bf16.mxu1 %v3780_v21  ;;  %v3782_v18 = vrot.slane %v3651_v56, 1  ;;  %v5503_v29 = vpop.f32.mrb[91].mxu1  ;;  %v3661_v13 = vshll.u32 %v3642_v10, 16 }
 0x6a7   :  { %6231 = vpow2.f32 %v3499_v15  ;;  %v3666_v30 = vshll.u32 %v3650_v51, 16  ;;  %v5504_v4 = vadd.f32 %v5503_v29, %v5502_v59  ;;  %v3673_v44 = vshll.u32 %v8067_v38, 16 }
 0x6a8   :  { %6233 = vpow2.f32 %v3501_v53  ;;  %v3783_v24 = vsel %vm609_vm10, %v3781_v35, %v3782_v18  ;;  %v3659_v23 = vshrl.u32 %v3642_v10, 16  ;;  %v3663_v46 = vrot.slane %v3661_v13, 1 }
 0x6a9   :  { %v6220_v36 = vpop.eup %6219  ;;  %5762 = vmatmul.mubr.bf16.vlgmr.msra.gmra.mrb[96].mxu1 %v3783_v24  ;;  %v3678_v42 = vshll.u32 %v3651_v56, 16  ;;  %v3671_v48 = vshrl.u32 %v8067_v38, 16  ;;  %v3675_v52 = vrot.slane %v3673_v44, 1  ;;  %v3668_v14 = vrot.slane %v3666_v30, 1 }
 0x6aa   :  { %v3664_v26 = vor.u32 %v3663_v46, %v3659_v23  ;;  %v8077_v9 = vmul.f32 %v6220_v36, %v8009_v55 }
 0x6ab   :  { %v6222_v37 = vpop.eup %6221  ;;  %v3676_v61 = vor.u32 %v3675_v52, %v3671_v48  ;;  %v3680_v0 = vrot.slane %v3678_v42, 1 }
 0x6ac   :  { %v6224_v17 = vpop.eup %6223  ;;  %v5743_v60 = vpop.f32.mrb[92].mxu0  ;;  %v3669_v51 = vsel %vm480_vm8, %v3664_v26, %v3668_v14  ;;  %v8084_v34 = vmul.f32 %v6222_v37, %v8013_v47 }
 0x6ad   :  { %v8080_v12 = vmul.f32 %v6224_v17, %v8016_v57  ;;  %v5505_v63 = vpop.f32.mrb[92].mxu1  ;;  %v3425_v50 = vpop.f32.mrb[93].mxu0  ;;  %4034 = vmatprep.mubr.bf16.mxu0 %v3669_v51  ;;  %v3681_v3 = vsel %vm480_vm8, %v3676_v61, %v3680_v0 }
 0x6ae   :  { %v6226_v19 = vpop.eup %6225  ;;  %v3426_v33 = vadd.f32 %v5501_v45, %v3425_v50  ;;  %v5506_v55 = vpop.f32.mrb[93].mxu1  ;;  %4035 = vmatmul.mubr.bf16.vlgmr.msra.gmra.mrb[96].mxu0 %v3642_v10 }
 0x6af   :  { %v6228_v39 = vpop.eup %6227  ;;  %v8087_v5 = vmul.f32 %v6226_v19, %v8021_v32  ;;  %v5744_v54 = vpop.f32.mrb[94].mxu0  ;;  %v3561_v57 = vpack.c.bf16 %v8080_v12, %v8077_v9  ;;  %v5507_v31 = vadd.f32 %v5506_v55, %v5505_v63  ;;  %4042 = vmatprep.mubr.bf16.mxu0 %v3681_v3 }
 0x6b0   :  { %v6230_v58 = vpop.eup %6229  ;;  %v3519_v40 = vadd.f32 1.0, %v6228_v39  ;;  %v5508_v25 = vpop.f32.mrb[94].mxu1  ;;  %v8095_v15 = vadd.f32 %v7990_v6, %v3426_v33 }
 0x6b1   :  { %v3428_v16 = vpop.f32.mrb[95].mxu0  ;;  %v6232_v47 = vpop.eup %6231  ;;  %v3562_v32 = vpack.c.bf16 %v8087_v5, %v8084_v34  ;;  %v3520_v1 = vadd.f32 1.0, %v6230_v58  ;;  %v3582_v21 = vshrl.u32 %v3561_v57, 16  ;;  %v3585_v35 = vshll.u32 %v3561_v57, 16 }
 0x6b2   :  { %v3429_v27 = vadd.f32 %v5504_v4, %v3428_v16  ;;  %v5509_v22 = vpop.f32.mrb[95].mxu1  ;;  %6235 = vrcp.f32 %v3519_v40  ;;  %v3521_v8 = vadd.f32 1.0, %v6232_v47  ;;  %v6234_v56 = vpop.eup %6233  ;;  %v3475_v10 = vsub.f32 0.0, %v8095_v15 }
 0x6b3   :  { %6237 = vrcp.f32 %v3520_v1  ;;  %v3434_v53 = vadd.f32 %v5743_v60, %v5507_v31  ;;  %v3584_v45 = vrot.slane %v3582_v21, 7  ;;  %v3522_v59 = vadd.f32 1.0, %v6234_v56 }
 0x6b4   :  { %6239 = vrcp.f32 %v3521_v8  ;;  %v8099_v18 = vadd.f32 %v7990_v6, %v3429_v27  ;;  %v3503_v29 = vmul.f32 1.442695, %v3475_v10  ;;  %v5510_v30 = vadd.f32 %v5509_v22, %v5508_v25 }
 0x6b5   :  { %v8102_v13 = vadd.f32 %v7990_v6, %v3434_v53  ;;  %v3589_v24 = vshrl.u32 %v3562_v32, 16  ;;  %v3587_v4 = vor.u32 %v3585_v35, %v3584_v45  ;;  %6241 = vrcp.f32 %v3522_v59 }
 0x6b6   :  { %v3476_v44 = vsub.f32 0.0, %v8099_v18  ;;  %v3652_v36 = vsel %vm8041_vm1, %v3584_v45, 0  ;;  %v3592_v23 = vshll.u32 %v3562_v32, 16  ;;  %6243 = vpow2.f32 %v3503_v29  ;;  %4043 = vmatmul.mubr.bf16.gmra.mrb[100].mxu0 %v8067_v38 }
 0x6b7   :  { %v3477_v46 = vsub.f32 0.0, %v8102_v13  ;;  %v3437_v42 = vadd.f32 %v5744_v54, %v5510_v30  ;;  %v3644_v52 = vsel %vm8041_vm1, 0, %v3587_v4  ;;  %v3785_v37 = vrot.slane %v3652_v36, 1 }
 0x6b8   :  { %v3505_v48 = vmul.f32 1.442695, %v3476_v44  ;;  %v3591_v26 = vrot.slane %v3589_v24, 7  ;;  %v3784_v61 = vrot.slane %v3644_v52, 1  ;;  %v3690_v0 = vshll.u32 %v3652_v36, 16 }
 0x6b9   :  { %v3507_v14 = vmul.f32 1.442695, %v3477_v46  ;;  %v8112_v17 = vadd.f32 %v7990_v6, %v3437_v42  ;;  %v3685_v51 = vshll.u32 %v3644_v52, 16  ;;  %v3683_v3 = vshrl.u32 %v3644_v52, 16 }
 0x6ba   :  { %6245 = vpow2.f32 %v3505_v48  ;;  %v3594_v60 = vor.u32 %v3592_v23, %v3591_v26  ;;  %v3653_v19 = vsel %vm8041_vm1, %v3591_v26, 0  ;;  %v3786_v63 = vsel %vm609_vm10, %v3784_v61, %v3785_v37 }
 0x6bb   :  { %6247 = vpow2.f32 %v3507_v14  ;;  %v3478_v38 = vsub.f32 0.0, %v8112_v17  ;;  %5765 = vmatprep.mubr.bf16.mxu1 %v3786_v63  ;;  %v3788_v6 = vrot.slane %v3653_v19, 1  ;;  %v3687_v33 = vrot.slane %v3685_v51, 1 }
 0x6bc   :  { %v6236_v50 = vpop.eup %6235  ;;  %v3645_v39 = vsel %vm8041_vm1, 0, %v3594_v60  ;;  %v3692_v57 = vrot.slane %v3690_v0, 1  ;;  %v3702_v40 = vshll.u32 %v3653_v19, 16 }
 0x6bd   :  { %v6238_v55 = vpop.eup %6237  ;;  %v3509_v54 = vmul.f32 1.442695, %v3478_v38  ;;  %v3787_v58 = vrot.slane %v3645_v39, 1  ;;  %v8121_v25 = vmul.f32 %v6236_v50, %v8046_v43  ;;  %v3688_v47 = vor.u32 %v3687_v33, %v3683_v3 }
 0x6be   :  { %v6240_v31 = vpop.eup %6239  ;;  %v8124_v16 = vmul.f32 %v6238_v55, %v8052_v7  ;;  %v3697_v32 = vshll.u32 %v3645_v39, 16  ;;  %v3695_v8 = vshrl.u32 %v3645_v39, 16  ;;  %v3704_v59 = vrot.slane %v3702_v40, 1 }
 0x6bf   :  { %6249 = vpow2.f32 %v3509_v54  ;;  %v3789_v1 = vsel %vm609_vm10, %v3787_v58, %v3788_v6  ;;  %v6242_v27 = vpop.eup %6241  ;;  %v3693_v21 = vsel %vm480_vm8, %v3688_v47, %v3692_v57  ;;  %v8131_v43 = vmul.f32 %v6240_v31, %v8055_v11 }
 0x6c0   :  { %v3563_v22 = vpack.c.bf16 %v8124_v16, %v8121_v25  ;;  %5766 = vmatmul.mubr.bf16.gmra.mrb[100].mxu1 %v3789_v1  ;;  %v3699_v56 = vrot.slane %v3697_v32, 1  ;;  %v6244_v35 = vpop.eup %6243  ;;  %v8134_v7 = vmul.f32 %v6242_v27, %v8060_v28  ;;  %4050 = vmatprep.mubr.bf16.mxu0 %v3693_v21 }
 0x6c1   :  { %v3523_v53 = vadd.f32 1.0, %v6244_v35  ;;  %4051 = vmatmul.mubr.bf16.gmra.mrb[104].mxu0 %v3644_v52 }
 0x6c2   :  { %v3596_v10 = vshrl.u32 %v3563_v22, 16  ;;  %v3700_v45 = vor.u32 %v3699_v56, %v3695_v8  ;;  %v3564_v29 = vpack.c.bf16 %v8134_v7, %v8131_v43  ;;  %v3599_v4 = vshll.u32 %v3563_v22, 16 }
 0x6c3   :  { %6251 = vrcp.f32 %v3523_v53 }
 0x6c4   :  { %v6246_v30 = vpop.eup %6245  ;;  %v3598_v24 = vrot.slane %v3596_v10, 7  ;;  %v3705_v44 = vsel %vm480_vm8, %v3700_v45, %v3704_v59  ;;  %v3603_v28 = vshrl.u32 %v3564_v29, 16  ;;  %v3606_v48 = vshll.u32 %v3564_v29, 16 }
 0x6c5   :  { %v6248_v36 = vpop.eup %6247  ;;  %v3524_v11 = vadd.f32 1.0, %v6246_v30  ;;  %4058 = vmatprep.mubr.bf16.mxu0 %v3705_v44 }
 0x6c6   :  { %v3601_v23 = vor.u32 %v3599_v4, %v3598_v24  ;;  %v3525_v46 = vadd.f32 1.0, %v6248_v36  ;;  %v3654_v42 = vsel %vm8041_vm1, %v3598_v24, 0  ;;  %v3605_v52 = vrot.slane %v3603_v28, 7 }
 0x6c7   :  { %6253 = vrcp.f32 %v3524_v11  ;;  %v3791_v61 = vrot.slane %v3654_v42, 1  ;;  %v3714_v38 = vshll.u32 %v3654_v42, 16 }
 0x6c8   :  { %v3646_v37 = vsel %vm8041_vm1, 0, %v3601_v23  ;;  %v3608_v0 = vor.u32 %v3606_v48, %v3605_v52  ;;  %v3655_v60 = vsel %vm8041_vm1, %v3605_v52, 0  ;;  %6255 = vrcp.f32 %v3525_v46 }
 0x6c9   :  { %v6250_v26 = vpop.eup %6249  ;;  %v3790_v14 = vrot.slane %v3646_v37, 1  ;;  %4059 = vmatmul.mubr.bf16.gmra.mrb[108].mxu0 %v3645_v39  ;;  %v3709_v51 = vshll.u32 %v3646_v37, 16  ;;  %v3707_v6 = vshrl.u32 %v3646_v37, 16  ;;  %v3794_v33 = vrot.slane %v3655_v60, 1 }
 0x6ca   :  { %v3526_v19 = vadd.f32 1.0, %v6250_v26  ;;  %v3647_v50 = vsel %vm8041_vm1, 0, %v3608_v0  ;;  %v3726_v58 = vshll.u32 %v3655_v60, 16  ;;  %v3716_v31 = vrot.slane %v3714_v38, 1 }
 0x6cb   :  { %v3792_v63 = vsel %vm609_vm10, %v3790_v14, %v3791_v61  ;;  %v3793_v3 = vrot.slane %v3647_v50, 1  ;;  %v3711_v55 = vrot.slane %v3709_v51, 1  ;;  %v3721_v54 = vshll.u32 %v3647_v50, 16 }
 0x6cc   :  { %6257 = vrcp.f32 %v3526_v19  ;;  %5769 = vmatprep.mubr.bf16.mxu1 %v3792_v63  ;;  %v3719_v47 = vshrl.u32 %v3647_v50, 16  ;;  %v3728_v21 = vrot.slane %v3726_v58, 1 }
 0x6cd   :  { %v3795_v57 = vsel %vm609_vm10, %v3793_v3, %v3794_v33  ;;  %v3712_v40 = vor.u32 %v3711_v55, %v3707_v6  ;;  %v6252_v39 = vpop.eup %6251  ;;  %v3723_v32 = vrot.slane %v3721_v54, 1 }
 0x6ce   :  { %5770 = vmatmul.mubr.bf16.gmra.mrb[104].mxu1 %v3795_v57  ;;  %v8151_v8 = vmul.f32 %v6252_v39, %v8095_v15  ;;  %v5915_v57 = vld [vmem:[%s8507_s13 + $0x40] sm:$0xff]   ;;  %v5918_v39 = vld [vmem:[%s8507_s13 + $0x48] sm:$0xff]  }
 0x6cf   :  { %v3717_v1 = vsel %vm480_vm8, %v3712_v40, %v3716_v31  ;;  %v3724_v22 = vor.u32 %v3723_v32, %v3719_v47  ;;  %v5916_v40 = vld [vmem:[%s8507_s13] sm:$0xff]   ;;  %5607 = vmatprep.subr.bf16.mxu1 %v5915_v57  ;;  %v5919_v47 = vld [vmem:[%s8507_s13 + $0x8] sm:$0xff]  }
 0x6d0   :  { %4066 = vmatprep.mubr.bf16.mxu0 %v3717_v1  ;;  %v5917_v31 = vld [vmem:[%s8507_s13 + $0x80] sm:$0xff]   ;;  %5608 = vmatpush3.bf16.msra.mxu1 %v5916_v40  ;;  %v5920_v32 = vld [vmem:[%s8507_s13 + $0x88] sm:$0xff]   ;;  %v5921_v1 = vld [vmem:[%s8507_s13 + $0x50] sm:$0xff]  }
 0x6d1   :  { %v6254_v27 = vpop.eup %6253  ;;  %4067 = vmatmul.mubr.bf16.gmra.mrb[112].mxu0 %v3646_v37  ;;  %v3729_v35 = vsel %vm480_vm8, %v3724_v22, %v3728_v21  ;;  %5777 = vmatprep.subr.bf16.mxu0 %v5917_v31  ;;  %v5923_v22 = vld [vmem:[%s8507_s13 + $0x90] sm:$0xff]   ;;  %v5924_v21 = vld [vmem:[%s8507_s13 + $0x58] sm:$0xff]  }
 0x6d2   :  { %v8154_v56 = vmul.f32 %v6254_v27, %v8099_v18  ;;  %v6256_v10 = vpop.eup %6255  ;;  %4074 = vmatprep.mubr.bf16.mxu0 %v3729_v35  ;;  %5609 = vmatprep.subr.bf16.mxu1 %v5918_v39  ;;  %v5922_v27 = vld [vmem:[%s8507_s13 + $0x10] sm:$0xff]   ;;  %v5925_v35 = vld [vmem:[%s8507_s13 + $0x18] sm:$0xff]  }
 0x6d3   :  { %v8160_v29 = vmul.f32 %v6256_v10, %v8102_v13  ;;  %5778 = vmatpush3.bf16.msra.mxu0 %v5917_v31  ;;  %v5926_v10 = vld [vmem:[%s8507_s13 + $0x98] sm:$0xff]  }
 0x6d4   :  { %v3565_v53 = vpack.c.bf16 %v8154_v56, %v8151_v8  ;;  %5610 = vmatpush3.bf16.msra.mxu1 %v5919_v47  ;;  %5779 = vmatprep.subr.bf16.mxu0 %v5920_v32 }
 0x6d5   :  { %5611 = vmatprep.subr.bf16.mxu1 %v5921_v1 }
 0x6d6   :  { %v6258_v45 = vpop.eup %6257  ;;  %v3610_v59 = vshrl.u32 %v3565_v53, 16  ;;  %v3613_v24 = vshll.u32 %v3565_v53, 16  ;;  %v5927_v53 = vld [vmem:[%s8507_s13 + $0x60] sm:$0xff]  }
 0x6d7   :  { %v8163_v30 = vmul.f32 %v6258_v45, %v8112_v17  ;;  %5780 = vmatpush3.bf16.msra.mxu0 %v5920_v32  ;;  %v5928_v45 = vld [vmem:[%s8507_s13 + $0x20] sm:$0xff]  }
 0x6d8   :  { %v3612_v15 = vrot.slane %v3610_v59, 7  ;;  %5612 = vmatpush3.bf16.msra.mxu1 %v5922_v27  ;;  %5781 = vmatprep.subr.bf16.mxu0 %v5923_v22  ;;  %v5929_v59 = vld [vmem:[%s8507_s13 + $0xa0] sm:$0xff]  }
 0x6d9   :  { %v3566_v18 = vpack.c.bf16 %v8163_v30, %v8160_v29  ;;  %4075 = vmatmul.mubr.bf16.gmra.mrb[116].mxu0 %v3647_v50  ;;  %5613 = vmatprep.subr.bf16.mxu1 %v5924_v21 }
 0x6da   :  { %v3615_v4 = vor.u32 %v3613_v24, %v3612_v15  ;;  %v3656_v44 = vsel %vm8041_vm1, %v3612_v15, 0  ;;  %v5930_v15 = vld [vmem:[%s8507_s13 + $0x68] sm:$0xff]  }
 0x6db   :  { %v3617_v36 = vshrl.u32 %v3566_v18, 16  ;;  %v3620_v11 = vshll.u32 %v3566_v18, 16  ;;  %v3797_v13 = vrot.slane %v3656_v44, 1  ;;  %v3738_v42 = vshll.u32 %v3656_v44, 16  ;;  %5782 = vmatpush3.bf16.msra.mxu0 %v5923_v22  ;;  %v5931_v24 = vld [vmem:[%s8507_s13 + $0x28] sm:$0xff]   ;;  %v5934_v44 = vld [vmem:[%s8507_s13 + $0x30] sm:$0xff]  }
 0x6dc   :  { %v3648_v28 = vsel %vm8041_vm1, 0, %v3615_v4  ;;  %5614 = vmatpush3.bf16.msra.mxu1 %v5925_v35  ;;  %5783 = vmatprep.subr.bf16.mxu0 %v5926_v10  ;;  %v5932_v18 = vld [vmem:[%s8507_s13 + $0xa8] sm:$0xff]   ;;  %v5933_v4 = vld [vmem:[%s8507_s13 + $0x70] sm:$0xff]  }
 0x6dd   :  { %v3796_v23 = vrot.slane %v3648_v28, 1  ;;  %v3619_v46 = vrot.slane %v3617_v36, 7  ;;  %v3733_v17 = vshll.u32 %v3648_v28, 16  ;;  %v3731_v48 = vshrl.u32 %v3648_v28, 16  ;;  %5615 = vmatprep.subr.bf16.mxu1 %v5927_v53  ;;  %v5935_v36 = vld [vmem:[%s8507_s13 + $0xb0] sm:$0xff]  }
 0x6de   :  { %v3740_v60 = vrot.slane %v3738_v42, 1 }
 0x6df   :  { %v3798_v52 = vsel %vm609_vm10, %v3796_v23, %v3797_v13  ;;  %v3622_v37 = vor.u32 %v3620_v11, %v3619_v46  ;;  %v3657_v26 = vsel %vm8041_vm1, %v3619_v46, 0  ;;  %v3735_v14 = vrot.slane %v3733_v17, 1  ;;  %5784 = vmatpush3.bf16.msra.mxu0 %v5926_v10  ;;  %v5936_v11 = vld [vmem:[%s8507_s13 + $0x78] sm:$0xff]  }
 0x6e0   :  { %5773 = vmatprep.mubr.bf16.mxu1 %v3798_v52  ;;  %v3800_v51 = vrot.slane %v3657_v26, 1  ;;  %v3750_v63 = vshll.u32 %v3657_v26, 16  ;;  %5616 = vmatpush3.bf16.msra.mxu1 %v5928_v45  ;;  %v5938_v13 = vld [vmem:[%s8507_s13 + $0xb8] sm:$0xff]  }
 0x6e1   :  { %v3649_v61 = vsel %vm8041_vm1, 0, %v3622_v37  ;;  %v3736_v0 = vor.u32 %v3735_v14, %v3731_v48  ;;  %5785 = vmatprep.subr.bf16.mxu0 %v5929_v59  ;;  %5617 = vmatprep.subr.bf16.mxu1 %v5930_v15  ;;  %v8254_v14 = vld [vmem:[%s8508_s12] ss:$0 sm:$0xff] }
 0x6e2   :  { %v3799_v19 = vrot.slane %v3649_v61, 1  ;;  %v3745_v38 = vshll.u32 %v3649_v61, 16  ;;  %v3743_v3 = vshrl.u32 %v3649_v61, 16  ;;  %v3752_v54 = vrot.slane %v3750_v63, 1 }
 0x6e3   :  { %v3741_v50 = vsel %vm480_vm8, %v3736_v0, %v3740_v60  ;;  %5786 = vmatpush3.bf16.msra.mxu0 %v5929_v59 }
 0x6e4   :  { %v3801_v6 = vsel %vm609_vm10, %v3799_v19, %v3800_v51  ;;  %4082 = vmatprep.mubr.bf16.mxu0 %v3741_v50  ;;  %v3747_v33 = vrot.slane %v3745_v38, 1  ;;  %5618 = vmatpush3.bf16.msra.mxu1 %v5931_v24 }
 0x6e5   :  { %5774 = vmatmul.mubr.bf16.gmra.mrb[108].mxu1 %v3801_v6  ;;  %4083 = vmatmul.mubr.bf16.gmra.mrb[120].mxu0 %v3648_v28  ;;  %v5937_v28 = vld [vmem:[%s8507_s13 + $0x38] sm:$0xff]  }
 0x6e6   :  { %v3748_v55 = vor.u32 %v3747_v33, %v3743_v3  ;;  %5787 = vmatprep.subr.bf16.mxu0 %v5932_v18  ;;  %5619 = vmatprep.subr.bf16.mxu1 %v5933_v4 }
 0x6e7   :  { %5788 = vmatpush3.bf16.msra.mxu0 %v5932_v18 }
 0x6e8   :  { %v3753_v58 = vsel %vm480_vm8, %v3748_v55, %v3752_v54  ;;  %5620 = vmatpush3.bf16.msra.mxu1 %v5934_v44  ;;  %5789 = vmatprep.subr.bf16.mxu0 %v5935_v36 }
 0x6e9   :  { %4090 = vmatprep.mubr.bf16.mxu0 %v3753_v58  ;;  %5621 = vmatprep.subr.bf16.mxu1 %v5936_v11 }
 0x6eb   :  { %5790 = vmatpush3.bf16.msra.mxu0 %v5935_v36 }
 0x6ec   :  { %5622 = vmatpush3.bf16.msra.mxu1 %v5937_v28  ;;  %5791 = vmatprep.subr.bf16.mxu0 %v5938_v13 }
 0x6ed   :  { %4091 = vmatmul.mubr.bf16.gmra.mrb[124].mxu0 %v3649_v61 }
 0x6ef   :  { %5792 = vmatpush3.bf16.msra.mxu0 %v5938_v13 }
 0x77c   :  { %v5763_v23 = vpop.f32.mrb[96].mxu1 }
 0x77d   :  { %v4133_v46 = vpop.f32.mrb[97].mxu1 }
 0x77e   :  { %v5764_v17 = vpop.f32.mrb[98].mxu1 }
 0x77f   :  { %v4136_v42 = vpop.f32.mrb[99].mxu1 }
 0x781   :  { %v5543_v48 = vpop.f32.mrb[96].mxu0 }
 0x782   :  { %v5544_v52 = vpop.f32.mrb[97].mxu0 }
 0x783   :  { %v5545_v37 = vadd.f32 %v5544_v52, %v5543_v48  ;;  %v5546_v26 = vpop.f32.mrb[98].mxu0 }
 0x784   :  { %v5547_v61 = vpop.f32.mrb[99].mxu0 }
 0x785   :  { %v4134_v0 = vadd.f32 %v5545_v37, %v4133_v46  ;;  %v5548_v60 = vadd.f32 %v5547_v61, %v5546_v26 }
 0x787   :  { %v8257_v19 = vadd.f32 %v8254_v14, %v4134_v0  ;;  %v4137_v51 = vadd.f32 %v5548_v60, %v4136_v42 }
 0x789   :  { %v4219_v38 = vsub.f32 0.0, %v8257_v19  ;;  %v8261_v63 = vadd.f32 %v8254_v14, %v4137_v51  ;;  %v5549_v50 = vpop.f32.mrb[100].mxu0 }
 0x78a   :  { %v5550_v6 = vpop.f32.mrb[101].mxu0 }
 0x78b   :  { %v4235_v3 = vmul.f32 1.442695, %v4219_v38  ;;  %v4220_v33 = vsub.f32 0.0, %v8261_v63  ;;  %v5551_v55 = vadd.f32 %v5550_v6, %v5549_v50  ;;  %v5552_v54 = vpop.f32.mrb[102].mxu0 }
 0x78c   :  { %v5553_v58 = vpop.f32.mrb[103].mxu0 }
 0x78d   :  { %6259 = vpow2.f32 %v4235_v3  ;;  %v4237_v57 = vmul.f32 1.442695, %v4220_v33  ;;  %v4142_v40 = vadd.f32 %v5763_v23, %v5551_v55  ;;  %v5554_v31 = vadd.f32 %v5553_v58, %v5552_v54 }
 0x78f   :  { %6261 = vpow2.f32 %v4237_v57  ;;  %v8265_v39 = vadd.f32 %v8254_v14, %v4142_v40  ;;  %v4145_v47 = vadd.f32 %v5764_v17, %v5554_v31 }
 0x791   :  { %v4221_v32 = vsub.f32 0.0, %v8265_v39  ;;  %v8269_v1 = vadd.f32 %v8254_v14, %v4145_v47 }
 0x793   :  { %v5767_v27 = vpop.f32.mrb[100].mxu1  ;;  %v4239_v21 = vmul.f32 1.442695, %v4221_v32  ;;  %v4222_v35 = vsub.f32 0.0, %v8269_v1 }
 0x794   :  { %v4149_v22 = vpop.f32.mrb[101].mxu1  ;;  %v5555_v10 = vpop.f32.mrb[104].mxu0 }
 0x795   :  { %v5768_v53 = vpop.f32.mrb[102].mxu1  ;;  %v5556_v45 = vpop.f32.mrb[105].mxu0  ;;  %6263 = vpow2.f32 %v4239_v21  ;;  %v4241_v15 = vmul.f32 1.442695, %v4222_v35 }
 0x796   :  { %v4152_v59 = vpop.f32.mrb[103].mxu1  ;;  %v5557_v24 = vadd.f32 %v5556_v45, %v5555_v10  ;;  %v5558_v18 = vpop.f32.mrb[106].mxu0 }
 0x797   :  { %v5559_v4 = vpop.f32.mrb[107].mxu0  ;;  %v6260_v44 = vpop.eup %6259  ;;  %6265 = vpow2.f32 %v4241_v15 }
 0x798   :  { %v4150_v36 = vadd.f32 %v5557_v24, %v4149_v22  ;;  %v5560_v11 = vadd.f32 %v5559_v4, %v5558_v18  ;;  %v4267_v28 = vadd.f32 1.0, %v6260_v44 }
 0x799   :  { %v6262_v13 = vpop.eup %6261 }
 0x79a   :  { %v8273_v23 = vadd.f32 %v8254_v14, %v4150_v36  ;;  %v4153_v46 = vadd.f32 %v5560_v11, %v4152_v59  ;;  %6267 = vrcp.f32 %v4267_v28  ;;  %v4268_v17 = vadd.f32 1.0, %v6262_v13 }
 0x79c   :  { %v4223_v42 = vsub.f32 0.0, %v8273_v23  ;;  %v8277_v48 = vadd.f32 %v8254_v14, %v4153_v46  ;;  %v5561_v52 = vpop.f32.mrb[108].mxu0  ;;  %6269 = vrcp.f32 %v4268_v17 }
 0x79d   :  { %v5562_v37 = vpop.f32.mrb[109].mxu0 }
 0x79e   :  { %v4243_v26 = vmul.f32 1.442695, %v4223_v42  ;;  %v4224_v61 = vsub.f32 0.0, %v8277_v48  ;;  %v5563_v0 = vadd.f32 %v5562_v37, %v5561_v52  ;;  %v5564_v60 = vpop.f32.mrb[110].mxu0 }
 0x79f   :  { %v5565_v51 = vpop.f32.mrb[111].mxu0  ;;  %v6264_v38 = vpop.eup %6263 }
 0x7a0   :  { %6271 = vpow2.f32 %v4243_v26  ;;  %v4245_v50 = vmul.f32 1.442695, %v4224_v61  ;;  %v4158_v6 = vadd.f32 %v5767_v27, %v5563_v0  ;;  %v5566_v3 = vadd.f32 %v5565_v51, %v5564_v60 }
 0x7a1   :  { %v4269_v33 = vadd.f32 1.0, %v6264_v38  ;;  %v5771_v55 = vpop.f32.mrb[104].mxu1  ;;  %v6266_v54 = vpop.eup %6265 }
 0x7a2   :  { %6273 = vpow2.f32 %v4245_v50  ;;  %v8281_v58 = vadd.f32 %v8254_v14, %v4158_v6  ;;  %v4161_v57 = vadd.f32 %v5768_v53, %v5566_v3  ;;  %v4165_v40 = vpop.f32.mrb[105].mxu1  ;;  %v4270_v31 = vadd.f32 1.0, %v6266_v54 }
 0x7a3   :  { %6275 = vrcp.f32 %v4269_v33  ;;  %v5772_v47 = vpop.f32.mrb[106].mxu1 }
 0x7a4   :  { %v4225_v32 = vsub.f32 0.0, %v8281_v58  ;;  %v8285_v22 = vadd.f32 %v8254_v14, %v4161_v57  ;;  %v5567_v21 = vpop.f32.mrb[112].mxu0  ;;  %v4168_v27 = vpop.f32.mrb[107].mxu1  ;;  %6277 = vrcp.f32 %v4270_v31 }
 0x7a5   :  { %v6268_v35 = vpop.eup %6267  ;;  %v5568_v10 = vpop.f32.mrb[113].mxu0 }
 0x7a6   :  { %v4247_v45 = vmul.f32 1.442695, %v4225_v32  ;;  %v4226_v59 = vsub.f32 0.0, %v8285_v22  ;;  %v5569_v15 = vadd.f32 %v5568_v10, %v5567_v21  ;;  %v5570_v24 = vpop.f32.mrb[114].mxu0  ;;  %v6270_v53 = vpop.eup %6269  ;;  %v4299_v18 = vmul.f32 %v6268_v35, %v8257_v19 }
 0x7a7   :  { %v5571_v4 = vpop.f32.mrb[115].mxu0  ;;  %v4300_v44 = vmul.f32 %v6270_v53, %v8261_v63 }
 0x7a8   :  { %6279 = vpow2.f32 %v4247_v45  ;;  %v4249_v36 = vmul.f32 1.442695, %v4226_v59  ;;  %v4166_v11 = vadd.f32 %v5569_v15, %v4165_v40  ;;  %v5572_v28 = vadd.f32 %v5571_v4, %v5570_v24 }
 0x7a9   :  { %v4315_v46 = vpack.c.bf16 %v4300_v44, %v4299_v18 }
 0x7aa   :  { %v6272_v13 = vpop.eup %6271  ;;  %6281 = vpow2.f32 %v4249_v36  ;;  %v8291_v17 = vadd.f32 %v8254_v14, %v4166_v11  ;;  %v4169_v52 = vadd.f32 %v5572_v28, %v4168_v27 }
 0x7ab   :  { %v4271_v42 = vadd.f32 1.0, %v6272_v13  ;;  %v4324_v19 = vshrl.u32 %v4315_v46, 16  ;;  %v4327_v54 = vshll.u32 %v4315_v46, 16 }
 0x7ac   :  { %v6274_v37 = vpop.eup %6273  ;;  %v4227_v26 = vsub.f32 0.0, %v8291_v17  ;;  %v5573_v61 = vpop.f32.mrb[116].mxu0  ;;  %v8295_v60 = vadd.f32 %v8254_v14, %v4169_v52 }
 0x7ad   :  { %v6276_v0 = vpop.eup %6275  ;;  %6283 = vrcp.f32 %v4271_v42  ;;  %v4272_v63 = vadd.f32 1.0, %v6274_v37  ;;  %v5574_v51 = vpop.f32.mrb[117].mxu0  ;;  %v4326_v3 = vrot.slane %v4324_v19, 7 }
 0x7ae   :  { %v4251_v38 = vmul.f32 1.442695, %v4227_v26  ;;  %v5575_v50 = vadd.f32 %v5574_v51, %v5573_v61  ;;  %v5576_v6 = vpop.f32.mrb[118].mxu0  ;;  %v6278_v33 = vpop.eup %6277  ;;  %v4301_v57 = vmul.f32 %v6276_v0, %v8265_v39  ;;  %v4228_v40 = vsub.f32 0.0, %v8295_v60 }
 0x7af   :  { %6285 = vrcp.f32 %v4272_v63  ;;  %v5577_v31 = vpop.f32.mrb[119].mxu0  ;;  %v4302_v32 = vmul.f32 %v6278_v33, %v8269_v1  ;;  %v4329_v10 = vor.u32 %v4327_v54, %v4326_v3  ;;  %v4403_v45 = vsel %vm8041_vm1, %v4326_v3, 0 }
 0x7b0   :  { %6287 = vpow2.f32 %v4251_v38  ;;  %v4174_v21 = vadd.f32 %v5771_v55, %v5575_v50  ;;  %v5578_v27 = vadd.f32 %v5577_v31, %v5576_v6  ;;  %v4253_v35 = vmul.f32 1.442695, %v4228_v40 }
 0x7b1   :  { %v4316_v15 = vpack.c.bf16 %v4302_v32, %v4301_v57  ;;  %v4395_v18 = vsel %vm8041_vm1, 0, %v4329_v10  ;;  %v4532_v1 = vrot.slane %v4403_v45, 1  ;;  %v4419_v11 = vshll.u32 %v4403_v45, 16 }
 0x7b2   :  { %v6280_v59 = vpop.eup %6279  ;;  %v8303_v24 = vadd.f32 %v8254_v14, %v4174_v21  ;;  %v4177_v39 = vadd.f32 %v5772_v47, %v5578_v27  ;;  %6289 = vpow2.f32 %v4253_v35  ;;  %v4531_v46 = vrot.slane %v4395_v18, 1 }
 0x7b3   :  { %v4273_v53 = vadd.f32 1.0, %v6280_v59  ;;  %v4331_v55 = vshrl.u32 %v4316_v15, 16  ;;  %v4334_v28 = vshll.u32 %v4316_v15, 16  ;;  %v4414_v37 = vshll.u32 %v4395_v18, 16 }
 0x7b4   :  { %v6282_v4 = vpop.eup %6281  ;;  %v4229_v44 = vsub.f32 0.0, %v8303_v24  ;;  %v8309_v36 = vadd.f32 %v8254_v14, %v4177_v39  ;;  %v4533_v61 = vsel %vm609_vm10, %v4531_v46, %v4532_v1  ;;  %v4412_v19 = vshrl.u32 %v4395_v18, 16 }
 0x7b5   :  { %6291 = vrcp.f32 %v4273_v53  ;;  %v4274_v13 = vadd.f32 1.0, %v6282_v4  ;;  %v4333_v42 = vrot.slane %v4331_v55, 7  ;;  %5793 = vmatprep.mubr.bf16.mxu0 %v4533_v61  ;;  %v4421_v50 = vrot.slane %v4419_v11, 1 }
 0x7b6   :  { %v4255_v47 = vmul.f32 1.442695, %v4229_v44  ;;  %v4230_v52 = vsub.f32 0.0, %v8309_v36  ;;  %v4416_v57 = vrot.slane %v4414_v37, 1 }
 0x7b7   :  { %v6284_v26 = vpop.eup %6283  ;;  %6293 = vrcp.f32 %v4274_v13  ;;  %v4336_v51 = vor.u32 %v4334_v28, %v4333_v42  ;;  %v4404_v32 = vsel %vm8041_vm1, %v4333_v42, 0 }
 0x7b8   :  { %v8313_v0 = vpop.f32.mrb[108].mxu1  ;;  %v5579_v63 = vpop.f32.mrb[120].mxu0  ;;  %6295 = vpow2.f32 %v4255_v47  ;;  %v4257_v38 = vmul.f32 1.442695, %v4230_v52  ;;  %v4303_v54 = vmul.f32 %v6284_v26, %v8273_v23  ;;  %v4535_v59 = vrot.slane %v4404_v32, 1 }
 0x7b9   :  { %v4181_v6 = vpop.f32.mrb[109].mxu1  ;;  %v5580_v3 = vpop.f32.mrb[121].mxu0  ;;  %v4396_v45 = vsel %vm8041_vm1, 0, %v4336_v51  ;;  %v4417_v23 = vor.u32 %v4416_v57, %v4412_v19  ;;  %v4431_v61 = vshll.u32 %v4404_v32, 16 }
 0x7ba   :  { %v6286_v33 = vpop.eup %6285  ;;  %v8316_v40 = vpop.f32.mrb[110].mxu1  ;;  %v5581_v31 = vadd.f32 %v5580_v3, %v5579_v63  ;;  %6297 = vpow2.f32 %v4257_v38  ;;  %v4534_v1 = vrot.slane %v4396_v45, 1  ;;  %v4426_v44 = vshll.u32 %v4396_v45, 16 }
 0x7bb   :  { %v5582_v21 = vpop.f32.mrb[122].mxu0  ;;  %v6288_v27 = vpop.eup %6287  ;;  %v4304_v35 = vmul.f32 %v6286_v33, %v8277_v48  ;;  %v4422_v28 = vsel %vm480_vm8, %v4417_v23, %v4421_v50  ;;  %v4424_v46 = vshrl.u32 %v4396_v45, 16  ;;  %v4433_v33 = vrot.slane %v4431_v61, 1 }
 0x7bc   :  { %v4184_v10 = vpop.f32.mrb[111].mxu1  ;;  %v5583_v15 = vpop.f32.mrb[123].mxu0  ;;  %v4275_v39 = vadd.f32 1.0, %v6288_v27  ;;  %v4182_v53 = vadd.f32 %v5581_v31, %v4181_v6  ;;  %v4536_v48 = vsel %vm609_vm10, %v4534_v1, %v4535_v59  ;;  %4787 = vmatprep.mubr.bf16.mxu1 %v4422_v28  ;;  %v4428_v52 = vrot.slane %v4426_v44, 1 }
 0x7bd   :  { %v4317_v4 = vpack.c.bf16 %v4304_v35, %v4303_v54  ;;  %v5584_v55 = vadd.f32 %v5583_v15, %v5582_v21  ;;  %v6290_v11 = vpop.eup %6289  ;;  %5794 = vmatmul.mubr.bf16.vlgmr.msra.gmra.mrb[128].mxu0 %v4536_v48  ;;  %4788 = vmatmul.mubr.bf16.vlgmr.msra.gmra.mrb[112].mxu1 %v4395_v18 }
 0x7be   :  { %v8325_v13 = vadd.f32 %v8254_v14, %v4182_v53  ;;  %6299 = vrcp.f32 %v4275_v39  ;;  %v4276_v42 = vadd.f32 1.0, %v6290_v11  ;;  %v4429_v38 = vor.u32 %v4428_v52, %v4424_v46 }
 0x7bf   :  { %v4185_v47 = vadd.f32 %v5584_v55, %v4184_v10  ;;  %v6292_v37 = vpop.eup %6291  ;;  %v4338_v63 = vshrl.u32 %v4317_v4, 16  ;;  %v4341_v27 = vshll.u32 %v4317_v4, 16 }
 0x7c0   :  { %v4231_v26 = vsub.f32 0.0, %v8325_v13  ;;  %v5585_v19 = vpop.f32.mrb[124].mxu0  ;;  %6301 = vrcp.f32 %v4276_v42  ;;  %v4305_v18 = vmul.f32 %v6292_v37, %v8281_v58  ;;  %v4434_v15 = vsel %vm480_vm8, %v4429_v38, %v4433_v33 }
 0x7c1   :  { %v8330_v51 = vadd.f32 %v8254_v14, %v4185_v47  ;;  %v5586_v50 = vpop.f32.mrb[125].mxu0  ;;  %v6294_v6 = vpop.eup %6293  ;;  %v4340_v31 = vrot.slane %v4338_v63, 7  ;;  %4795 = vmatprep.mubr.bf16.mxu1 %v4434_v15 }
 0x7c2   :  { %v4259_v3 = vmul.f32 1.442695, %v4231_v26  ;;  %v5587_v54 = vadd.f32 %v5586_v50, %v5585_v19  ;;  %v5588_v57 = vpop.f32.mrb[126].mxu0  ;;  %v6296_v21 = vpop.eup %6295  ;;  %v4306_v32 = vmul.f32 %v6294_v6, %v8285_v22 }
 0x7c3   :  { %v4232_v35 = vsub.f32 0.0, %v8330_v51  ;;  %v5589_v10 = vpop.f32.mrb[127].mxu0  ;;  %v4277_v59 = vadd.f32 1.0, %v6296_v21  ;;  %v4343_v44 = vor.u32 %v4341_v27, %v4340_v31  ;;  %v4405_v22 = vsel %vm8041_vm1, %v4340_v31, 0 }
 0x7c4   :  { %6303 = vpow2.f32 %v4259_v3  ;;  %v4190_v39 = vadd.f32 %v8313_v0, %v5587_v54  ;;  %v6298_v23 = vpop.eup %6297  ;;  %v4318_v53 = vpack.c.bf16 %v4306_v32, %v4305_v18  ;;  %v5590_v55 = vadd.f32 %v5589_v10, %v5588_v57 }
 0x7c5   :  { %v4261_v1 = vmul.f32 1.442695, %v4232_v35  ;;  %6305 = vrcp.f32 %v4277_v59  ;;  %v4278_v4 = vadd.f32 1.0, %v6298_v23  ;;  %v4397_v0 = vsel %vm8041_vm1, 0, %v4343_v44  ;;  %4796 = vmatmul.mubr.bf16.gmra.mrb[116].mxu1 %v4396_v45 }
 0x7c6   :  { %v8338_v58 = vadd.f32 %v8254_v14, %v4190_v39  ;;  %v4193_v11 = vadd.f32 %v8316_v40, %v5590_v55  ;;  %v4537_v48 = vrot.slane %v4397_v0, 1  ;;  %v4538_v46 = vrot.slane %v4405_v22, 1 }
 0x7c7   :  { %6307 = vpow2.f32 %v4261_v1  ;;  %v4438_v52 = vshll.u32 %v4397_v0, 16  ;;  %v4443_v61 = vshll.u32 %v4405_v22, 16  ;;  %v4345_v19 = vshrl.u32 %v4318_v53, 16 }
 0x7c8   :  { %6309 = vrcp.f32 %v4278_v4  ;;  %v4233_v28 = vsub.f32 0.0, %v8338_v58  ;;  %v6300_v42 = vpop.eup %6299  ;;  %v8347_v47 = vadd.f32 %v8254_v14, %v4193_v11  ;;  %v4539_v26 = vsel %vm609_vm10, %v4537_v48, %v4538_v46 }
 0x7c9   :  { %v4348_v63 = vshll.u32 %v4318_v53, 16  ;;  %5797 = vmatprep.mubr.bf16.mxu0 %v4539_v26  ;;  %v4436_v45 = vshrl.u32 %v4397_v0, 16  ;;  %v4440_v50 = vrot.slane %v4438_v52, 1  ;;  %v4307_v6 = vmul.f32 %v6300_v42, %v8291_v17 }
 0x7ca   :  { %v4263_v37 = vmul.f32 1.442695, %v4233_v28  ;;  %v6302_v40 = vpop.eup %6301  ;;  %v4234_v38 = vsub.f32 0.0, %v8347_v47  ;;  %v4347_v14 = vrot.slane %v4345_v19, 7  ;;  %v4445_v57 = vrot.slane %v4443_v61, 1 }
 0x7cb   :  { %v4308_v3 = vmul.f32 %v6302_v40, %v8295_v60  ;;  %v4441_v54 = vor.u32 %v4440_v50, %v4436_v45 }
 0x7cc   :  { %6311 = vpow2.f32 %v4263_v37  ;;  %v4265_v33 = vmul.f32 1.442695, %v4234_v38  ;;  %v4350_v27 = vor.u32 %v4348_v63, %v4347_v14  ;;  %v4406_v18 = vsel %vm8041_vm1, %v4347_v14, 0 }
 0x7cd   :  { %v4319_v21 = vpack.c.bf16 %v4308_v3, %v4307_v6  ;;  %v4446_v35 = vsel %vm480_vm8, %v4441_v54, %v4445_v57  ;;  %v4541_v23 = vrot.slane %v4406_v18, 1  ;;  %v4455_v44 = vshll.u32 %v4406_v18, 16 }
 0x7ce   :  { %v6304_v31 = vpop.eup %6303  ;;  %6313 = vpow2.f32 %v4265_v33  ;;  %4803 = vmatprep.mubr.bf16.mxu1 %v4446_v35  ;;  %v4398_v17 = vsel %vm8041_vm1, 0, %v4350_v27 }
 0x7cf   :  { %v4279_v32 = vadd.f32 1.0, %v6304_v31  ;;  %v6306_v10 = vpop.eup %6305  ;;  %v4352_v60 = vshrl.u32 %v4319_v21, 16  ;;  %v4355_v15 = vshll.u32 %v4319_v21, 16  ;;  %4804 = vmatmul.mubr.bf16.gmra.mrb[120].mxu1 %v4397_v0  ;;  %v4540_v39 = vrot.slane %v4398_v17, 1 }
 0x7d0   :  { %v4450_v55 = vshll.u32 %v4398_v17, 16  ;;  %v4309_v22 = vmul.f32 %v6306_v10, %v8303_v24  ;;  %v4448_v48 = vshrl.u32 %v4398_v17, 16  ;;  %v4457_v61 = vrot.slane %v4455_v44, 1 }
 0x7d1   :  { %v6308_v59 = vpop.eup %6307  ;;  %6315 = vrcp.f32 %v4279_v32  ;;  %v4354_v4 = vrot.slane %v4352_v60, 7  ;;  %v4542_v28 = vsel %vm609_vm10, %v4540_v39, %v4541_v23 }
 0x7d2   :  { %v6310_v53 = vpop.eup %6309  ;;  %v4280_v1 = vadd.f32 1.0, %v6308_v59  ;;  %5798 = vmatmul.mubr.bf16.gmra.mrb[132].mxu0 %v4542_v28  ;;  %v4452_v46 = vrot.slane %v4450_v55, 1 }
 0x7d3   :  { %v4310_v11 = vmul.f32 %v6310_v53, %v8309_v36  ;;  %v4357_v42 = vor.u32 %v4355_v15, %v4354_v4  ;;  %v4407_v0 = vsel %vm8041_vm1, %v4354_v4, 0 }
 0x7d4   :  { %6317 = vrcp.f32 %v4280_v1  ;;  %v4453_v26 = vor.u32 %v4452_v46, %v4448_v48  ;;  %v4544_v36 = vrot.slane %v4407_v0, 1  ;;  %v4467_v45 = vshll.u32 %v4407_v0, 16 }
 0x7d5   :  { %v4320_v52 = vpack.c.bf16 %v4310_v11, %v4309_v22  ;;  %v4399_v19 = vsel %vm8041_vm1, 0, %v4357_v42 }
 0x7d6   :  { %v6312_v37 = vpop.eup %6311  ;;  %v4543_v40 = vrot.slane %v4399_v19, 1  ;;  %v4458_v63 = vsel %vm480_vm8, %v4453_v26, %v4457_v61  ;;  %v4462_v38 = vshll.u32 %v4399_v19, 16  ;;  %v4460_v33 = vshrl.u32 %v4399_v19, 16 }
 0x7d7   :  { %v4281_v24 = vadd.f32 1.0, %v6312_v37  ;;  %v4359_v50 = vshrl.u32 %v4320_v52, 16  ;;  %v4362_v3 = vshll.u32 %v4320_v52, 16  ;;  %4811 = vmatprep.mubr.bf16.mxu1 %v4458_v63  ;;  %v4469_v18 = vrot.slane %v4467_v45, 1 }
 0x7d8   :  { %v6314_v6 = vpop.eup %6313  ;;  %v4545_v14 = vsel %vm609_vm10, %v4543_v40, %v4544_v36  ;;  %4812 = vmatmul.mubr.bf16.gmra.mrb[124].mxu1 %v4398_v17  ;;  %v4464_v57 = vrot.slane %v4462_v38, 1 }
 0x7d9   :  { %6319 = vrcp.f32 %v4281_v24  ;;  %v4282_v54 = vadd.f32 1.0, %v6314_v6  ;;  %5801 = vmatprep.mubr.bf16.mxu0 %v4545_v14  ;;  %v4361_v31 = vrot.slane %v4359_v50, 7 }
 0x7da   :  { %v4465_v27 = vor.u32 %v4464_v57, %v4460_v33 }
 0x7db   :  { %v6316_v21 = vpop.eup %6315  ;;  %6321 = vrcp.f32 %v4282_v54  ;;  %v4364_v32 = vor.u32 %v4362_v3, %v4361_v31  ;;  %v4408_v35 = vsel %vm8041_vm1, %v4361_v31, 0 }
 0x7dc   :  { %v4311_v60 = vmul.f32 %v6316_v21, %v8325_v13  ;;  %v4470_v59 = vsel %vm480_vm8, %v4465_v27, %v4469_v18  ;;  %v4547_v17 = vrot.slane %v4408_v35, 1  ;;  %v4479_v1 = vshll.u32 %v4408_v35, 16 }
 0x7dd   :  { %v4400_v15 = vsel %vm8041_vm1, 0, %v4364_v32  ;;  %4819 = vmatprep.mubr.bf16.mxu1 %v4470_v59 }
 0x7de   :  { %v6318_v10 = vpop.eup %6317  ;;  %v4546_v23 = vrot.slane %v4400_v15, 1  ;;  %v4474_v53 = vshll.u32 %v4400_v15, 16  ;;  %v4472_v4 = vshrl.u32 %v4400_v15, 16  ;;  %v4481_v11 = vrot.slane %v4479_v1, 1 }
 0x7df   :  { %v4312_v39 = vmul.f32 %v6318_v10, %v8330_v51 }
 0x7e0   :  { %v4548_v44 = vsel %vm609_vm10, %v4546_v23, %v4547_v17  ;;  %v4476_v22 = vrot.slane %v4474_v53, 1  ;;  %4820 = vmatmul.mubr.bf16.gmra.mrb[128].mxu1 %v4399_v19 }
 0x7e1   :  { %v4321_v55 = vpack.c.bf16 %v4312_v39, %v4311_v60  ;;  %5802 = vmatmul.mubr.bf16.gmra.mrb[136].mxu0 %v4548_v44 }
 0x7e2   :  { %v4477_v13 = vor.u32 %v4476_v22, %v4472_v4 }
 0x7e3   :  { %v4366_v28 = vshrl.u32 %v4321_v55, 16  ;;  %v6320_v48 = vpop.eup %6319  ;;  %v4369_v46 = vshll.u32 %v4321_v55, 16 }
 0x7e4   :  { %v4482_v42 = vsel %vm480_vm8, %v4477_v13, %v4481_v11  ;;  %v4313_v52 = vmul.f32 %v6320_v48, %v8338_v58  ;;  %v8393_v11 = vld [vmem:[%s8509_s14] ss:$0 sm:$0xff] }
 0x7e5   :  { %v4368_v0 = vrot.slane %v4366_v28, 7  ;;  %v6322_v51 = vpop.eup %6321  ;;  %4827 = vmatprep.mubr.bf16.mxu1 %v4482_v42 }
 0x7e6   :  { %v4314_v37 = vmul.f32 %v6322_v51, %v8347_v47 }
 0x7e7   :  { %v4371_v26 = vor.u32 %v4369_v46, %v4368_v0  ;;  %v4409_v61 = vsel %vm8041_vm1, %v4368_v0, 0 }
 0x7e8   :  { %v4322_v19 = vpack.c.bf16 %v4314_v37, %v4313_v52  ;;  %4828 = vmatmul.mubr.bf16.gmra.mrb[132].mxu1 %v4400_v15  ;;  %v4550_v36 = vrot.slane %v4409_v61, 1  ;;  %v4491_v38 = vshll.u32 %v4409_v61, 16 }
 0x7e9   :  { %v4401_v24 = vsel %vm8041_vm1, 0, %v4371_v26 }
 0x7ea   :  { %v4549_v40 = vrot.slane %v4401_v24, 1  ;;  %v4486_v63 = vshll.u32 %v4401_v24, 16  ;;  %v4373_v45 = vshrl.u32 %v4322_v19, 16  ;;  %v4484_v6 = vshrl.u32 %v4401_v24, 16 }
 0x7eb   :  { %v4376_v3 = vshll.u32 %v4322_v19, 16  ;;  %v4493_v33 = vrot.slane %v4491_v38, 1 }
 0x7ec   :  { %v4551_v50 = vsel %vm609_vm10, %v4549_v40, %v4550_v36  ;;  %v4488_v58 = vrot.slane %v4486_v63, 1  ;;  %v4375_v47 = vrot.slane %v4373_v45, 7 }
 0x7ed   :  { %5805 = vmatprep.mubr.bf16.mxu0 %v4551_v50 }
 0x7ee   :  { %v4489_v14 = vor.u32 %v4488_v58, %v4484_v6  ;;  %v4378_v54 = vor.u32 %v4376_v3, %v4375_v47  ;;  %v4410_v57 = vsel %vm8041_vm1, %v4375_v47, 0 }
 0x7ef   :  { %v4553_v18 = vrot.slane %v4410_v57, 1  ;;  %v4503_v35 = vshll.u32 %v4410_v57, 16 }
 0x7f0   :  { %v4494_v31 = vsel %vm480_vm8, %v4489_v14, %v4493_v33  ;;  %v4402_v21 = vsel %vm8041_vm1, 0, %v4378_v54 }
 0x7f1   :  { %4835 = vmatprep.mubr.bf16.mxu1 %v4494_v31  ;;  %v4552_v27 = vrot.slane %v4402_v21, 1  ;;  %v4498_v32 = vshll.u32 %v4402_v21, 16  ;;  %v4496_v60 = vshrl.u32 %v4402_v21, 16  ;;  %v4505_v17 = vrot.slane %v4503_v35, 1 }
 0x7f2   :  { %4836 = vmatmul.mubr.bf16.gmra.mrb[136].mxu1 %v4401_v24 }
 0x7f3   :  { %v4554_v10 = vsel %vm609_vm10, %v4552_v27, %v4553_v18  ;;  %v4500_v59 = vrot.slane %v4498_v32, 1 }
 0x7f4   :  { %5806 = vmatmul.mubr.bf16.gmra.mrb[140].mxu0 %v4554_v10 }
 0x7f5   :  { %v4501_v15 = vor.u32 %v4500_v59, %v4496_v60 }
 0x7f7   :  { %v4506_v39 = vsel %vm480_vm8, %v4501_v15, %v4505_v17  ;;  %vm5169_vm8 = vcmask 1047559  }
 0x7f8   :  { %4843 = vmatprep.mubr.bf16.mxu1 %v4506_v39 }
 0x7fa   :  { %4844 = vmatmul.mubr.bf16.gmra.mrb[140].mxu1 %v4402_v21 }
 0x890   :  { %v5795_v23 = vpop.f32.mrb[128].mxu0  ;;  %v5623_v53 = vpop.f32.mrb[112].mxu1 }
 0x891   :  { %v4886_v20 = vpop.f32.mrb[129].mxu0  ;;  %v5624_v1 = vpop.f32.mrb[113].mxu1 }
 0x892   :  { %v5796_v55 = vpop.f32.mrb[130].mxu0  ;;  %v5625_v44 = vadd.f32 %v5624_v1, %v5623_v53  ;;  %v5626_v4 = vpop.f32.mrb[114].mxu1 }
 0x893   :  { %v4889_v22 = vpop.f32.mrb[131].mxu0  ;;  %v5627_v13 = vpop.f32.mrb[115].mxu1 }
 0x894   :  { %v5628_v28 = vadd.f32 %v5627_v13, %v5626_v4  ;;  %v4887_v48 = vadd.f32 %v5625_v44, %v4886_v20 }
 0x896   :  { %v4956_v46 = vadd.f32 %v8393_v11, %v4887_v48  ;;  %v4890_v42 = vadd.f32 %v5628_v28, %v4889_v22 }
 0x898   :  { %v8397_v0 = vadd.f32 %v4956_v46, %v8025_v49  ;;  %v4957_v51 = vadd.f32 %v8393_v11, %v4890_v42  ;;  %v5629_v52 = vpop.f32.mrb[116].mxu1 }
 0x899   :  { %v5630_v37 = vpop.f32.mrb[117].mxu1 }
 0x89a   :  { %v4988_v26 = vsub.f32 0.0, %v8397_v0  ;;  %v8402_v61 = vadd.f32 %v4957_v51, %v8028_v41  ;;  %v5631_v19 = vadd.f32 %v5630_v37, %v5629_v52  ;;  %v5632_v24 = vpop.f32.mrb[118].mxu1 }
 0x89b   :  { %v5633_v40 = vpop.f32.mrb[119].mxu1 }
 0x89c   :  { %v5004_v36 = vmul.f32 1.442695, %v4988_v26  ;;  %v4989_v63 = vsub.f32 0.0, %v8402_v61  ;;  %v4895_v38 = vadd.f32 %v5795_v23, %v5631_v19  ;;  %v5634_v45 = vadd.f32 %v5633_v40, %v5632_v24 }
 0x89e   :  { %6323 = vpow2.f32 %v5004_v36  ;;  %v5006_v49 = vmul.f32 1.442695, %v4989_v63  ;;  %v4958_v50 = vadd.f32 %v8393_v11, %v4895_v38  ;;  %v4898_v6 = vadd.f32 %v5796_v55, %v5634_v45 }
 0x8a0   :  { %6325 = vpow2.f32 %v5006_v49  ;;  %v8407_v58 = vadd.f32 %v4958_v50, %v8033_v2  ;;  %v4959_v41 = vadd.f32 %v8393_v11, %v4898_v6 }
 0x8a2   :  { %v5635_v3 = vpop.f32.mrb[120].mxu1  ;;  %v4990_v47 = vsub.f32 0.0, %v8407_v58  ;;  %v8412_v14 = vadd.f32 %v4959_v41, %v8036_v62 }
 0x8a3   :  { %v5636_v33 = vpop.f32.mrb[121].mxu1 }
 0x8a4   :  { %v5637_v54 = vadd.f32 %v5636_v33, %v5635_v3  ;;  %v5638_v57 = vpop.f32.mrb[122].mxu1  ;;  %v5008_v31 = vmul.f32 1.442695, %v4990_v47  ;;  %v4991_v21 = vsub.f32 0.0, %v8412_v14 }
 0x8a5   :  { %v5639_v27 = vpop.f32.mrb[123].mxu1  ;;  %v5799_v18 = vpop.f32.mrb[132].mxu0 }
 0x8a6   :  { %v5640_v32 = vadd.f32 %v5639_v27, %v5638_v57  ;;  %v4902_v35 = vpop.f32.mrb[133].mxu0  ;;  %6327 = vpow2.f32 %v5008_v31  ;;  %v5010_v2 = vmul.f32 1.442695, %v4991_v21 }
 0x8a7   :  { %v4903_v10 = vadd.f32 %v5637_v54, %v4902_v35  ;;  %v5800_v60 = vpop.f32.mrb[134].mxu0 }
 0x8a8   :  { %v4905_v59 = vpop.f32.mrb[135].mxu0  ;;  %v6324_v15 = vpop.eup %6323  ;;  %6329 = vpow2.f32 %v5010_v2 }
 0x8a9   :  { %v4960_v62 = vadd.f32 %v8393_v11, %v4903_v10  ;;  %v4906_v17 = vadd.f32 %v5640_v32, %v4905_v59  ;;  %v5036_v39 = vadd.f32 1.0, %v6324_v15 }
 0x8aa   :  { %v6326_v23 = vpop.eup %6325 }
 0x8ab   :  { %v8417_v53 = vadd.f32 %v4960_v62, %v8077_v9  ;;  %v4961_v20 = vadd.f32 %v8393_v11, %v4906_v17  ;;  %v5641_v1 = vpop.f32.mrb[124].mxu1  ;;  %6331 = vrcp.f32 %v5036_v39  ;;  %v5037_v55 = vadd.f32 1.0, %v6326_v23 }
 0x8ac   :  { %v5642_v44 = vpop.f32.mrb[125].mxu1 }
 0x8ad   :  { %v4992_v4 = vsub.f32 0.0, %v8417_v53  ;;  %v8422_v22 = vadd.f32 %v4961_v20, %v8080_v12  ;;  %v5643_v13 = vadd.f32 %v5642_v44, %v5641_v1  ;;  %v5644_v28 = vpop.f32.mrb[126].mxu1  ;;  %6333 = vrcp.f32 %v5037_v55 }
 0x8ae   :  { %v5645_v48 = vpop.f32.mrb[127].mxu1 }
 0x8af   :  { %v5012_v46 = vmul.f32 1.442695, %v4992_v4  ;;  %v4993_v42 = vsub.f32 0.0, %v8422_v22  ;;  %v4911_v9 = vadd.f32 %v5799_v18, %v5643_v13  ;;  %v5646_v51 = vadd.f32 %v5645_v48, %v5644_v28 }
 0x8b0   :  { %v6328_v52 = vpop.eup %6327 }
 0x8b1   :  { %6335 = vpow2.f32 %v5012_v46  ;;  %v5014_v37 = vmul.f32 1.442695, %v4993_v42  ;;  %v4962_v26 = vadd.f32 %v8393_v11, %v4911_v9  ;;  %v4914_v19 = vadd.f32 %v5800_v60, %v5646_v51 }
 0x8b2   :  { %v5038_v24 = vadd.f32 1.0, %v6328_v52  ;;  %v6330_v40 = vpop.eup %6329 }
 0x8b3   :  { %6337 = vpow2.f32 %v5014_v37  ;;  %v8427_v12 = vadd.f32 %v4962_v26, %v8084_v34  ;;  %v4963_v36 = vadd.f32 %v8393_v11, %v4914_v19  ;;  %v5647_v63 = vpop.f32.mrb[128].mxu1  ;;  %v5039_v45 = vadd.f32 1.0, %v6330_v40 }
 0x8b4   :  { %v5803_v38 = vpop.f32.mrb[136].mxu0  ;;  %6339 = vrcp.f32 %v5038_v24  ;;  %v5648_v49 = vpop.f32.mrb[129].mxu1 }
 0x8b5   :  { %v4918_v50 = vpop.f32.mrb[137].mxu0  ;;  %v4994_v6 = vsub.f32 0.0, %v8427_v12  ;;  %v8432_v41 = vadd.f32 %v4963_v36, %v8087_v5  ;;  %v5649_v3 = vadd.f32 %v5648_v49, %v5647_v63  ;;  %v5650_v47 = vpop.f32.mrb[130].mxu1  ;;  %6341 = vrcp.f32 %v5039_v45 }
 0x8b6   :  { %v5804_v33 = vpop.f32.mrb[138].mxu0  ;;  %v6332_v54 = vpop.eup %6331 }
 0x8b7   :  { %v5651_v34 = vpop.f32.mrb[131].mxu1  ;;  %v4921_v57 = vpop.f32.mrb[139].mxu0  ;;  %v5016_v31 = vmul.f32 1.442695, %v4994_v6  ;;  %v4995_v21 = vsub.f32 0.0, %v8432_v41  ;;  %v5068_v32 = vmul.f32 %v6332_v54, %v8397_v0  ;;  %v4919_v35 = vadd.f32 %v5649_v3, %v4918_v50 }
 0x8b8   :  { %v5652_v27 = vadd.f32 %v5651_v34, %v5650_v47  ;;  %v6334_v18 = vpop.eup %6333 }
 0x8b9   :  { %v5069_v2 = vmul.f32 %v6334_v18, %v8402_v61  ;;  %6343 = vpow2.f32 %v5016_v31  ;;  %v5018_v5 = vmul.f32 1.442695, %v4995_v21  ;;  %v4964_v60 = vadd.f32 %v8393_v11, %v4919_v35 }
 0x8ba   :  { %v4922_v10 = vadd.f32 %v5652_v27, %v4921_v57 }
 0x8bb   :  { %v6336_v59 = vpop.eup %6335  ;;  %v5084_v15 = vadd.f32 %v5069_v2, %v5068_v32  ;;  %6345 = vpow2.f32 %v5018_v5  ;;  %v5653_v17 = vpop.f32.mrb[132].mxu1  ;;  %v8440_v23 = vadd.f32 %v4964_v60, %v8121_v25 }
 0x8bc   :  { %v4965_v62 = vadd.f32 %v8393_v11, %v4922_v10  ;;  %v5040_v39 = vadd.f32 1.0, %v6336_v59  ;;  %v5654_v20 = vpop.f32.mrb[133].mxu1 }
 0x8bd   :  { %v6338_v0 = vpop.eup %6337  ;;  %v5085_v1 = vrot.slane %v5084_v15, 4  ;;  %v5655_v55 = vadd.f32 %v5654_v20, %v5653_v17  ;;  %v5656_v44 = vpop.f32.mrb[134].mxu1  ;;  %v4996_v28 = vsub.f32 0.0, %v8440_v23 }
 0x8be   :  { %v8443_v61 = vadd.f32 %v4965_v62, %v8124_v16  ;;  %v6340_v4 = vpop.eup %6339  ;;  %6347 = vrcp.f32 %v5040_v39  ;;  %v5041_v13 = vadd.f32 1.0, %v6338_v0  ;;  %v5657_v48 = vpop.f32.mrb[135].mxu1 }
 0x8bf   :  { %v5086_v46 = vadd.f32 %v5085_v1, %v5084_v15  ;;  %v4927_v9 = vadd.f32 %v5803_v38, %v5655_v55  ;;  %v6342_v25 = vpop.eup %6341  ;;  %v5070_v51 = vmul.f32 %v6340_v4, %v8407_v58  ;;  %v5020_v52 = vmul.f32 1.442695, %v4996_v28 }
 0x8c0   :  { %v4997_v42 = vsub.f32 0.0, %v8443_v61  ;;  %6349 = vrcp.f32 %v5041_v13  ;;  %v5658_v37 = vadd.f32 %v5657_v48, %v5656_v44  ;;  %v5071_v26 = vmul.f32 %v6342_v25, %v8412_v14 }
 0x8c1   :  { %v5087_v16 = vrot.slane %v5086_v46, 2  ;;  %v4966_v24 = vadd.f32 %v8393_v11, %v4927_v9  ;;  %6351 = vpow2.f32 %v5020_v52 }
 0x8c2   :  { %v5022_v19 = vmul.f32 1.442695, %v4997_v42  ;;  %v4930_v40 = vadd.f32 %v5804_v33, %v5658_v37  ;;  %v5091_v63 = vadd.f32 %v5071_v26, %v5070_v51 }
 0x8c3   :  { %v6344_v36 = vpop.eup %6343  ;;  %v8451_v45 = vadd.f32 %v4966_v24, %v8131_v43  ;;  %v5088_v49 = vadd.f32 %v5087_v16, %v5086_v46 }
 0x8c4   :  { %6353 = vpow2.f32 %v5022_v19  ;;  %v5042_v58 = vadd.f32 1.0, %v6344_v36  ;;  %v4967_v50 = vadd.f32 %v8393_v11, %v4930_v40  ;;  %v5092_v47 = vrot.slane %v5091_v63, 4 }
 0x8c5   :  { %v5659_v38 = vpop.f32.mrb[136].mxu1  ;;  %v6346_v3 = vpop.eup %6345  ;;  %v4998_v14 = vsub.f32 0.0, %v8451_v45  ;;  %v5089_v2 = vrot.slane %v5088_v49, 1 }
 0x8c6   :  { %v5660_v6 = vpop.f32.mrb[137].mxu1  ;;  %6355 = vrcp.f32 %v5042_v58  ;;  %v5043_v33 = vadd.f32 1.0, %v6346_v3  ;;  %v8456_v57 = vadd.f32 %v4967_v50, %v8134_v7  ;;  %v5093_v21 = vadd.f32 %v5092_v47, %v5091_v63 }
 0x8c7   :  { %v5661_v54 = vadd.f32 %v5660_v6, %v5659_v38  ;;  %v5662_v34 = vpop.f32.mrb[138].mxu1  ;;  %v5807_v43 = vpop.f32.mrb[140].mxu0  ;;  %v5024_v27 = vmul.f32 1.442695, %v4998_v14  ;;  %v5090_v4 = vadd.f32 %v5089_v2, %v5088_v49 }
 0x8c8   :  { %v5663_v31 = vpop.f32.mrb[139].mxu1  ;;  %v4934_v32 = vpop.f32.mrb[141].mxu0  ;;  %6357 = vrcp.f32 %v5043_v33  ;;  %v4999_v5 = vsub.f32 0.0, %v8456_v57  ;;  %v5094_v59 = vrot.slane %v5093_v21, 2 }
 0x8c9   :  { %v5664_v18 = vadd.f32 %v5663_v31, %v5662_v34  ;;  %v6348_v35 = vpop.eup %6347  ;;  %v4935_v10 = vadd.f32 %v5661_v54, %v4934_v32  ;;  %v5808_v60 = vpop.f32.mrb[142].mxu0  ;;  %6359 = vpow2.f32 %v5024_v27  ;;  %v5141_v38 = vmul.f32 0.0625, %v5090_v4 }
 0x8ca   :  { %v4937_v15 = vpop.f32.mrb[143].mxu0  ;;  %v6350_v62 = vpop.eup %6349  ;;  %v5026_v17 = vmul.f32 1.442695, %v4999_v5  ;;  %v5095_v20 = vadd.f32 %v5094_v59, %v5093_v21  ;;  %v5072_v0 = vmul.f32 %v6348_v35, %v8417_v53 }
 0x8cb   :  { %v4968_v7 = vadd.f32 %v8393_v11, %v4935_v10  ;;  %v4938_v39 = vadd.f32 %v5664_v18, %v4937_v15  ;;  %v5073_v1 = vmul.f32 %v6350_v62, %v8422_v22  ;;  %v6352_v44 = vpop.eup %6351 }
 0x8cc   :  { %6361 = vpow2.f32 %v5026_v17  ;;  %v5096_v42 = vrot.slane %v5095_v20, 1  ;;  %v5044_v25 = vadd.f32 1.0, %v6352_v44 }
 0x8cd   :  { %v5665_v55 = vpop.f32.mrb[140].mxu1  ;;  %v8463_v13 = vadd.f32 %v4968_v7, %v8151_v8  ;;  %v4969_v28 = vadd.f32 %v8393_v11, %v4938_v39  ;;  %v5098_v9 = vadd.f32 %v5073_v1, %v5072_v0 }
 0x8ce   :  { %v5666_v48 = vpop.f32.mrb[141].mxu1  ;;  %v6354_v46 = vpop.eup %6353  ;;  %v5097_v26 = vadd.f32 %v5096_v42, %v5095_v20  ;;  %6363 = vrcp.f32 %v5044_v25 }
 0x8cf   :  { %v5667_v51 = vadd.f32 %v5666_v48, %v5665_v55  ;;  %v5668_v52 = vpop.f32.mrb[142].mxu1  ;;  %v5045_v53 = vadd.f32 1.0, %v6354_v46  ;;  %v5000_v22 = vsub.f32 0.0, %v8463_v13  ;;  %v8468_v37 = vadd.f32 %v4969_v28, %v8154_v56 }
 0x8d0   :  { %v5669_v16 = vpop.f32.mrb[143].mxu1  ;;  %v5099_v8 = vrot.slane %v5098_v9, 4  ;;  %v6356_v24 = vpop.eup %6355  ;;  %v5142_v49 = vmul.f32 0.0625, %v5097_v26 }
 0x8d1   :  { %v4943_v19 = vadd.f32 %v5807_v43, %v5667_v51  ;;  %6365 = vrcp.f32 %v5045_v53  ;;  %v5028_v40 = vmul.f32 1.442695, %v5000_v22  ;;  %v5001_v36 = vsub.f32 0.0, %v8468_v37 }
 0x8d2   :  { %v5670_v63 = vadd.f32 %v5669_v16, %v5668_v52  ;;  %v5100_v58 = vadd.f32 %v5099_v8, %v5098_v9  ;;  %v6358_v6 = vpop.eup %6357  ;;  %v5074_v56 = vmul.f32 %v6356_v24, %v8427_v12  ;;  %v5158_v54 = vsel %vm5157_vm2, %v5142_v49, %v5141_v38 }
 0x8d3   :  { %v4970_v50 = vadd.f32 %v8393_v11, %v4943_v19  ;;  %6367 = vpow2.f32 %v5028_v40  ;;  %v5030_v3 = vmul.f32 1.442695, %v5001_v36  ;;  %v6360_v14 = vpop.eup %6359  ;;  %v5075_v33 = vmul.f32 %v6358_v6, %v8432_v41 }
 0x8d4   :  { %v4946_v47 = vadd.f32 %v5808_v60, %v5670_v63  ;;  %v5101_v34 = vrot.slane %v5100_v58, 2  ;;  %v5046_v43 = vadd.f32 1.0, %v6360_v14 }
 0x8d5   :  { %v8476_v31 = vadd.f32 %v4970_v50, %v8160_v29  ;;  %6369 = vpow2.f32 %v5030_v3  ;;  %v5105_v18 = vadd.f32 %v5075_v33, %v5074_v56 }
 0x8d6   :  { %v4971_v21 = vadd.f32 %v8393_v11, %v4946_v47  ;;  %v5102_v27 = vadd.f32 %v5101_v34, %v5100_v58  ;;  %v6362_v32 = vpop.eup %6361  ;;  %6371 = vrcp.f32 %v5046_v43 }
 0x8d7   :  { %v5002_v12 = vsub.f32 0.0, %v8476_v31  ;;  %v5106_v5 = vrot.slane %v5105_v18, 4  ;;  %v5047_v10 = vadd.f32 1.0, %v6362_v32 }
 0x8d8   :  { %v8481_v35 = vadd.f32 %v4971_v21, %v8163_v30  ;;  %v5103_v2 = vrot.slane %v5102_v27, 1  ;;  %v6364_v60 = vpop.eup %6363 }
 0x8d9   :  { %v5032_v41 = vmul.f32 1.442695, %v5002_v12  ;;  %v5107_v15 = vadd.f32 %v5106_v5, %v5105_v18  ;;  %6373 = vrcp.f32 %v5047_v10  ;;  %v5076_v39 = vmul.f32 %v6364_v60, %v8440_v23 }
 0x8da   :  { %v5003_v29 = vsub.f32 0.0, %v8481_v35  ;;  %v5104_v59 = vadd.f32 %v5103_v2, %v5102_v27 }
 0x8db   :  { %v6366_v11 = vpop.eup %6365  ;;  %6375 = vpow2.f32 %v5032_v41  ;;  %v5108_v7 = vrot.slane %v5107_v15, 2 }
 0x8dc   :  { %v5034_v62 = vmul.f32 1.442695, %v5003_v29  ;;  %v5143_v17 = vmul.f32 0.0625, %v5104_v59  ;;  %v5077_v30 = vmul.f32 %v6366_v11, %v8443_v61 }
 0x8dd   :  { %v6368_v20 = vpop.eup %6367  ;;  %v5109_v1 = vadd.f32 %v5108_v7, %v5107_v15 }
 0x8de   :  { %6377 = vpow2.f32 %v5034_v62  ;;  %v5160_v0 = vsel %vm5159_vm3, %v5143_v17, %v5158_v54  ;;  %v5112_v55 = vadd.f32 %v5077_v30, %v5076_v39  ;;  %v5048_v44 = vadd.f32 1.0, %v6368_v20 }
 0x8df   :  { %v6370_v4 = vpop.eup %6369  ;;  %v5110_v28 = vrot.slane %v5109_v1, 1 }
 0x8e0   :  { %v5113_v48 = vrot.slane %v5112_v55, 4  ;;  %6379 = vrcp.f32 %v5048_v44  ;;  %v5049_v46 = vadd.f32 1.0, %v6370_v4  ;;  %v6372_v42 = vpop.eup %6371 }
 0x8e1   :  { %v5111_v9 = vadd.f32 %v5110_v28, %v5109_v1  ;;  %v5078_v53 = vmul.f32 %v6372_v42, %v8451_v45 }
 0x8e2   :  { %v5114_v25 = vadd.f32 %v5113_v48, %v5112_v55  ;;  %6381 = vrcp.f32 %v5049_v46 }
 0x8e3   :  { %v6374_v51 = vpop.eup %6373  ;;  %v5144_v23 = vmul.f32 0.0625, %v5111_v9 }
 0x8e4   :  { %v5115_v52 = vrot.slane %v5114_v25, 2  ;;  %v5079_v22 = vmul.f32 %v6374_v51, %v8456_v57 }
 0x8e5   :  { %v6376_v61 = vpop.eup %6375  ;;  %v5162_v16 = vsel %vm5161_vm4, %v5144_v23, %v5160_v0 }
 0x8e6   :  { %v5116_v26 = vadd.f32 %v5115_v52, %v5114_v25  ;;  %v5050_v8 = vadd.f32 1.0, %v6376_v61  ;;  %v5119_v24 = vadd.f32 %v5079_v22, %v5078_v53 }
 0x8e8   :  { %v6378_v19 = vpop.eup %6377  ;;  %v5117_v40 = vrot.slane %v5116_v26, 1  ;;  %6383 = vrcp.f32 %v5050_v8  ;;  %v5120_v63 = vrot.slane %v5119_v24, 4 }
 0x8e9   :  { %v5051_v36 = vadd.f32 1.0, %v6378_v19 }
 0x8ea   :  { %v6380_v38 = vpop.eup %6379  ;;  %v5118_v49 = vadd.f32 %v5117_v40, %v5116_v26  ;;  %v5121_v58 = vadd.f32 %v5120_v63, %v5119_v24 }
 0x8eb   :  { %6385 = vrcp.f32 %v5051_v36  ;;  %v5080_v45 = vmul.f32 %v6380_v38, %v8463_v13 }
 0x8ec   :  { %v6382_v50 = vpop.eup %6381  ;;  %v5145_v6 = vmul.f32 0.0625, %v5118_v49  ;;  %v5122_v56 = vrot.slane %v5121_v58, 2 }
 0x8ed   :  { %v5081_v57 = vmul.f32 %v6382_v50, %v8468_v37 }
 0x8ee   :  { %v5164_v3 = vsel %vm5163_vm5, %v5145_v6, %v5162_v16  ;;  %v5123_v47 = vadd.f32 %v5122_v56, %v5121_v58 }
 0x8ef   :  { %v5126_v14 = vadd.f32 %v5081_v57, %v5080_v45 }
 0x8f0   :  { %v5124_v54 = vrot.slane %v5123_v47, 1 }
 0x8f1   :  { %v5127_v34 = vrot.slane %v5126_v14, 4 }
 0x8f2   :  { %v6384_v33 = vpop.eup %6383  ;;  %v5125_v43 = vadd.f32 %v5124_v54, %v5123_v47 }
 0x8f3   :  { %v5128_v21 = vadd.f32 %v5127_v34, %v5126_v14  ;;  %v5082_v32 = vmul.f32 %v6384_v33, %v8476_v31 }
 0x8f4   :  { %v5146_v18 = vmul.f32 0.0625, %v5125_v43 }
 0x8f5   :  { %v6386_v27 = vpop.eup %6385  ;;  %v5129_v12 = vrot.slane %v5128_v21, 2 }
 0x8f6   :  { %v5083_v2 = vmul.f32 %v6386_v27, %v8481_v35  ;;  %v5166_v5 = vsel %vm5165_vm6, %v5146_v18, %v5164_v3 }
 0x8f7   :  { %v5130_v13 = vadd.f32 %v5129_v12, %v5128_v21 }
 0x8f8   :  { %v5133_v10 = vadd.f32 %v5083_v2, %v5082_v32 }
 0x8f9   :  { %v5131_v37 = vrot.slane %v5130_v13, 1 }
 0x8fa   :  { %v5134_v41 = vrot.slane %v5133_v10, 4 }
 0x8fb   :  { %v5132_v29 = vadd.f32 %v5131_v37, %v5130_v13 }
 0x8fc   :  { %v5135_v60 = vadd.f32 %v5134_v41, %v5133_v10 }
 0x8fd   :  { %v5147_v59 = vmul.f32 0.0625, %v5132_v29 }
 0x8fe   :  { %v5136_v15 = vrot.slane %v5135_v60, 2 }
 0x8ff   :  { %v5168_v11 = vsel %vm5167_vm7, %v5147_v59, %v5166_v5 }
 0x900   :  { %v5137_v62 = vadd.f32 %v5136_v15, %v5135_v60 }
 0x902   :  { %v5138_v17 = vrot.slane %v5137_v62, 1 }
 0x904   :  { %v5139_v7 = vadd.f32 %v5138_v17, %v5137_v62 }
 0x906   :  { %v5148_v39 = vmul.f32 0.0625, %v5139_v7 }
 0x908   :  { %v5170_v30 = vsel %vm5169_vm8, %v5148_v39, %v5168_v11 }
 0x909   :  { %5172 = vst [vmem:[%s8510_s15] sm:$0xff] %v5170_v30 }

</bundles_post_ra>
